<compile_context>
chip_gen: v7x
topology: tpu7x:2x2x1
jax: 0.10.0
libtpu: 0.0.40
codegen_flags: <defaults>
</compile_context>

<pallas_src>
import functools

import jax
import jax.numpy as jnp
from jax.experimental import pallas as pl
from jax.experimental.pallas import tpu as pltpu

LN_EPS = 1e-5  # PyTorch nn.LayerNorm default


def _layernorm(x, gamma, beta):
    mu = jnp.mean(x, axis=-1, keepdims=True)
    var = jnp.mean((x - mu) * (x - mu), axis=-1, keepdims=True)
    return (x - mu) * jax.lax.rsqrt(var + LN_EPS) * gamma + beta


def encoder_block_kernel(
    x_ref,
    ln1_g, ln1_b,
    wq, bq, wk, bk, wv, bv, wo, bo,
    ln2_g, ln2_b,
    w1, b1, w2, b2,
    o_ref,
    *, n_heads: int,
):
    TB, S, D = x_ref.shape
    hd = D // n_heads
    scale = 1.0 / (float(hd) ** 0.5)

    # Fold the batch tile into the matmul M dimension (token-major rows).
    # S is a multiple of 8 at the demo shape, so this reshape is layout-free.
    x = x_ref[...].reshape(TB * S, D)                      # (TB*S, D) f32

    # ---- self-attention sub-block -------------------------------------
    xn = _layernorm(x, ln1_g[0], ln1_b[0])
    xn_b = xn.astype(jnp.bfloat16)

    q = jnp.dot(xn_b, wq[...], preferred_element_type=jnp.float32) + bq[0]
    k = jnp.dot(xn_b, wk[...], preferred_element_type=jnp.float32) + bk[0]
    v = jnp.dot(xn_b, wv[...], preferred_element_type=jnp.float32) + bv[0]

    q3 = q.reshape(TB, S, D)
    k3 = k.reshape(TB, S, D)
    v3 = v.reshape(TB, S, D)

    head_ctx = []
    for h in range(n_heads):              # static unroll; n_heads is small
        lo = h * hd
        qh = q3[:, :, lo:lo + hd].astype(jnp.bfloat16)     # (TB, S, hd)
        kh = k3[:, :, lo:lo + hd].astype(jnp.bfloat16)
        vh = v3[:, :, lo:lo + hd].astype(jnp.bfloat16)

        # scores[b, s, t] = <q_bs, k_bt> * scale   (batched over TB)
        s = jax.lax.dot_general(
            qh, kh, (((2,), (2,)), ((0,), (0,))),
            preferred_element_type=jnp.float32) * scale    # (TB, S, S)
        s = s - jnp.max(s, axis=-1, keepdims=True)
        p = jnp.exp(s)
        p = p * pl.reciprocal(jnp.sum(p, axis=-1, keepdims=True), approx=True)

        ctx = jax.lax.dot_general(
            p.astype(jnp.bfloat16), vh, (((2,), (1,)), ((0,), (0,))),
            preferred_element_type=jnp.float32)            # (TB, S, hd)
        head_ctx.append(ctx)

    attn = jnp.concatenate(head_ctx, axis=-1).reshape(TB * S, D)
    attn = jnp.dot(attn.astype(jnp.bfloat16), wo[...],
                   preferred_element_type=jnp.float32) + bo[0]

    res = attn + x                        # residual 1 (f32)

    # ---- feed-forward sub-block ----------------------------------------
    yn = _layernorm(res, ln2_g[0], ln2_b[0])
    h1 = jnp.dot(yn.astype(jnp.bfloat16), w1[...],
                 preferred_element_type=jnp.float32) + b1[0]
    h1 = jnp.maximum(h1, 0.0)
    h2 = jnp.dot(h1.astype(jnp.bfloat16), w2[...],
                 preferred_element_type=jnp.float32) + b2[0]

    # residual 2 (dropout p=0 -> identity)
    o_ref[...] = (h2 + res).reshape(TB, S, D)


def transformer_encoder_block(x, params, *, n_heads: int, batch_block=None):
    """x: (B, S, D) float32. params: dict of f32 weights (see init_params)."""
    B, S, D = x.shape
    F = params["w1"].shape[1]
    assert D % n_heads == 0, "input_size must be divisible by n_heads"
    assert params["w2"].shape[1] == D, "residual requires hidden_size == input_size"

    # Batch-tile size: target ~256 rows (TB*S) per grid step; must divide B.
    if batch_block is None:
        batch_block = min(B, max(1, 256 // S))
    while B % batch_block:
        batch_block -= 1
    TB = batch_block

    # bf16 weight matrices for the MXU; biases / LN params stay f32.
    matmul_weights = {"wq", "wk", "wv", "wo", "w1", "w2"}
    param_order = ["ln1_g", "ln1_b", "wq", "bq", "wk", "bk", "wv", "bv",
                   "wo", "bo", "ln2_g", "ln2_b", "w1", "b1", "w2", "b2"]
    param_vals = [params[k].astype(jnp.bfloat16) if k in matmul_weights
                  else params[k] for k in param_order]

    def full_spec(shape):
        nd = len(shape)
        return pl.BlockSpec(shape, lambda b, _nd=nd: (0,) * _nd)

    in_specs = [pl.BlockSpec((TB, S, D), lambda b: (b, 0, 0))]
    in_specs += [full_spec(tuple(p.shape)) for p in param_vals]

    kernel = functools.partial(encoder_block_kernel, n_heads=n_heads)

    # VMEM budget: double-buffered weights + activation tiles + headroom,
    # capped well under v7x's 64 MiB physical VMEM.
    weight_bytes = sum(int(p.size) * p.dtype.itemsize for p in param_vals)
    act_bytes = TB * S * max(D, F) * 4
    vmem_limit = int(min(2 * weight_bytes + 16 * act_bytes + (4 << 20), 48 << 20))

    flops = 8 * B * S * D * D + 4 * B * S * S * D + 4 * B * S * D * F
    transcendentals = B * n_heads * S * S + B * n_heads * S + 2 * B * S
    bytes_accessed = 2 * B * S * D * 4 + weight_bytes
    cost = pl.CostEstimate(flops=flops, transcendentals=transcendentals,
                           bytes_accessed=bytes_accessed)

    return pl.pallas_call(
        kernel,
        out_shape=jax.ShapeDtypeStruct((B, S, D), jnp.float32),
        grid_spec=pltpu.PrefetchScalarGridSpec(
            num_scalar_prefetch=0,
            grid=(B // TB,),
            in_specs=in_specs,
            out_specs=pl.BlockSpec((TB, S, D), lambda b: (b, 0, 0)),
        ),
        compiler_params=pltpu.CompilerParams(
            dimension_semantics=("parallel",),
            vmem_limit_bytes=vmem_limit),
        cost_estimate=cost,
    )(x, *param_vals)


def init_params(key, input_size, n_heads, filter_size, hidden_size):
    """Deterministic synthetic init (xavier-ish for linears, ones/zeros for LN)."""
    assert hidden_size == input_size, "residual requires hidden_size == input_size"
    D, F = input_size, filter_size
    ks = jax.random.split(key, 8)

    def xavier(k, fan_in, fan_out):
        lim = jnp.sqrt(6.0 / (fan_in + fan_out))
        return jax.random.uniform(k, (fan_in, fan_out), jnp.float32, -lim, lim)

    return {
        "ln1_g": jnp.ones((1, D), jnp.float32),
        "ln1_b": jnp.zeros((1, D), jnp.float32),
        "wq": xavier(ks[0], D, D), "bq": jnp.zeros((1, D), jnp.float32),
        "wk": xavier(ks[1], D, D), "bk": jnp.zeros((1, D), jnp.float32),
        "wv": xavier(ks[2], D, D), "bv": jnp.zeros((1, D), jnp.float32),
        "wo": xavier(ks[3], D, D), "bo": jnp.zeros((1, D), jnp.float32),
        "ln2_g": jnp.ones((1, D), jnp.float32),
        "ln2_b": jnp.zeros((1, D), jnp.float32),
        "w1": xavier(ks[4], D, F), "b1": jnp.zeros((1, F), jnp.float32),
        "w2": xavier(ks[5], F, D), "b2": jnp.zeros((1, D), jnp.float32),
    }


def reference_forward(x, p, *, n_heads):
    """Pure-JAX f32 reference (mirrors the PyTorch forward)."""
    D = x.shape[-1]
    hd = D // n_heads

    def ln(v, g, b):
        mu = v.mean(-1, keepdims=True)
        var = ((v - mu) ** 2).mean(-1, keepdims=True)
        return (v - mu) / jnp.sqrt(var + LN_EPS) * g[0] + b[0]

    xn = ln(x, p["ln1_g"], p["ln1_b"])
    q = xn @ p["wq"] + p["bq"][0]
    k = xn @ p["wk"] + p["bk"][0]
    v = xn @ p["wv"] + p["bv"][0]

    def split(t):  # (B,S,D) -> (B,H,S,hd)
        B, S, _ = t.shape
        return t.reshape(B, S, n_heads, hd).transpose(0, 2, 1, 3)

    qh, kh, vh = split(q), split(k), split(v)
    s = jnp.einsum("bhqd,bhkd->bhqk", qh, kh) / jnp.sqrt(jnp.float32(hd))
    pattn = jax.nn.softmax(s, axis=-1)
    o = jnp.einsum("bhqk,bhkd->bhqd", pattn, vh)
    B, H, S, _ = o.shape
    o = o.transpose(0, 2, 1, 3).reshape(B, S, D)
    attn = o @ p["wo"] + p["bo"][0]

    res = attn + x
    yn = ln(res, p["ln2_g"], p["ln2_b"])
    h1 = jnp.maximum(yn @ p["w1"] + p["b1"][0], 0.0)
    h2 = h1 @ p["w2"] + p["b2"][0]
    return h2 + res


if __name__ == "__main__":
    B, S = 16, 8
    input_size, n_heads, filter_size, hidden_size = 32, 4, 64, 32

    key = jax.random.PRNGKey(0)
    kx, kp = jax.random.split(key)
    x = jax.random.normal(kx, (B, S, input_size), jnp.float32)
    params = init_params(kp, input_size, n_heads, filter_size, hidden_size)

    # batch_block=8 -> grid of 2 steps so multi-step pipelining / index_maps
    # are exercised (and shard across TCs on v7x).
    out = transformer_encoder_block(x, params, n_heads=n_heads, batch_block=8)
    out = jax.block_until_ready(out)

    ref = reference_forward(x, params, n_heads=n_heads)
    assert out.shape == (B, S, input_size)
    # Tolerance reflects bf16 matmul operands + approximate softmax reciprocal
    # in the kernel vs. the pure-f32 reference.
    assert jnp.allclose(out, ref, atol=5e-2, rtol=5e-2), "mismatch vs JAX reference"

    print("KERNEL_OK")
</pallas_src>

<mosaic_0001>
module attributes {stable_mosaic.version = 11 : i64} {
  func.func @encoder_block_kernel(%arg0: i32, %arg1: memref<8x8x32xf32, #tpu.memory_space<vmem>>, %arg2: memref<1x32xf32, #tpu.memory_space<vmem>>, %arg3: memref<1x32xf32, #tpu.memory_space<vmem>>, %arg4: memref<32x32xbf16, #tpu.memory_space<vmem>>, %arg5: memref<1x32xf32, #tpu.memory_space<vmem>>, %arg6: memref<32x32xbf16, #tpu.memory_space<vmem>>, %arg7: memref<1x32xf32, #tpu.memory_space<vmem>>, %arg8: memref<32x32xbf16, #tpu.memory_space<vmem>>, %arg9: memref<1x32xf32, #tpu.memory_space<vmem>>, %arg10: memref<32x32xbf16, #tpu.memory_space<vmem>>, %arg11: memref<1x32xf32, #tpu.memory_space<vmem>>, %arg12: memref<1x32xf32, #tpu.memory_space<vmem>>, %arg13: memref<1x32xf32, #tpu.memory_space<vmem>>, %arg14: memref<32x64xbf16, #tpu.memory_space<vmem>>, %arg15: memref<1x64xf32, #tpu.memory_space<vmem>>, %arg16: memref<64x32xbf16, #tpu.memory_space<vmem>>, %arg17: memref<1x32xf32, #tpu.memory_space<vmem>>, %arg18: memref<8x8x32xf32, #tpu.memory_space<vmem>>) attributes {dimension_semantics = [#tpu.dimension_semantics<parallel>], iteration_bounds = array<i64: 2>, scalar_prefetch = 0 : i64, scratch_operands = 0 : i64, tpu.core_type = #tpu.core_type<tc>, window_params = [{transform_indices = @transform_0, window_bounds = array<i64: 8, 8, 32>}, {pipeline_mode = #tpu.pipeline_mode<synchronous>, transform_indices = @transform_1, window_bounds = array<i64: 1, 32>}, {pipeline_mode = #tpu.pipeline_mode<synchronous>, transform_indices = @transform_2, window_bounds = array<i64: 1, 32>}, {pipeline_mode = #tpu.pipeline_mode<synchronous>, transform_indices = @transform_3, window_bounds = array<i64: 32, 32>}, {pipeline_mode = #tpu.pipeline_mode<synchronous>, transform_indices = @transform_4, window_bounds = array<i64: 1, 32>}, {pipeline_mode = #tpu.pipeline_mode<synchronous>, transform_indices = @transform_5, window_bounds = array<i64: 32, 32>}, {pipeline_mode = #tpu.pipeline_mode<synchronous>, transform_indices = @transform_6, window_bounds = array<i64: 1, 32>}, {pipeline_mode = #tpu.pipeline_mode<synchronous>, transform_indices = @transform_7, window_bounds = array<i64: 32, 32>}, {pipeline_mode = #tpu.pipeline_mode<synchronous>, transform_indices = @transform_8, window_bounds = array<i64: 1, 32>}, {pipeline_mode = #tpu.pipeline_mode<synchronous>, transform_indices = @transform_9, window_bounds = array<i64: 32, 32>}, {pipeline_mode = #tpu.pipeline_mode<synchronous>, transform_indices = @transform_10, window_bounds = array<i64: 1, 32>}, {pipeline_mode = #tpu.pipeline_mode<synchronous>, transform_indices = @transform_11, window_bounds = array<i64: 1, 32>}, {pipeline_mode = #tpu.pipeline_mode<synchronous>, transform_indices = @transform_12, window_bounds = array<i64: 1, 32>}, {pipeline_mode = #tpu.pipeline_mode<synchronous>, transform_indices = @transform_13, window_bounds = array<i64: 32, 64>}, {pipeline_mode = #tpu.pipeline_mode<synchronous>, transform_indices = @transform_14, window_bounds = array<i64: 1, 64>}, {pipeline_mode = #tpu.pipeline_mode<synchronous>, transform_indices = @transform_15, window_bounds = array<i64: 64, 32>}, {pipeline_mode = #tpu.pipeline_mode<synchronous>, transform_indices = @transform_16, window_bounds = array<i64: 1, 32>}, {transform_indices = @transform_17, window_bounds = array<i64: 8, 8, 32>}]} {
    %c0 = arith.constant 0 : index
    %c0_0 = arith.constant 0 : index
    %c0_1 = arith.constant 0 : index
    %0 = vector.load %arg1[%c0, %c0_0, %c0_1] : memref<8x8x32xf32, #tpu.memory_space<vmem>>, vector<8x8x32xf32>
    %1 = vector.shape_cast %0 : vector<8x8x32xf32> to vector<64x32xf32>
    %c0_2 = arith.constant 0 : index
    %c0_3 = arith.constant 0 : index
    %2 = vector.load %arg2[%c0_2, %c0_3] : memref<1x32xf32, #tpu.memory_space<vmem>>, vector<1x32xf32>
    %3 = vector.shape_cast %2 : vector<1x32xf32> to vector<32xf32>
    %c0_4 = arith.constant 0 : index
    %c0_5 = arith.constant 0 : index
    %4 = vector.load %arg3[%c0_4, %c0_5] : memref<1x32xf32, #tpu.memory_space<vmem>>, vector<1x32xf32>
    %5 = vector.shape_cast %4 : vector<1x32xf32> to vector<32xf32>
    %cst = arith.constant dense<0.000000e+00> : vector<64xf32>
    %6 = vector.multi_reduction <add>, %1, %cst [1] : vector<64x32xf32> to vector<64xf32>
    %7 = vector.shape_cast %6 : vector<64xf32> to vector<64x1xf32>
    %cst_6 = arith.constant 3.200000e+01 : f32
    %8 = vector.broadcast %cst_6 : f32 to vector<64x1xf32>
    %9 = arith.divf %7, %8 : vector<64x1xf32>
    %10 = vector.broadcast %9 : vector<64x1xf32> to vector<64x32xf32>
    %11 = arith.subf %1, %10 : vector<64x32xf32>
    %12 = vector.broadcast %9 : vector<64x1xf32> to vector<64x32xf32>
    %13 = arith.subf %1, %12 : vector<64x32xf32>
    %14 = arith.mulf %11, %13 : vector<64x32xf32>
    %cst_7 = arith.constant dense<0.000000e+00> : vector<64xf32>
    %15 = vector.multi_reduction <add>, %14, %cst_7 [1] : vector<64x32xf32> to vector<64xf32>
    %16 = vector.shape_cast %15 : vector<64xf32> to vector<64x1xf32>
    %cst_8 = arith.constant 3.200000e+01 : f32
    %17 = vector.broadcast %cst_8 : f32 to vector<64x1xf32>
    %18 = arith.divf %16, %17 : vector<64x1xf32>
    %19 = vector.broadcast %9 : vector<64x1xf32> to vector<64x32xf32>
    %20 = arith.subf %1, %19 : vector<64x32xf32>
    %cst_9 = arith.constant 9.99999974E-6 : f32
    %21 = vector.broadcast %cst_9 : f32 to vector<64x1xf32>
    %22 = arith.addf %18, %21 : vector<64x1xf32>
    %23 = math.rsqrt %22 : vector<64x1xf32>
    %24 = vector.broadcast %23 : vector<64x1xf32> to vector<64x32xf32>
    %25 = arith.mulf %20, %24 : vector<64x32xf32>
    %26 = vector.shape_cast %3 : vector<32xf32> to vector<1x32xf32>
    %27 = vector.broadcast %26 : vector<1x32xf32> to vector<64x32xf32>
    %28 = arith.mulf %25, %27 : vector<64x32xf32>
    %29 = vector.shape_cast %5 : vector<32xf32> to vector<1x32xf32>
    %30 = vector.broadcast %29 : vector<1x32xf32> to vector<64x32xf32>
    %31 = arith.addf %28, %30 : vector<64x32xf32>
    %32 = arith.truncf %31 : vector<64x32xf32> to vector<64x32xbf16>
    %c0_10 = arith.constant 0 : index
    %c0_11 = arith.constant 0 : index
    %33 = vector.load %arg4[%c0_10, %c0_11] : memref<32x32xbf16, #tpu.memory_space<vmem>>, vector<32x32xbf16>
    %cst_12 = arith.constant dense<0.000000e+00> : vector<64x32xf32>
    %34 = tpu.matmul %32, %33, %cst_12 {dimension_numbers = #tpu.dot_dimension_numbers<[1], [0], [0], [1], [0, 0, 1, 1], [], []>} : vector<64x32xbf16>, vector<32x32xbf16>, vector<64x32xf32> -> vector<64x32xf32>
    %c0_13 = arith.constant 0 : index
    %c0_14 = arith.constant 0 : index
    %35 = vector.load %arg5[%c0_13, %c0_14] : memref<1x32xf32, #tpu.memory_space<vmem>>, vector<1x32xf32>
    %36 = vector.shape_cast %35 : vector<1x32xf32> to vector<32xf32>
    %37 = vector.shape_cast %36 : vector<32xf32> to vector<1x32xf32>
    %38 = vector.broadcast %37 : vector<1x32xf32> to vector<64x32xf32>
    %39 = arith.addf %34, %38 : vector<64x32xf32>
    %c0_15 = arith.constant 0 : index
    %c0_16 = arith.constant 0 : index
    %40 = vector.load %arg6[%c0_15, %c0_16] : memref<32x32xbf16, #tpu.memory_space<vmem>>, vector<32x32xbf16>
    %cst_17 = arith.constant dense<0.000000e+00> : vector<64x32xf32>
    %41 = tpu.matmul %32, %40, %cst_17 {dimension_numbers = #tpu.dot_dimension_numbers<[1], [0], [0], [1], [0, 0, 1, 1], [], []>} : vector<64x32xbf16>, vector<32x32xbf16>, vector<64x32xf32> -> vector<64x32xf32>
    %c0_18 = arith.constant 0 : index
    %c0_19 = arith.constant 0 : index
    %42 = vector.load %arg7[%c0_18, %c0_19] : memref<1x32xf32, #tpu.memory_space<vmem>>, vector<1x32xf32>
    %43 = vector.shape_cast %42 : vector<1x32xf32> to vector<32xf32>
    %44 = vector.shape_cast %43 : vector<32xf32> to vector<1x32xf32>
    %45 = vector.broadcast %44 : vector<1x32xf32> to vector<64x32xf32>
    %46 = arith.addf %41, %45 : vector<64x32xf32>
    %c0_20 = arith.constant 0 : index
    %c0_21 = arith.constant 0 : index
    %47 = vector.load %arg8[%c0_20, %c0_21] : memref<32x32xbf16, #tpu.memory_space<vmem>>, vector<32x32xbf16>
    %cst_22 = arith.constant dense<0.000000e+00> : vector<64x32xf32>
    %48 = tpu.matmul %32, %47, %cst_22 {dimension_numbers = #tpu.dot_dimension_numbers<[1], [0], [0], [1], [0, 0, 1, 1], [], []>} : vector<64x32xbf16>, vector<32x32xbf16>, vector<64x32xf32> -> vector<64x32xf32>
    %c0_23 = arith.constant 0 : index
    %c0_24 = arith.constant 0 : index
    %49 = vector.load %arg9[%c0_23, %c0_24] : memref<1x32xf32, #tpu.memory_space<vmem>>, vector<1x32xf32>
    %50 = vector.shape_cast %49 : vector<1x32xf32> to vector<32xf32>
    %51 = vector.shape_cast %50 : vector<32xf32> to vector<1x32xf32>
    %52 = vector.broadcast %51 : vector<1x32xf32> to vector<64x32xf32>
    %53 = arith.addf %48, %52 : vector<64x32xf32>
    %54 = vector.shape_cast %39 : vector<64x32xf32> to vector<8x8x32xf32>
    %55 = vector.shape_cast %46 : vector<64x32xf32> to vector<8x8x32xf32>
    %56 = vector.shape_cast %53 : vector<64x32xf32> to vector<8x8x32xf32>
    %57 = vector.extract_strided_slice %54 {offsets = [0, 0, 0], sizes = [8, 8, 8], strides = [1, 1, 1]} : vector<8x8x32xf32> to vector<8x8x8xf32>
    %58 = arith.truncf %57 : vector<8x8x8xf32> to vector<8x8x8xbf16>
    %59 = vector.extract_strided_slice %55 {offsets = [0, 0, 0], sizes = [8, 8, 8], strides = [1, 1, 1]} : vector<8x8x32xf32> to vector<8x8x8xf32>
    %60 = arith.truncf %59 : vector<8x8x8xf32> to vector<8x8x8xbf16>
    %61 = vector.extract_strided_slice %56 {offsets = [0, 0, 0], sizes = [8, 8, 8], strides = [1, 1, 1]} : vector<8x8x32xf32> to vector<8x8x8xf32>
    %62 = arith.truncf %61 : vector<8x8x8xf32> to vector<8x8x8xbf16>
    %cst_25 = arith.constant dense<0.000000e+00> : vector<8x8x8xf32>
    %63 = tpu.matmul %58, %60, %cst_25 {dimension_numbers = #tpu.dot_dimension_numbers<[2], [2], [1], [1], [0, 0, 0, 1, 1, 1], [0], [0]>} : vector<8x8x8xbf16>, vector<8x8x8xbf16>, vector<8x8x8xf32> -> vector<8x8x8xf32>
    %cst_26 = arith.constant 0.353553385 : f32
    %64 = vector.broadcast %cst_26 : f32 to vector<8x8x8xf32>
    %65 = arith.mulf %63, %64 : vector<8x8x8xf32>
    %cst_27 = arith.constant dense<0xFF800000> : vector<8x8xf32>
    %66 = vector.multi_reduction <maximumf>, %65, %cst_27 [2] : vector<8x8x8xf32> to vector<8x8xf32>
    %67 = vector.shape_cast %66 : vector<8x8xf32> to vector<8x8x1xf32>
    %68 = vector.broadcast %67 : vector<8x8x1xf32> to vector<8x8x8xf32>
    %69 = arith.subf %65, %68 : vector<8x8x8xf32>
    %70 = math.exp %69 : vector<8x8x8xf32>
    %cst_28 = arith.constant dense<0.000000e+00> : vector<8x8xf32>
    %71 = vector.multi_reduction <add>, %70, %cst_28 [2] : vector<8x8x8xf32> to vector<8x8xf32>
    %72 = vector.shape_cast %71 : vector<8x8xf32> to vector<8x8x1xf32>
    %73 = tpu.reciprocal %72 {approx = true} : vector<8x8x1xf32> -> vector<8x8x1xf32>
    %74 = vector.broadcast %73 : vector<8x8x1xf32> to vector<8x8x8xf32>
    %75 = arith.mulf %70, %74 : vector<8x8x8xf32>
    %76 = arith.truncf %75 : vector<8x8x8xf32> to vector<8x8x8xbf16>
    %cst_29 = arith.constant dense<0.000000e+00> : vector<8x8x8xf32>
    %77 = tpu.matmul %76, %62, %cst_29 {dimension_numbers = #tpu.dot_dimension_numbers<[2], [1], [1], [2], [0, 0, 0, 1, 1, 2], [0], [0]>} : vector<8x8x8xbf16>, vector<8x8x8xbf16>, vector<8x8x8xf32> -> vector<8x8x8xf32>
    %78 = vector.extract_strided_slice %54 {offsets = [0, 0, 8], sizes = [8, 8, 8], strides = [1, 1, 1]} : vector<8x8x32xf32> to vector<8x8x8xf32>
    %79 = arith.truncf %78 : vector<8x8x8xf32> to vector<8x8x8xbf16>
    %80 = vector.extract_strided_slice %55 {offsets = [0, 0, 8], sizes = [8, 8, 8], strides = [1, 1, 1]} : vector<8x8x32xf32> to vector<8x8x8xf32>
    %81 = arith.truncf %80 : vector<8x8x8xf32> to vector<8x8x8xbf16>
    %82 = vector.extract_strided_slice %56 {offsets = [0, 0, 8], sizes = [8, 8, 8], strides = [1, 1, 1]} : vector<8x8x32xf32> to vector<8x8x8xf32>
    %83 = arith.truncf %82 : vector<8x8x8xf32> to vector<8x8x8xbf16>
    %cst_30 = arith.constant dense<0.000000e+00> : vector<8x8x8xf32>
    %84 = tpu.matmul %79, %81, %cst_30 {dimension_numbers = #tpu.dot_dimension_numbers<[2], [2], [1], [1], [0, 0, 0, 1, 1, 1], [0], [0]>} : vector<8x8x8xbf16>, vector<8x8x8xbf16>, vector<8x8x8xf32> -> vector<8x8x8xf32>
    %cst_31 = arith.constant 0.353553385 : f32
    %85 = vector.broadcast %cst_31 : f32 to vector<8x8x8xf32>
    %86 = arith.mulf %84, %85 : vector<8x8x8xf32>
    %cst_32 = arith.constant dense<0xFF800000> : vector<8x8xf32>
    %87 = vector.multi_reduction <maximumf>, %86, %cst_32 [2] : vector<8x8x8xf32> to vector<8x8xf32>
    %88 = vector.shape_cast %87 : vector<8x8xf32> to vector<8x8x1xf32>
    %89 = vector.broadcast %88 : vector<8x8x1xf32> to vector<8x8x8xf32>
    %90 = arith.subf %86, %89 : vector<8x8x8xf32>
    %91 = math.exp %90 : vector<8x8x8xf32>
    %cst_33 = arith.constant dense<0.000000e+00> : vector<8x8xf32>
    %92 = vector.multi_reduction <add>, %91, %cst_33 [2] : vector<8x8x8xf32> to vector<8x8xf32>
    %93 = vector.shape_cast %92 : vector<8x8xf32> to vector<8x8x1xf32>
    %94 = tpu.reciprocal %93 {approx = true} : vector<8x8x1xf32> -> vector<8x8x1xf32>
    %95 = vector.broadcast %94 : vector<8x8x1xf32> to vector<8x8x8xf32>
    %96 = arith.mulf %91, %95 : vector<8x8x8xf32>
    %97 = arith.truncf %96 : vector<8x8x8xf32> to vector<8x8x8xbf16>
    %cst_34 = arith.constant dense<0.000000e+00> : vector<8x8x8xf32>
    %98 = tpu.matmul %97, %83, %cst_34 {dimension_numbers = #tpu.dot_dimension_numbers<[2], [1], [1], [2], [0, 0, 0, 1, 1, 2], [0], [0]>} : vector<8x8x8xbf16>, vector<8x8x8xbf16>, vector<8x8x8xf32> -> vector<8x8x8xf32>
    %99 = vector.extract_strided_slice %54 {offsets = [0, 0, 16], sizes = [8, 8, 8], strides = [1, 1, 1]} : vector<8x8x32xf32> to vector<8x8x8xf32>
    %100 = arith.truncf %99 : vector<8x8x8xf32> to vector<8x8x8xbf16>
    %101 = vector.extract_strided_slice %55 {offsets = [0, 0, 16], sizes = [8, 8, 8], strides = [1, 1, 1]} : vector<8x8x32xf32> to vector<8x8x8xf32>
    %102 = arith.truncf %101 : vector<8x8x8xf32> to vector<8x8x8xbf16>
    %103 = vector.extract_strided_slice %56 {offsets = [0, 0, 16], sizes = [8, 8, 8], strides = [1, 1, 1]} : vector<8x8x32xf32> to vector<8x8x8xf32>
    %104 = arith.truncf %103 : vector<8x8x8xf32> to vector<8x8x8xbf16>
    %cst_35 = arith.constant dense<0.000000e+00> : vector<8x8x8xf32>
    %105 = tpu.matmul %100, %102, %cst_35 {dimension_numbers = #tpu.dot_dimension_numbers<[2], [2], [1], [1], [0, 0, 0, 1, 1, 1], [0], [0]>} : vector<8x8x8xbf16>, vector<8x8x8xbf16>, vector<8x8x8xf32> -> vector<8x8x8xf32>
    %cst_36 = arith.constant 0.353553385 : f32
    %106 = vector.broadcast %cst_36 : f32 to vector<8x8x8xf32>
    %107 = arith.mulf %105, %106 : vector<8x8x8xf32>
    %cst_37 = arith.constant dense<0xFF800000> : vector<8x8xf32>
    %108 = vector.multi_reduction <maximumf>, %107, %cst_37 [2] : vector<8x8x8xf32> to vector<8x8xf32>
    %109 = vector.shape_cast %108 : vector<8x8xf32> to vector<8x8x1xf32>
    %110 = vector.broadcast %109 : vector<8x8x1xf32> to vector<8x8x8xf32>
    %111 = arith.subf %107, %110 : vector<8x8x8xf32>
    %112 = math.exp %111 : vector<8x8x8xf32>
    %cst_38 = arith.constant dense<0.000000e+00> : vector<8x8xf32>
    %113 = vector.multi_reduction <add>, %112, %cst_38 [2] : vector<8x8x8xf32> to vector<8x8xf32>
    %114 = vector.shape_cast %113 : vector<8x8xf32> to vector<8x8x1xf32>
    %115 = tpu.reciprocal %114 {approx = true} : vector<8x8x1xf32> -> vector<8x8x1xf32>
    %116 = vector.broadcast %115 : vector<8x8x1xf32> to vector<8x8x8xf32>
    %117 = arith.mulf %112, %116 : vector<8x8x8xf32>
    %118 = arith.truncf %117 : vector<8x8x8xf32> to vector<8x8x8xbf16>
    %cst_39 = arith.constant dense<0.000000e+00> : vector<8x8x8xf32>
    %119 = tpu.matmul %118, %104, %cst_39 {dimension_numbers = #tpu.dot_dimension_numbers<[2], [1], [1], [2], [0, 0, 0, 1, 1, 2], [0], [0]>} : vector<8x8x8xbf16>, vector<8x8x8xbf16>, vector<8x8x8xf32> -> vector<8x8x8xf32>
    %120 = vector.extract_strided_slice %54 {offsets = [0, 0, 24], sizes = [8, 8, 8], strides = [1, 1, 1]} : vector<8x8x32xf32> to vector<8x8x8xf32>
    %121 = arith.truncf %120 : vector<8x8x8xf32> to vector<8x8x8xbf16>
    %122 = vector.extract_strided_slice %55 {offsets = [0, 0, 24], sizes = [8, 8, 8], strides = [1, 1, 1]} : vector<8x8x32xf32> to vector<8x8x8xf32>
    %123 = arith.truncf %122 : vector<8x8x8xf32> to vector<8x8x8xbf16>
    %124 = vector.extract_strided_slice %56 {offsets = [0, 0, 24], sizes = [8, 8, 8], strides = [1, 1, 1]} : vector<8x8x32xf32> to vector<8x8x8xf32>
    %125 = arith.truncf %124 : vector<8x8x8xf32> to vector<8x8x8xbf16>
    %cst_40 = arith.constant dense<0.000000e+00> : vector<8x8x8xf32>
    %126 = tpu.matmul %121, %123, %cst_40 {dimension_numbers = #tpu.dot_dimension_numbers<[2], [2], [1], [1], [0, 0, 0, 1, 1, 1], [0], [0]>} : vector<8x8x8xbf16>, vector<8x8x8xbf16>, vector<8x8x8xf32> -> vector<8x8x8xf32>
    %cst_41 = arith.constant 0.353553385 : f32
    %127 = vector.broadcast %cst_41 : f32 to vector<8x8x8xf32>
    %128 = arith.mulf %126, %127 : vector<8x8x8xf32>
    %cst_42 = arith.constant dense<0xFF800000> : vector<8x8xf32>
    %129 = vector.multi_reduction <maximumf>, %128, %cst_42 [2] : vector<8x8x8xf32> to vector<8x8xf32>
    %130 = vector.shape_cast %129 : vector<8x8xf32> to vector<8x8x1xf32>
    %131 = vector.broadcast %130 : vector<8x8x1xf32> to vector<8x8x8xf32>
    %132 = arith.subf %128, %131 : vector<8x8x8xf32>
    %133 = math.exp %132 : vector<8x8x8xf32>
    %cst_43 = arith.constant dense<0.000000e+00> : vector<8x8xf32>
    %134 = vector.multi_reduction <add>, %133, %cst_43 [2] : vector<8x8x8xf32> to vector<8x8xf32>
    %135 = vector.shape_cast %134 : vector<8x8xf32> to vector<8x8x1xf32>
    %136 = tpu.reciprocal %135 {approx = true} : vector<8x8x1xf32> -> vector<8x8x1xf32>
    %137 = vector.broadcast %136 : vector<8x8x1xf32> to vector<8x8x8xf32>
    %138 = arith.mulf %133, %137 : vector<8x8x8xf32>
    %139 = arith.truncf %138 : vector<8x8x8xf32> to vector<8x8x8xbf16>
    %cst_44 = arith.constant dense<0.000000e+00> : vector<8x8x8xf32>
    %140 = tpu.matmul %139, %125, %cst_44 {dimension_numbers = #tpu.dot_dimension_numbers<[2], [1], [1], [2], [0, 0, 0, 1, 1, 2], [0], [0]>} : vector<8x8x8xbf16>, vector<8x8x8xbf16>, vector<8x8x8xf32> -> vector<8x8x8xf32>
    %141 = tpu.concatenate %77, %98, %119, %140 in 2 : vector<8x8x8xf32>, vector<8x8x8xf32>, vector<8x8x8xf32>, vector<8x8x8xf32> -> vector<8x8x32xf32>
    %142 = vector.shape_cast %141 : vector<8x8x32xf32> to vector<64x32xf32>
    %143 = arith.truncf %142 : vector<64x32xf32> to vector<64x32xbf16>
    %c0_45 = arith.constant 0 : index
    %c0_46 = arith.constant 0 : index
    %144 = vector.load %arg10[%c0_45, %c0_46] : memref<32x32xbf16, #tpu.memory_space<vmem>>, vector<32x32xbf16>
    %cst_47 = arith.constant dense<0.000000e+00> : vector<64x32xf32>
    %145 = tpu.matmul %143, %144, %cst_47 {dimension_numbers = #tpu.dot_dimension_numbers<[1], [0], [0], [1], [0, 0, 1, 1], [], []>} : vector<64x32xbf16>, vector<32x32xbf16>, vector<64x32xf32> -> vector<64x32xf32>
    %c0_48 = arith.constant 0 : index
    %c0_49 = arith.constant 0 : index
    %146 = vector.load %arg11[%c0_48, %c0_49] : memref<1x32xf32, #tpu.memory_space<vmem>>, vector<1x32xf32>
    %147 = vector.shape_cast %146 : vector<1x32xf32> to vector<32xf32>
    %148 = vector.shape_cast %147 : vector<32xf32> to vector<1x32xf32>
    %149 = vector.broadcast %148 : vector<1x32xf32> to vector<64x32xf32>
    %150 = arith.addf %145, %149 : vector<64x32xf32>
    %151 = arith.addf %150, %1 : vector<64x32xf32>
    %c0_50 = arith.constant 0 : index
    %c0_51 = arith.constant 0 : index
    %152 = vector.load %arg12[%c0_50, %c0_51] : memref<1x32xf32, #tpu.memory_space<vmem>>, vector<1x32xf32>
    %153 = vector.shape_cast %152 : vector<1x32xf32> to vector<32xf32>
    %c0_52 = arith.constant 0 : index
    %c0_53 = arith.constant 0 : index
    %154 = vector.load %arg13[%c0_52, %c0_53] : memref<1x32xf32, #tpu.memory_space<vmem>>, vector<1x32xf32>
    %155 = vector.shape_cast %154 : vector<1x32xf32> to vector<32xf32>
    %cst_54 = arith.constant dense<0.000000e+00> : vector<64xf32>
    %156 = vector.multi_reduction <add>, %151, %cst_54 [1] : vector<64x32xf32> to vector<64xf32>
    %157 = vector.shape_cast %156 : vector<64xf32> to vector<64x1xf32>
    %cst_55 = arith.constant 3.200000e+01 : f32
    %158 = vector.broadcast %cst_55 : f32 to vector<64x1xf32>
    %159 = arith.divf %157, %158 : vector<64x1xf32>
    %160 = vector.broadcast %159 : vector<64x1xf32> to vector<64x32xf32>
    %161 = arith.subf %151, %160 : vector<64x32xf32>
    %162 = vector.broadcast %159 : vector<64x1xf32> to vector<64x32xf32>
    %163 = arith.subf %151, %162 : vector<64x32xf32>
    %164 = arith.mulf %161, %163 : vector<64x32xf32>
    %cst_56 = arith.constant dense<0.000000e+00> : vector<64xf32>
    %165 = vector.multi_reduction <add>, %164, %cst_56 [1] : vector<64x32xf32> to vector<64xf32>
    %166 = vector.shape_cast %165 : vector<64xf32> to vector<64x1xf32>
    %cst_57 = arith.constant 3.200000e+01 : f32
    %167 = vector.broadcast %cst_57 : f32 to vector<64x1xf32>
    %168 = arith.divf %166, %167 : vector<64x1xf32>
    %169 = vector.broadcast %159 : vector<64x1xf32> to vector<64x32xf32>
    %170 = arith.subf %151, %169 : vector<64x32xf32>
    %cst_58 = arith.constant 9.99999974E-6 : f32
    %171 = vector.broadcast %cst_58 : f32 to vector<64x1xf32>
    %172 = arith.addf %168, %171 : vector<64x1xf32>
    %173 = math.rsqrt %172 : vector<64x1xf32>
    %174 = vector.broadcast %173 : vector<64x1xf32> to vector<64x32xf32>
    %175 = arith.mulf %170, %174 : vector<64x32xf32>
    %176 = vector.shape_cast %153 : vector<32xf32> to vector<1x32xf32>
    %177 = vector.broadcast %176 : vector<1x32xf32> to vector<64x32xf32>
    %178 = arith.mulf %175, %177 : vector<64x32xf32>
    %179 = vector.shape_cast %155 : vector<32xf32> to vector<1x32xf32>
    %180 = vector.broadcast %179 : vector<1x32xf32> to vector<64x32xf32>
    %181 = arith.addf %178, %180 : vector<64x32xf32>
    %182 = arith.truncf %181 : vector<64x32xf32> to vector<64x32xbf16>
    %c0_59 = arith.constant 0 : index
    %c0_60 = arith.constant 0 : index
    %183 = vector.load %arg14[%c0_59, %c0_60] : memref<32x64xbf16, #tpu.memory_space<vmem>>, vector<32x64xbf16>
    %cst_61 = arith.constant dense<0.000000e+00> : vector<64x64xf32>
    %184 = tpu.matmul %182, %183, %cst_61 {dimension_numbers = #tpu.dot_dimension_numbers<[1], [0], [0], [1], [0, 0, 1, 1], [], []>} : vector<64x32xbf16>, vector<32x64xbf16>, vector<64x64xf32> -> vector<64x64xf32>
    %c0_62 = arith.constant 0 : index
    %c0_63 = arith.constant 0 : index
    %185 = vector.load %arg15[%c0_62, %c0_63] : memref<1x64xf32, #tpu.memory_space<vmem>>, vector<1x64xf32>
    %186 = vector.shape_cast %185 : vector<1x64xf32> to vector<64xf32>
    %187 = vector.shape_cast %186 : vector<64xf32> to vector<1x64xf32>
    %188 = vector.broadcast %187 : vector<1x64xf32> to vector<64x64xf32>
    %189 = arith.addf %184, %188 : vector<64x64xf32>
    %cst_64 = arith.constant 0.000000e+00 : f32
    %190 = vector.broadcast %cst_64 : f32 to vector<64x64xf32>
    %191 = arith.maximumf %189, %190 : vector<64x64xf32>
    %192 = arith.truncf %191 : vector<64x64xf32> to vector<64x64xbf16>
    %c0_65 = arith.constant 0 : index
    %c0_66 = arith.constant 0 : index
    %193 = vector.load %arg16[%c0_65, %c0_66] : memref<64x32xbf16, #tpu.memory_space<vmem>>, vector<64x32xbf16>
    %cst_67 = arith.constant dense<0.000000e+00> : vector<64x32xf32>
    %194 = tpu.matmul %192, %193, %cst_67 {dimension_numbers = #tpu.dot_dimension_numbers<[1], [0], [0], [1], [0, 0, 1, 1], [], []>} : vector<64x64xbf16>, vector<64x32xbf16>, vector<64x32xf32> -> vector<64x32xf32>
    %c0_68 = arith.constant 0 : index
    %c0_69 = arith.constant 0 : index
    %195 = vector.load %arg17[%c0_68, %c0_69] : memref<1x32xf32, #tpu.memory_space<vmem>>, vector<1x32xf32>
    %196 = vector.shape_cast %195 : vector<1x32xf32> to vector<32xf32>
    %197 = vector.shape_cast %196 : vector<32xf32> to vector<1x32xf32>
    %198 = vector.broadcast %197 : vector<1x32xf32> to vector<64x32xf32>
    %199 = arith.addf %194, %198 : vector<64x32xf32>
    %200 = arith.addf %199, %151 : vector<64x32xf32>
    %201 = vector.shape_cast %200 : vector<64x32xf32> to vector<8x8x32xf32>
    %c0_70 = arith.constant 0 : index
    %c0_71 = arith.constant 0 : index
    %c0_72 = arith.constant 0 : index
    %202 = vector.load %arg18[%c0_70, %c0_71, %c0_72] : memref<8x8x32xf32, #tpu.memory_space<vmem>>, vector<8x8x32xf32>
    tpu.vector_store %arg18[%c0_70, %c0_71, %c0_72], %201 {strides = array<i32>} : memref<8x8x32xf32, #tpu.memory_space<vmem>>, vector<8x8x32xf32>,
    return
  }
  func.func @transform_0(%arg0: i32) -> (i32, i32, i32) {
    %c0_i32 = arith.constant 0 : i32
    %c0_i32_0 = arith.constant 0 : i32
    %c0_i32_1 = arith.constant 0 : i32
    return %arg0, %c0_i32, %c0_i32_0 : i32, i32, i32
  }
  func.func @transform_1(%arg0: i32) -> (i32, i32) {
    %c0_i32 = arith.constant 0 : i32
    %c0_i32_0 = arith.constant 0 : i32
    %c0_i32_1 = arith.constant 0 : i32
    return %c0_i32, %c0_i32_0 : i32, i32
  }
  func.func @transform_2(%arg0: i32) -> (i32, i32) {
    %c0_i32 = arith.constant 0 : i32
    %c0_i32_0 = arith.constant 0 : i32
    %c0_i32_1 = arith.constant 0 : i32
    return %c0_i32, %c0_i32_0 : i32, i32
  }
  func.func @transform_3(%arg0: i32) -> (i32, i32) {
    %c0_i32 = arith.constant 0 : i32
    %c0_i32_0 = arith.constant 0 : i32
    %c0_i32_1 = arith.constant 0 : i32
    return %c0_i32, %c0_i32_0 : i32, i32
  }
  func.func @transform_4(%arg0: i32) -> (i32, i32) {
    %c0_i32 = arith.constant 0 : i32
    %c0_i32_0 = arith.constant 0 : i32
    %c0_i32_1 = arith.constant 0 : i32
    return %c0_i32, %c0_i32_0 : i32, i32
  }
  func.func @transform_5(%arg0: i32) -> (i32, i32) {
    %c0_i32 = arith.constant 0 : i32
    %c0_i32_0 = arith.constant 0 : i32
    %c0_i32_1 = arith.constant 0 : i32
    return %c0_i32, %c0_i32_0 : i32, i32
  }
  func.func @transform_6(%arg0: i32) -> (i32, i32) {
    %c0_i32 = arith.constant 0 : i32
    %c0_i32_0 = arith.constant 0 : i32
    %c0_i32_1 = arith.constant 0 : i32
    return %c0_i32, %c0_i32_0 : i32, i32
  }
  func.func @transform_7(%arg0: i32) -> (i32, i32) {
    %c0_i32 = arith.constant 0 : i32
    %c0_i32_0 = arith.constant 0 : i32
    %c0_i32_1 = arith.constant 0 : i32
    return %c0_i32, %c0_i32_0 : i32, i32
  }
  func.func @transform_8(%arg0: i32) -> (i32, i32) {
    %c0_i32 = arith.constant 0 : i32
    %c0_i32_0 = arith.constant 0 : i32
    %c0_i32_1 = arith.constant 0 : i32
    return %c0_i32, %c0_i32_0 : i32, i32
  }
  func.func @transform_9(%arg0: i32) -> (i32, i32) {
    %c0_i32 = arith.constant 0 : i32
    %c0_i32_0 = arith.constant 0 : i32
    %c0_i32_1 = arith.constant 0 : i32
    return %c0_i32, %c0_i32_0 : i32, i32
  }
  func.func @transform_10(%arg0: i32) -> (i32, i32) {
    %c0_i32 = arith.constant 0 : i32
    %c0_i32_0 = arith.constant 0 : i32
    %c0_i32_1 = arith.constant 0 : i32
    return %c0_i32, %c0_i32_0 : i32, i32
  }
  func.func @transform_11(%arg0: i32) -> (i32, i32) {
    %c0_i32 = arith.constant 0 : i32
    %c0_i32_0 = arith.constant 0 : i32
    %c0_i32_1 = arith.constant 0 : i32
    return %c0_i32, %c0_i32_0 : i32, i32
  }
  func.func @transform_12(%arg0: i32) -> (i32, i32) {
    %c0_i32 = arith.constant 0 : i32
    %c0_i32_0 = arith.constant 0 : i32
    %c0_i32_1 = arith.constant 0 : i32
    return %c0_i32, %c0_i32_0 : i32, i32
  }
  func.func @transform_13(%arg0: i32) -> (i32, i32) {
    %c0_i32 = arith.constant 0 : i32
    %c0_i32_0 = arith.constant 0 : i32
    %c0_i32_1 = arith.constant 0 : i32
    return %c0_i32, %c0_i32_0 : i32, i32
  }
  func.func @transform_14(%arg0: i32) -> (i32, i32) {
    %c0_i32 = arith.constant 0 : i32
    %c0_i32_0 = arith.constant 0 : i32
    %c0_i32_1 = arith.constant 0 : i32
    return %c0_i32, %c0_i32_0 : i32, i32
  }
  func.func @transform_15(%arg0: i32) -> (i32, i32) {
    %c0_i32 = arith.constant 0 : i32
    %c0_i32_0 = arith.constant 0 : i32
    %c0_i32_1 = arith.constant 0 : i32
    return %c0_i32, %c0_i32_0 : i32, i32
  }
  func.func @transform_16(%arg0: i32) -> (i32, i32) {
    %c0_i32 = arith.constant 0 : i32
    %c0_i32_0 = arith.constant 0 : i32
    %c0_i32_1 = arith.constant 0 : i32
    return %c0_i32, %c0_i32_0 : i32, i32
  }
  func.func @transform_17(%arg0: i32) -> (i32, i32, i32) {
    %c0_i32 = arith.constant 0 : i32
    %c0_i32_0 = arith.constant 0 : i32
    %c0_i32_1 = arith.constant 0 : i32
    return %arg0, %c0_i32, %c0_i32_0 : i32, i32, i32
  }
}

</mosaic_0001>

<bundles_post_ra>
// kernel: tpu_custom_call.1
= control target key start
LH: loop header
LB: loop body
LE: loop exit
PB: predicated region body
PF: predicated region fallthrough
CT: control target
= control target key end

     0   :  { %s8562_s0 = inlined_call_operand.hbm [shape: f32[16,8,32], index: 0, kind: input, shape index: {}]   ;;  %s8563_s1 = inlined_call_operand.vmem [shape: f32[1,32], index: 1, kind: input, shape index: {}]   ;;  %s8564_s2 = inlined_call_operand.hbm [shape: f32[1,32], index: 2, kind: input, shape index: {}]   ;;  %s8565_s3 = inlined_call_operand.vmem [shape: bf16[32,32], index: 3, kind: input, shape index: {}]   ;;  %s8566_s4 = inlined_call_operand.hbm [shape: f32[1,32], index: 4, kind: input, shape index: {}]   ;;  %s8567_s5 = inlined_call_operand.vmem [shape: bf16[32,32], index: 5, kind: input, shape index: {}]   ;;  %s8568_s6 = inlined_call_operand.hbm [shape: f32[1,32], index: 6, kind: input, shape index: {}]   ;;  %s8569_s7 = inlined_call_operand.vmem [shape: bf16[32,32], index: 7, kind: input, shape index: {}]   ;;  %s8570_s8 = inlined_call_operand.hbm [shape: f32[1,32], index: 8, kind: input, shape index: {}]   ;;  %s8571_s9 = inlined_call_operand.vmem [shape: bf16[32,32], index: 9, kind: input, shape index: {}]   ;;  %s8572_s10 = inlined_call_operand.hbm [shape: f32[1,32], index: 10, kind: input, shape index: {}]   ;;  %s8573_s11 = inlined_call_operand.hbm [shape: f32[1,32], index: 11, kind: input, shape index: {}]   ;;  %s8574_s12 = inlined_call_operand.hbm [shape: f32[1,32], index: 12, kind: input, shape index: {}]   ;;  %s8575_s13 = inlined_call_operand.vmem [shape: bf16[32,64], index: 13, kind: input, shape index: {}]   ;;  %s8576_s14 = inlined_call_operand.vmem [shape: f32[1,64], index: 14, kind: input, shape index: {}]   ;;  %s8577_s15 = inlined_call_operand.vmem [shape: bf16[64,32], index: 15, kind: input, shape index: {}]   ;;  %s8578_s16 = inlined_call_operand.vmem [shape: f32[1,32], index: 16, kind: input, shape index: {}]   ;;  %s8579_s17 = inlined_call_operand.hbm [shape: f32[16,8,32], index: 17, kind: output, shape index: {}]  }
   0x1   :  { %8590 = sst [smem:[#allocation23_spill]] %s8562_s0 }
   0x2   :  { %8591 = sst [smem:[#allocation24_spill]] %s8563_s1 }
   0x3   :  { %8592 = sst [smem:[#allocation25_spill]] %s8564_s2 }
   0x4   :  { %8593 = sst [smem:[#allocation26_spill]] %s8565_s3 }
   0x5   :  { %8594 = sst [smem:[#allocation27_spill]] %s8566_s4 }
   0x6   :  { %8595 = sst [smem:[#allocation28_spill]] %s8571_s9 }
   0x7   :  { %8596 = sst [smem:[#allocation29_spill]] %s8575_s13 }
   0x8   :  { %8597 = sst [smem:[#allocation30_spill]] %s8576_s14 }
   0x9   :  { %8598 = sst [smem:[#allocation31_spill]] %s8577_s15 }
   0xa   :  { %8599 = sst [smem:[#allocation32_spill]] %s8578_s16 }
   0xb   :  { %8600 = sst [smem:[#allocation33_spill]] %s8579_s17 }
   0xc   :  { %22 = vsyncpa [#allocation3], 0 }
   0xd   :  { %24 = vsyncpa [#allocation3 + $0x1], 0 }
   0xe   :  { %25 = vsyncpa [#allocation6], 0 }
   0xf   :  { %26 = vsyncpa [#allocation9], 0 }
  0x10   :  { %27 = vsyncpa [#allocation12], 0 }
  0x11   :  { %28 = vsyncpa [#allocation15], 0 }
  0x12   :  { %29 = vsyncpa [#allocation4], 0 }
  0x13   :  { %31 = vsyncpa [#allocation4 + $0x1], 0  ;;  %s6969_s24 = smov 0   ;;  %s6971_s25 = smov 0  }
  0x14   :  { %s6973_s26 = smov 0   ;;  %s6975_s27 = smov 0  }
  0x15 LB: > { %s6859_s28 = smov [#allocation5]   ;;  %s6990_s0 = sadd.s32 4294967295, %s6857_s27   ;;  %s6857_s27 = sphi %s6975_s27, %s8640_s27   ;;  %s6853_s26 = sphi %s6973_s26, %s8639_s26   ;;  %s6849_s25 = sphi %s6971_s25, %s8638_s25   ;;  %s6845_s24 = sphi %s6969_s24, %s8637_s24  }
  0x16   : > { %s446_s29 = sshll.u32 %s6859_s28, 4  ;;  %p5408_p0 = scmp.ge.s32.totalorder %s6857_s27, 1  ;;  %s6995_s29 = int_to_ptr.vmem [resolvable:$true] %s446_s29 }
  0x17   : > { %p8585_p1 = scmp.eq.s32.totalorder %s6990_s0, 0  ;;  %p430_p2 = scmp.lt.s32.totalorder %s6857_s27, 3 }
  0x18   : > { %s6860_s18 = smov [#allocation8]   ;;  %s6861_s1 = smov [#allocation11]  }
  0x19   : > { %p6997_p3 = pnand %p5408_p0, %p430_p2  ;;  %s474_s19 = sshll.u32 %s6860_s18, 4  ;;  %s7004_s19 = int_to_ptr.vmem [resolvable:$true] %s474_s19 }
  0x1a   : > { %s502_s20 = sshll.u32 %s6861_s1, 4  ;;  %s6862_s22 = smov [#allocation7]   ;;  %s7012_s20 = int_to_ptr.vmem [resolvable:$true] %s502_s20 }
  0x1b   : > { %s8601_s30 = scalar_select %p6997_p3, 1, 0 }
  0x1c   : > { %p6211_p5 = pneg %p6997_p3  ;;  %s7014_s23 = sshll.u32 %s6862_s22, 4  ;;  %s461_s23 = int_to_ptr.vmem [resolvable:$true] %s7014_s23 }
  0x1d   : > { %s8603_s2 = sld [smem:[#allocation25_spill]] }
  0x1e   : > { %p7008_p6 = pnand %p6211_p5, %p8585_p1 }
  0x20   : > { %p7024_p8 = pneg %p7008_p6 }
  0x23   : > { %s6549_s16 = scalar_lea.hbm %s8603_s2, 16 }
  0x24   : > { %p6550_p7 = scmp.ne.s32.totalorder %s8603_s2, %s6549_s16  ;;  %p6556_p11 = scmp.lt.u32.totalorder %s6549_s16, %s8603_s2 }
  0x26   : > { %p6552_p9 = pnand %p7024_p8, %p6550_p7 }
  0x28   : > { %p6553_p10 = pneg %p6552_p9 }
  0x2a   : > { %p6558_p12 = pnand %p6556_p11, %p6553_p10 }
  0x2c   : > { %6561 = shalt.err (!%p6558_p12)
}
  0x2d   : > { %s6562_s14 = scalar_lea.vmem %s6995_s29, 16  ;;  %s6569_s17 = scalar_lea.vmem %s6995_s29, 32 }
  0x2e   : > { %p6563_p13 = scmp.ne.s32.totalorder %s6995_s29, %s6562_s14  ;;  %p6570_p5 = scmp.lt.s32.totalorder %s6995_s29, %s6995_s29 }
  0x2f   : > { %p6571_p7 = scmp.lt.s32.totalorder %s6569_s17, %s6562_s14 }
  0x30   : > { %p6565_p0 = pnand %p6563_p13, %p7024_p8 }
  0x31   : > { %p6572_p9 = por %p6571_p7, %p6570_p5 }
  0x32   : > { %p6566_p2 = pneg %p6565_p0 }
  0x34   : > { %p6573_p4 = pnand %p6572_p9, %p6566_p2 }
  0x36   : > { %6576 = shalt.err (!%p6573_p4)
}
  0x37   : > { %6214 = dma.hbm_to_vmem [thread:$0]  (!%p7008_p6), %s8603_s2, 16, %s6995_s29, [#allocation6]  }
  0x38   : > { %s6577_s22 = scalar_lea.hbm %s8568_s6, 16 }
  0x39   : > { %p6578_p10 = scmp.ne.s32.totalorder %s8568_s6, %s6577_s22  ;;  %p6584_p4 = scmp.lt.u32.totalorder %s6577_s22, %s8568_s6 }
  0x3b   : > { %p6580_p11 = pnand %p6578_p10, %p7024_p8 }
  0x3d   : > { %p6581_p12 = pneg %p6580_p11 }
  0x3f   : > { %p6586_p13 = pnand %p6584_p4, %p6581_p12 }
  0x41   : > { %6589 = shalt.err (!%p6586_p13)
}
  0x42   : > { %s6590_s29 = scalar_lea.vmem %s7004_s19, 16  ;;  %s6597_s9 = scalar_lea.vmem %s7004_s19, 32 }
  0x43   : > { %p6591_p0 = scmp.ne.s32.totalorder %s7004_s19, %s6590_s29  ;;  %p6598_p7 = scmp.lt.s32.totalorder %s7004_s19, %s7004_s19 }
  0x44   : > { %p6599_p9 = scmp.lt.s32.totalorder %s6597_s9, %s6590_s29 }
  0x45   : > { %p6593_p2 = pnand %p6591_p0, %p7024_p8 }
  0x46   : > { %p6600_p10 = por %p6599_p9, %p6598_p7 }
  0x47   : > { %p6594_p5 = pneg %p6593_p2 }
  0x49   : > { %p6601_p11 = pnand %p6600_p10, %p6594_p5 }
  0x4b   : > { %6604 = shalt.err (!%p6601_p11)
}
  0x4c   : > { %6220 = dma.hbm_to_vmem [thread:$0]  (!%p7008_p6), %s8568_s6, 16, %s7004_s19, [#allocation9]  }
  0x4d   : > { %s6605_s18 = scalar_lea.hbm %s8572_s10, 16 }
  0x4e   : > { %p6606_p12 = scmp.ne.s32.totalorder %s8572_s10, %s6605_s18  ;;  %p6612_p0 = scmp.lt.u32.totalorder %s6605_s18, %s8572_s10 }
  0x50   : > { %p6608_p4 = pnand %p6606_p12, %p7024_p8 }
  0x52   : > { %p6609_p13 = pneg %p6608_p4 }
  0x54   : > { %p6614_p2 = pnand %p6612_p0, %p6609_p13 }
  0x56   : > { %6617 = shalt.err (!%p6614_p2)
}
  0x57   : > { %s6618_s19 = scalar_lea.vmem %s7012_s20, 16  ;;  %s6625_s9 = scalar_lea.vmem %s7012_s20, 32 }
  0x58   : > { %p6619_p5 = scmp.ne.s32.totalorder %s7012_s20, %s6618_s19  ;;  %p6626_p10 = scmp.lt.s32.totalorder %s7012_s20, %s7012_s20 }
  0x59   : > { %p6627_p11 = scmp.lt.s32.totalorder %s6625_s9, %s6618_s19 }
  0x5a   : > { %p6621_p7 = pnand %p6619_p5, %p7024_p8 }
  0x5b   : > { %p6628_p12 = por %p6627_p11, %p6626_p10 }
  0x5c   : > { %p6622_p9 = pneg %p6621_p7 }
  0x5e   : > { %p6629_p4 = pnand %p6628_p12, %p6622_p9 }
  0x60   : > { %6632 = shalt.err (!%p6629_p4)
}
  0x61   : > { %6226 = dma.hbm_to_vmem [thread:$0]  (!%p7008_p6), %s8572_s10, 16, %s7012_s20, [#allocation12]  }
  0x62   : > { %s6863_s16 = smov [#allocation10]   ;;  %s8605_s4 = sld [smem:[#allocation27_spill]] }
  0x63   : > { %s488_s28 = sshll.u32 %s6863_s16, 4  ;;  %s489_s28 = int_to_ptr.vmem [resolvable:$true] %s488_s28 }
  0x68   : > { %s6633_s14 = scalar_lea.hbm %s8605_s4, 16 }
  0x69   : > { %p6634_p13 = scmp.ne.s32.totalorder %s8605_s4, %s6633_s14  ;;  %p6640_p5 = scmp.lt.u32.totalorder %s6633_s14, %s8605_s4 }
  0x6b   : > { %p6636_p0 = pnand %p6634_p13, %p7024_p8 }
  0x6d   : > { %p6637_p2 = pneg %p6636_p0 }
  0x6f   : > { %p6642_p7 = pnand %p6640_p5, %p6637_p2 }
  0x71   : > { %6645 = shalt.err (!%p6642_p7)
}
  0x72   : > { %s6646_s20 = scalar_lea.vmem %s461_s23, 16  ;;  %s6653_s13 = scalar_lea.vmem %s461_s23, 32 }
  0x73   : > { %p6647_p9 = scmp.ne.s32.totalorder %s461_s23, %s6646_s20  ;;  %p6654_p12 = scmp.lt.s32.totalorder %s461_s23, %s461_s23 }
  0x74   : > { %p6655_p4 = scmp.lt.s32.totalorder %s6653_s13, %s6646_s20 }
  0x75   : > { %p6649_p10 = pnand %p6647_p9, %p7024_p8 }
  0x76   : > { %p6656_p1 = por %p6655_p4, %p6654_p12 }
  0x77   : > { %p6650_p11 = pneg %p6649_p10 }
  0x79   : > { %p6657_p3 = pnand %p6656_p1, %p6650_p11 }
  0x7b   : > { %6660 = shalt.err (!%p6657_p3)
}
  0x7c   : > { %6217 = dma.hbm_to_vmem [thread:$0]  (!%p7008_p6), %s8605_s4, 16, %s461_s23, [#allocation6]  }
  0x7d   : > { %s6661_s14 = scalar_lea.hbm %s8570_s8, 16 }
  0x7e   : > { %p6662_p13 = scmp.ne.s32.totalorder %s8570_s8, %s6661_s14  ;;  %p6668_p3 = scmp.lt.u32.totalorder %s6661_s14, %s8570_s8 }
  0x80   : > { %p6664_p0 = pnand %p6662_p13, %p7024_p8 }
  0x82   : > { %p6665_p1 = pneg %p6664_p0 }
  0x84   : > { %p6670_p2 = pnand %p6668_p3, %p6665_p1 }
  0x86   : > { %6673 = shalt.err (!%p6670_p2)
}
  0x87   : > { %s6674_s20 = scalar_lea.vmem %s489_s28, 16  ;;  %s6681_s23 = scalar_lea.vmem %s489_s28, 32 }
  0x88   : > { %p6675_p5 = scmp.ne.s32.totalorder %s489_s28, %s6674_s20  ;;  %p6682_p10 = scmp.lt.s32.totalorder %s489_s28, %s489_s28 }
  0x89   : > { %p6683_p11 = scmp.lt.s32.totalorder %s6681_s23, %s6674_s20 }
  0x8a   : > { %p6677_p7 = pnand %p6675_p5, %p7024_p8 }
  0x8b   : > { %p6684_p12 = por %p6683_p11, %p6682_p10 }
  0x8c   : > { %p6678_p9 = pneg %p6677_p7 }
  0x8e   : > { %p6685_p4 = pnand %p6684_p12, %p6678_p9 }
  0x90   : > { %6688 = shalt.err (!%p6685_p4)
}
  0x91   : > { %6223 = dma.hbm_to_vmem [thread:$0]  (!%p7008_p6), %s8570_s8, 16, %s489_s28, [#allocation9]  }
  0x92   : > { %s6864_s16 = smov [#allocation13]   ;;  %s6865_s22 = smov [#allocation14]  }
  0x93   : > { %s513_s18 = sshll.u32 %s6864_s16, 4  ;;  %s524_s14 = sshll.u32 %s6865_s22, 4  ;;  %s514_s18 = int_to_ptr.vmem [resolvable:$true] %s513_s18  ;;  %s525_s14 = int_to_ptr.vmem [resolvable:$true] %s524_s14 }
  0x94   : > { %s6689_s19 = scalar_lea.hbm %s8573_s11, 16 }
  0x95   : > { %p6690_p13 = scmp.ne.s32.totalorder %s8573_s11, %s6689_s19  ;;  %p6696_p3 = scmp.lt.u32.totalorder %s6689_s19, %s8573_s11 }
  0x97   : > { %p6692_p0 = pnand %p6690_p13, %p7024_p8 }
  0x99   : > { %p6693_p1 = pneg %p6692_p0 }
  0x9b   : > { %p6698_p2 = pnand %p6696_p3, %p6693_p1 }
  0x9d   : > { %6701 = shalt.err (!%p6698_p2)
}
  0x9e   : > { %s6702_s28 = scalar_lea.vmem %s514_s18, 16  ;;  %s6709_s15 = scalar_lea.vmem %s514_s18, 32 }
  0x9f   : > { %p6703_p5 = scmp.ne.s32.totalorder %s514_s18, %s6702_s28  ;;  %p6710_p10 = scmp.lt.s32.totalorder %s514_s18, %s514_s18 }
  0xa0   : > { %p6711_p11 = scmp.lt.s32.totalorder %s6709_s15, %s6702_s28 }
  0xa1   : > { %p6705_p7 = pnand %p6703_p5, %p7024_p8 }
  0xa2   : > { %p6712_p12 = por %p6711_p11, %p6710_p10 }
  0xa3   : > { %p6706_p9 = pneg %p6705_p7 }
  0xa5   : > { %p6713_p4 = pnand %p6712_p12, %p6706_p9 }
  0xa7   : > { %6716 = shalt.err (!%p6713_p4)
}
  0xa8   : > { %6229 = dma.hbm_to_vmem [thread:$0]  (!%p7008_p6), %s8573_s11, 16, %s514_s18, [#allocation12]  }
  0xa9   : > { %s6717_s19 = scalar_lea.hbm %s8574_s12, 16 }
  0xaa   : > { %p6718_p13 = scmp.ne.s32.totalorder %s8574_s12, %s6717_s19  ;;  %p6724_p3 = scmp.lt.u32.totalorder %s6717_s19, %s8574_s12 }
  0xac   : > { %p6720_p0 = pnand %p6718_p13, %p7024_p8 }
  0xae   : > { %p6721_p1 = pneg %p6720_p0 }
  0xb0   : > { %p6726_p2 = pnand %p6724_p3, %p6721_p1 }
  0xb2   : > { %6729 = shalt.err (!%p6726_p2)
}
  0xb3   : > { %s6730_s28 = scalar_lea.vmem %s525_s14, 16  ;;  %s6737_s18 = scalar_lea.vmem %s525_s14, 32 }
  0xb4   : > { %p6731_p5 = scmp.ne.s32.totalorder %s525_s14, %s6730_s28  ;;  %p6738_p10 = scmp.lt.s32.totalorder %s525_s14, %s525_s14 }
  0xb5   : > { %p6739_p11 = scmp.lt.s32.totalorder %s6737_s18, %s6730_s28 }
  0xb6   : > { %p6733_p7 = pnand %p6731_p5, %p7024_p8 }
  0xb7   : > { %p6740_p12 = por %p6739_p11, %p6738_p10 }
  0xb8   : > { %p6734_p9 = pneg %p6733_p7 }
  0xba   : > { %p6741_p4 = pnand %p6740_p12, %p6734_p9 }
  0xbc   : > { %6744 = shalt.err (!%p6741_p4)
}
  0xbd   : > { %6232 = dma.hbm_to_vmem [thread:$0]  (!%p7008_p6), %s8574_s12, 16, %s525_s14, [#allocation15]  }
  0xbe   : > { %s5407_s1 = sadd.s32 4294967294, %s6857_s27   ;;  %s7169_s21 = sadd.s32 1, %s6857_s27  }
  0xbf   : > { %s44_s22 = sadd.s32 1, %s6853_s26  ;;  %s41_s17 = ssub.s32 %s6857_s27, %s7169_s21 }
  0xc0   : > { %p51_p8 = scmp.ne.s32.totalorder %s6853_s26, %s6849_s25  ;;  %p42_p13 = scmp.eq.s32.totalorder %s41_s17, 0 }
  0xc1   : > { %p52_p0 = scmp.eq.s32.totalorder %s6857_s27, 0  ;;  %p57_p1 = scmp.ne.s32.totalorder %s6849_s25, %s6845_s24 }
  0xc2   : > { %p417_p3 = scmp.eq.s32.totalorder %s6990_s0, 1  ;;  %p8606_p5 = scmp.eq.s32.totalorder %s6990_s0, 0 }
  0xc3   : > { %s7181_s29 = scalar_select %p42_p13, %s6853_s26, %s44_s22  }
  0xc4   : > { %p53_p2 = por %p52_p0, %p51_p8  ;;  %p7185_p7 = por %p8606_p5, %p57_p1 }
  0xc5   : > { %p7189_p6 = por %p417_p3, %p51_p8  ;;  %p423_p9 = scmp.eq.s32.totalorder %s5407_s1, 1 }
  0xc6   : > { %p6248_p10 = scmp.lt.s32.totalorder %s6857_s27, 2  ;;  %s547_s9 = sand.u32 1, %s6853_s26  }
  0xc7   : > { %s8608_s14 = scalar_select %p7189_p6, 1, 0 }
  0xc8   : > { %p7195_p11 = por %p423_p9, %p57_p1  ;;  %s5417_s23 = sshll.u32 %s547_s9, 6 }
  0xc9   : > { %s5547_s13 = sshll.u32 %s6857_s27, 10  ;;  %s8610_s15 = sld [smem:[#allocation23_spill]] }
  0xca   : > { %s8609_s20 = scalar_select %p7195_p11, 1, 0 }
  0xcb   : > { %s551_s22 = scalar_lea.vmem [#allocation2], %s5417_s23  ;;  %p7205_p12 = pnand %p6248_p10, %p53_p2 }
  0xcc   : > { %s558_s17 = sshll.u32 %s551_s22, 4  ;;  %s7211_s2 = scalar_lea.sflag [#allocation3], %s547_s9  ;;  %s7209_s17 = int_to_ptr.vmem [resolvable:$true] %s558_s17 }
  0xcd   : > { %p6747_p8 = pneg %p7205_p12 }
  0xcf   : > { %s7203_s16 = scalar_lea.hbm %s8610_s15, %s5547_s13  ;;  %s6750_s28 = scalar_lea.hbm %s8610_s15, 2048 }
  0xd0   : > { %s6745_s4 = scalar_lea.hbm %s7203_s16, 1024  ;;  %p6751_p1 = scmp.lt.u32.totalorder %s7203_s16, %s8610_s15 }
  0xd1   : > { %p6746_p4 = scmp.ne.s32.totalorder %s7203_s16, %s6745_s4  ;;  %p6752_p3 = scmp.lt.u32.totalorder %s6750_s28, %s6745_s4 }
  0xd2   : > { %p6754_p5 = scmp.lt.u32.totalorder %s6745_s4, %s7203_s16 }
  0xd3   : > { %p6748_p13 = pnand %p6747_p8, %p6746_p4  ;;  %p6753_p2 = por %p6752_p3, %p6751_p1 }
  0xd5   : > { %p6749_p0 = pneg %p6748_p13  ;;  %p6755_p9 = por %p6754_p5, %p6753_p2 }
  0xd7   : > { %p6756_p10 = pnand %p6755_p9, %p6749_p0 }
  0xd9   : > { %6759 = shalt.err (!%p6756_p10)
}
  0xda   : > { %s6760_s9 = scalar_lea.vmem %s7209_s17, 1024  ;;  %s6866_s23 = smov [#allocation2]  }
  0xdb   : > { %p6761_p4 = scmp.ne.s32.totalorder %s7209_s17, %s6760_s9  ;;  %s6765_s13 = sshll.u32 %s6866_s23, 4  ;;  %s6766_s13 = int_to_ptr.vmem [resolvable:$false] %s6765_s13 }
  0xdc   : > { %s6767_s18 = scalar_lea.vmem %s6766_s13, 2048  ;;  %p6768_p6 = scmp.lt.s32.totalorder %s7209_s17, %s6766_s13 }
  0xdd   : > { %p6763_p13 = pnand %p6761_p4, %p6747_p8  ;;  %p6769_p1 = scmp.lt.s32.totalorder %s6767_s18, %s6760_s9 }
  0xdf   : > { %p6764_p11 = pneg %p6763_p13  ;;  %p6770_p3 = por %p6769_p1, %p6768_p6 }
  0xe1   : > { %p6771_p2 = pnand %p6770_p3, %p6764_p11 }
  0xe3   : > { %6774 = shalt.err (!%p6771_p2)
}
  0xe4   : > { %s6867_s4 = smov 128   ;;  %s6868_s28 = smov 8  }
  0xe5   : > { %6236 = dma.hbm_to_vmem [thread:$0]  (!%p7205_p12), %s7203_s16, 1024, %s7209_s17, %s7211_s2, %s6867_s4, %s6867_s4, %s6868_s28  }
  0xe6   : > { %p8612_p8 = scmp.ne.s32.totalorder %s8601_s30, 0 }
  0xe7   : > { %s7242_s22 = sand.u32 (!%p8612_p8), 1, %s6849_s25  }
  0xe8   : > { %570 = sbr.rel (%p8612_p8) target bundleno = 4707 (0x1263), region = 88  ;;  %s5421_s9 = sshll.u32 (!%p8612_p8), %s7242_s22, 6 }
  0xe9   : > { %s573_s23 = scalar_lea.sflag (!%p8612_p8), [#allocation3], %s7242_s22  ;;  %s7248_s13 = scalar_lea.vmem (!%p8612_p8), [#allocation2], %s5421_s9 }
  0xef   : > { %6820 = dma.done.wait (%p7185_p7), %s573_s23, 1024  }
  0xf0   : > { %6822 = vsyncadd (%p7185_p7), %s573_s23, 4294966272  ;;  %p8613_p6 = scmp.eq.s32.totalorder %s6990_s0, 0 }
  0xf2   : > { %6824 = dma.done.wait (%p8613_p6), [#allocation6], 32   ;;  %p8614_p11 = pmov %p8613_p6 }
  0xf3   : > { %p8615_p12 = pmov %p8613_p6 }
  0xf4   : > { %6826 = vsyncadd (%p8614_p11), [#allocation6], 4294967264 }
  0xf5   : > { %6828 = dma.done.wait (%p8615_p12), [#allocation9], 32   ;;  %p8616_p0 = pmov %p8613_p6 }
  0xf7   : > { %6830 = vsyncadd (%p8616_p0), [#allocation9], 4294967264  ;;  %p8617_p5 = pmov %p8616_p0 }
  0xf8   : > { %p8618_p9 = pmov %p8616_p0 }
  0xf9   : > { %6832 = dma.done.wait (%p8617_p5), [#allocation12], 32  }
  0xfa   : > { %6834 = vsyncadd (%p8618_p9), [#allocation12], 4294967264  ;;  %p8619_p7 = pmov %p8616_p0 }
  0xfb   : > { %p8620_p10 = pmov %p8616_p0 }
  0xfc   : > { %6836 = dma.done.wait (%p8619_p7), [#allocation15], 16  }
  0xfd   : > { %6838 = vsyncadd (%p8620_p10), [#allocation15], 4294967280  ;;  %vm668_vm0 = vcmask 261120   ;;  %v662_v0 = vld [vmem:[%s7248_s13 + $0x20] sm:$0xff]  ;;  %v664_v1 = vld [vmem:[%s7248_s13 + $0x30] sm:$0xff]  ;;  %s8621_s3 = sld [smem:[#allocation26_spill]] }
  0xfe   : > { %v663_v2 = vld [vmem:[%s7248_s13 + $0x28] sm:$0xff]  ;;  %v681_v3 = vsel %vm668_vm0, %v662_v0, 0.0  ;;  %v687_v4 = vsel %vm668_vm0, %v664_v1, 0.0  ;;  %v665_v5 = vld [vmem:[%s7248_s13 + $0x38] sm:$0xff]  ;;  %v658_v6 = vld [vmem:[%s7248_s13] sm:$0xff]  ;;  %s8622_s2 = sld [smem:[#allocation24_spill]] }
  0xff   : > { %v659_v7 = vld [vmem:[%s7248_s13 + $0x8] sm:$0xff]  ;;  %682 = vadd.xlane.f32.xlu0 %v681_v3  ;;  %688 = vadd.xlane.f32.xlu1 %v687_v4  ;;  %v684_v8 = vsel %vm668_vm0, %v663_v2, 0.0  ;;  %v690_v9 = vsel %vm668_vm0, %v665_v5, 0.0  ;;  %v669_v10 = vsel %vm668_vm0, %v658_v6, 0.0  ;;  %v660_v12 = vld [vmem:[%s7248_s13 + $0x10] sm:$0xff]  ;;  %v661_v13 = vld [vmem:[%s7248_s13 + $0x18] sm:$0xff] }
 0x100   : > { %v672_v11 = vsel %vm668_vm0, %v659_v7, 0.0  ;;  %v675_v14 = vsel %vm668_vm0, %v660_v12, 0.0  ;;  %v678_v15 = vsel %vm668_vm0, %v661_v13, 0.0  ;;  %v7335_v58 = vld [vmem:[%s8567_s5] sm:$0xff]   ;;  %vm6870_vm1 = vmmov 0   ;;  %s6871_s1 = smov 120  }
 0x101   : > { %v7341_v59 = vld [vmem:[%s8569_s7] sm:$0xff]   ;;  %vm1106_vm2 = vcmask 64512   ;;  %vm1582_vm3 = vcmask 1043456   ;;  %s6872_s18 = smov 112   ;;  %s6873_s4 = smov 104   ;;  %vm4740_vm4 = vcmask 130048  }
 0x102   : > { %s8588_s28 = smov 8   ;;  %s6875_s23 = smov 16   ;;  %vm4749_vm5 = vcmask 195584   ;;  %vm5159_vm6 = vcmask 523264  }
 0x103   : > { %685 = vadd.xlane.f32.xlu0 %v684_v8  ;;  %691 = vadd.xlane.f32.xlu1 %v690_v9  ;;  %v6367_v56 = vld [vmem:[%s8621_s3] sm:$0xff]   ;;  %v6368_v57 = vld [vmem:[%s8621_s3 + $0x8] sm:$0xff]   ;;  %s8626_s19 = sld [smem:[#allocation28_spill]]  ;;  %s6876_s16 = smov 24  }
 0x104   : > { %6175 = vmatprep.subr.bf16.mxu1 %v6367_v56  ;;  %5715 = vmatprep.subr.bf16.mxu0 %v6367_v56  ;;  %s8628_s17 = sld [smem:[#allocation31_spill]]  ;;  %p8632_p13 = scmp.ne.s32.totalorder %s8608_s14, 0 }
 0x105   : > { %6177 = vmatpush3.bf16.msra.mxu1 %v6367_v56  ;;  %5716 = vmatpush3.bf16.msra.mxu0 %v6367_v56 }
 0x106   : > { %6176 = vmatprep.subr.bf16.mxu1 %v6368_v57  ;;  %5717 = vmatprep.subr.bf16.mxu0 %v6368_v57 }
 0x107   : > { %670 = vadd.xlane.f32.xlu0 %v669_v10  ;;  %673 = vadd.xlane.f32.xlu1 %v672_v11 }
 0x109   : > { %6178 = vmatpush3.bf16.msra.mxu1 %v6368_v57  ;;  %5718 = vmatpush3.bf16.msra.mxu0 %v6368_v57 }
 0x10a   : > { %5727 = vmatprep.subr.bf16.mxu1 %v7335_v58  ;;  %5739 = vmatprep.subr.bf16.mxu0 %v7341_v59 }
 0x10b   : > { %676 = vadd.xlane.f32.xlu0 %v675_v14  ;;  %679 = vadd.xlane.f32.xlu1 %v678_v15 }
 0x18c   : > { %v683_v16 = vpop.xlane.xlu0 %682  ;;  %v689_v17 = vpop.xlane.xlu1 %688 }
 0x18d   : > { %v698_v18 = vmul.f32 0.03125, %v683_v16  ;;  %v700_v19 = vmul.f32 0.03125, %v689_v17 }
 0x18f   : > { %v7286_v20 = vsub.f32 %v662_v0, %v698_v18  ;;  %v7288_v21 = vsub.f32 %v664_v1, %v700_v19 }
 0x190   : > { %v686_v22 = vpop.xlane.xlu0 %685  ;;  %v692_v23 = vpop.xlane.xlu1 %691 }
 0x191   : > { %v699_v24 = vmul.f32 0.03125, %v686_v22  ;;  %v701_v25 = vmul.f32 0.03125, %v692_v23  ;;  %v714_v26 = vmul.f32 %v7286_v20, %v7286_v20  ;;  %v716_v27 = vmul.f32 %v7288_v21, %v7288_v21  ;;  %v5430_v23 = vld [vmem:[%s8622_s2] ss:$0 sm:$0xff] }
 0x193   : > { %v7294_v28 = vsub.f32 %v663_v2, %v699_v24  ;;  %v7296_v29 = vsub.f32 %v665_v5, %v701_v25  ;;  %v730_v30 = vsel %vm668_vm0, %v714_v26, 0.0  ;;  %v736_v33 = vsel %vm668_vm0, %v716_v27, 0.0 }
 0x194   : > { %731 = vadd.xlane.f32.xlu0 %v730_v30  ;;  %v671_v31 = vpop.xlane.xlu0 %670  ;;  %v674_v32 = vpop.xlane.xlu1 %673 }
 0x195   : > { %v694_v34 = vmul.f32 0.03125, %v671_v31  ;;  %v715_v35 = vmul.f32 %v7294_v28, %v7294_v28  ;;  %v695_v36 = vmul.f32 0.03125, %v674_v32  ;;  %v717_v37 = vmul.f32 %v7296_v29, %v7296_v29  ;;  %v5431_v31 = vld [vmem:[#allocation5] ss:$0 sm:$0xff] }
 0x197   : > { %v7304_v38 = vsub.f32 %v658_v6, %v694_v34  ;;  %v733_v39 = vsel %vm668_vm0, %v715_v35, 0.0  ;;  %v7307_v40 = vsub.f32 %v659_v7, %v695_v36  ;;  %v739_v42 = vsel %vm668_vm0, %v717_v37, 0.0 }
 0x198   : > { %734 = vadd.xlane.f32.xlu1 %v733_v39  ;;  %737 = vadd.xlane.f32.xlu0 %v736_v33  ;;  %v677_v41 = vpop.xlane.xlu0 %676  ;;  %v680_v43 = vpop.xlane.xlu1 %679 }
 0x199   : > { %v696_v44 = vmul.f32 0.03125, %v677_v41  ;;  %v697_v45 = vmul.f32 0.03125, %v680_v43  ;;  %v710_v46 = vmul.f32 %v7304_v38, %v7304_v38  ;;  %v711_v47 = vmul.f32 %v7307_v40, %v7307_v40 }
 0x19b   : > { %v7314_v48 = vsub.f32 %v660_v12, %v696_v44  ;;  %v7316_v49 = vsub.f32 %v661_v13, %v697_v45  ;;  %v718_v50 = vsel %vm668_vm0, %v710_v46, 0.0  ;;  %v721_v51 = vsel %vm668_vm0, %v711_v47, 0.0 }
 0x19c   : > { %740 = vadd.xlane.f32.xlu1 %v739_v42  ;;  %719 = vadd.xlane.f32.xlu0 %v718_v50 }
 0x19d   : > { %v712_v52 = vmul.f32 %v7314_v48, %v7314_v48  ;;  %v713_v53 = vmul.f32 %v7316_v49, %v7316_v49 }
 0x19f   : > { %v724_v54 = vsel %vm668_vm0, %v712_v52, 0.0  ;;  %v727_v55 = vsel %vm668_vm0, %v713_v53, 0.0 }
 0x1a0   : > { %722 = vadd.xlane.f32.xlu1 %v721_v51  ;;  %725 = vadd.xlane.f32.xlu0 %v724_v54 }
 0x1a4   : > { %728 = vadd.xlane.f32.xlu1 %v727_v55 }
 0x221   : > { %v732_v60 = vpop.xlane.xlu0 %731 }
 0x222   : > { %v746_v61 = vmul.f32 0.03125, %v732_v60 }
 0x224   : > { %v754_v62 = vadd.f32 1e-05, %v746_v61 }
 0x225   : > { %v735_v63 = vpop.xlane.xlu1 %734  ;;  %v738_v0 = vpop.xlane.xlu0 %737 }
 0x226   : > { %6381 = vrsqrt.f32 %v754_v62  ;;  %v747_v1 = vmul.f32 0.03125, %v735_v63  ;;  %v748_v2 = vmul.f32 0.03125, %v738_v0  ;;  %v6372_v62 = vld [vmem:[%s8569_s7 + $0x8] sm:$0xff]  }
 0x228   : > { %v755_v3 = vadd.f32 1e-05, %v747_v1  ;;  %v756_v4 = vadd.f32 1e-05, %v748_v2  ;;  %v7387_v1 = vld [vmem:[#allocation8] ss:$0 sm:$0xff] }
 0x229   : > { %v741_v5 = vpop.xlane.xlu1 %740  ;;  %v720_v6 = vpop.xlane.xlu0 %719 }
 0x22a   : > { %6383 = vrsqrt.f32 %v755_v3  ;;  %v749_v7 = vmul.f32 0.03125, %v741_v5  ;;  %v742_v8 = vmul.f32 0.03125, %v720_v6 }
 0x22b   : > { %6385 = vrsqrt.f32 %v756_v4 }
 0x22c   : > { %v757_v9 = vadd.f32 1e-05, %v749_v7  ;;  %v750_v10 = vadd.f32 1e-05, %v742_v8 }
 0x22d   : > { %v723_v11 = vpop.xlane.xlu1 %722  ;;  %v726_v12 = vpop.xlane.xlu0 %725 }
 0x22e   : > { %6387 = vrsqrt.f32 %v757_v9  ;;  %v743_v13 = vmul.f32 0.03125, %v723_v11  ;;  %v744_v14 = vmul.f32 0.03125, %v726_v12 }
 0x22f   : > { %6389 = vrsqrt.f32 %v750_v10 }
 0x230   : > { %v6382_v15 = vpop.eup %6381  ;;  %v751_v16 = vadd.f32 1e-05, %v743_v13  ;;  %v752_v17 = vadd.f32 1e-05, %v744_v14 }
 0x231   : > { %v729_v18 = vpop.xlane.xlu1 %728  ;;  %v770_v19 = vmul.f32 %v6382_v15, %v7286_v20  ;;  %v7399_v15 = vld [vmem:[#allocation7] ss:$0 sm:$0xff] }
 0x232   : > { %6391 = vrsqrt.f32 %v751_v16  ;;  %v745_v22 = vmul.f32 0.03125, %v729_v18  ;;  %v7404_v18 = vld [vmem:[#allocation10] ss:$0 sm:$0xff] }
 0x233   : > { %6393 = vrsqrt.f32 %v752_v17  ;;  %v784_v30 = vmul.f32 %v5430_v23, %v770_v19 }
 0x234   : > { %v6384_v24 = vpop.eup %6383  ;;  %v753_v25 = vadd.f32 1e-05, %v745_v22 }
 0x235   : > { %v6386_v26 = vpop.eup %6385  ;;  %v771_v27 = vmul.f32 %v6384_v24, %v7294_v28  ;;  %v798_v35 = vadd.f32 %v5431_v31, %v784_v30 }
 0x236   : > { %6395 = vrsqrt.f32 %v753_v25  ;;  %v772_v32 = vmul.f32 %v6386_v26, %v7288_v21 }
 0x237   : > { %v785_v33 = vmul.f32 %v5430_v23, %v771_v27 }
 0x238   : > { %v6388_v34 = vpop.eup %6387  ;;  %v786_v39 = vmul.f32 %v5430_v23, %v772_v32 }
 0x239   : > { %v6390_v20 = vpop.eup %6389  ;;  %v799_v36 = vadd.f32 %v5431_v31, %v785_v33  ;;  %v773_v37 = vmul.f32 %v6388_v34, %v7296_v29  ;;  %v6370_v29 = vld [vmem:[%s8567_s5 + $0x8] sm:$0xff]  }
 0x23a   : > { %v766_v41 = vmul.f32 %v6390_v20, %v7304_v38  ;;  %v800_v28 = vadd.f32 %v5431_v31, %v786_v39 }
 0x23b   : > { %v804_v42 = vpack.c.bf16 %v799_v36, %v798_v35  ;;  %v787_v43 = vmul.f32 %v5430_v23, %v773_v37 }
 0x23c   : > { %v6392_v44 = vpop.eup %6391  ;;  %v780_v47 = vmul.f32 %v5430_v23, %v766_v41 }
 0x23d   : > { %v6394_v45 = vpop.eup %6393  ;;  %5723 = vmatprep.mubr.msk.bf16.mxu1 %vm668_vm0, %v804_v42  ;;  %v801_v46 = vadd.f32 %v5431_v31, %v787_v43  ;;  %v767_v21 = vmul.f32 %v6392_v44, %v7307_v40 }
 0x23e   : > { %v768_v50 = vmul.f32 %v6394_v45, %v7314_v48  ;;  %v794_v53 = vadd.f32 %v5431_v31, %v780_v47 }
 0x23f   : > { %v805_v51 = vpack.c.bf16 %v801_v46, %v800_v28  ;;  %v781_v52 = vmul.f32 %v5430_v23, %v767_v21 }
 0x240   : > { %v6396_v38 = vpop.eup %6395  ;;  %v782_v56 = vmul.f32 %v5430_v23, %v768_v50 }
 0x241   : > { %5724 = vmatmul.mubr.msk.bf16.vlgmr.msra.gmra.mrb[0].mxu1 %vm668_vm0, %v805_v51  ;;  %v795_v54 = vadd.f32 %v5431_v31, %v781_v52  ;;  %v769_v55 = vmul.f32 %v6396_v38, %v7316_v49  ;;  %v6869_v49 = vmov 0.0  }
 0x242   : > { %5728 = vmatpush3.bf16.msra.mxu1 %v7335_v58  ;;  %v796_v48 = vadd.f32 %v5431_v31, %v782_v56 }
 0x243   : > { %v802_v40 = vpack.c.bf16 %v795_v54, %v794_v53  ;;  %5729 = vmatprep.subr.bf16.mxu1 %v6370_v29  ;;  %v783_v57 = vmul.f32 %v5430_v23, %v769_v55 }
 0x245   : > { %5719 = vmatprep.mubr.msk.bf16.mxu0 %vm668_vm0, %v802_v40  ;;  %5731 = vmatprep.mubr.msk.bf16.mxu1 %vm668_vm0, %v802_v40  ;;  %v797_v60 = vadd.f32 %v5431_v31, %v783_v57 }
 0x246   : > { %5730 = vmatpush3.bf16.msra.mxu1 %v6370_v29 }
 0x247   : > { %v803_v61 = vpack.c.bf16 %v797_v60, %v796_v48  ;;  %5751 = vmatprep.subr.bf16.mxu1 %v6869_v49 }
 0x249   : > { %5720 = vmatmul.mubr.msk.bf16.vlgmr.msra.gmra.mrb[0].mxu0 %vm668_vm0, %v803_v61  ;;  %5732 = vmatmul.mubr.msk.bf16.vlgmr.msra.gmra.mrb[4].mxu1 %vm668_vm0, %v803_v61 }
 0x24a   : > { %5735 = vmatprep.mubr.msk.bf16.mxu1 %vm668_vm0, %v804_v42  ;;  %5740 = vmatpush3.bf16.msra.mxu0 %v7341_v59 }
 0x24b   : > { %5743 = vmatprep.mubr.msk.bf16.mxu0 %vm668_vm0, %v802_v40  ;;  %5741 = vmatprep.subr.bf16.mxu0 %v6372_v62 }
 0x24e   : > { %5742 = vmatpush3.bf16.msra.mxu0 %v6372_v62 }
 0x24f   : > { %5763 = vmatprep.subr.bf16.mxu0 %v6869_v49 }
 0x251   : > { %5736 = vmatmul.mubr.msk.bf16.gmra.mrb[8].mxu1 %vm668_vm0, %v805_v51  ;;  %5744 = vmatmul.mubr.msk.bf16.vlgmr.msra.gmra.mrb[4].mxu0 %vm668_vm0, %v803_v61 }
 0x252   : > { %5747 = vmatprep.mubr.msk.bf16.mxu0 %vm668_vm0, %v804_v42  ;;  %5753 = vmatprep.mubr.msk.bf16.mxu1 %vm6870_vm1, %v6869_v49 }
 0x259   : > { %5748 = vmatmul.mubr.msk.bf16.gmra.mrb[8].mxu0 %vm668_vm0, %v805_v51 }
 0x25a   : > { %5765 = vmatprep.mubr.msk.bf16.mxu0 %vm6870_vm1, %v6869_v49 }
 0x314   : > { %v7381_v58 = vpop.f32.mrb[0].mxu1 }
 0x315   : > { %v891_v59 = vpop.f32.mrb[1].mxu1  ;;  %v900_v61 = vadd.f32 %v7381_v58, %v7399_v15 }
 0x316   : > { %v7383_v63 = vpop.f32.mrb[2].mxu1  ;;  %v892_v45 = vadd.f32 %v7399_v15, %v891_v59 }
 0x317   : > { %v7385_v0 = vpop.f32.mrb[3].mxu1 }
 0x318   : > { %v7456_v54 = vpack.c.bf16 %v892_v45, %v892_v45 }
 0x31c   : > { %v5721_v2 = vpop.f32.mrb[0].mxu0  ;;  %v5733_v3 = vpop.f32.mrb[4].mxu1 }
 0x31d   : > { %v972_v4 = vadd.f32 %v5733_v3, %v7387_v1  ;;  %v875_v5 = vpop.f32.mrb[1].mxu0  ;;  %v963_v6 = vpop.f32.mrb[5].mxu1  ;;  %v884_v19 = vadd.f32 %v5721_v2, %v7399_v15  ;;  %v7487_v3 = vpack.c.bf16 %v900_v61, %v900_v61 }
 0x31e   : > { %v964_v7 = vadd.f32 %v7387_v1, %v963_v6  ;;  %v7391_v8 = vpop.f32.mrb[2].mxu0  ;;  %v5734_v9 = vpop.f32.mrb[6].mxu1  ;;  %v876_v22 = vadd.f32 %v7399_v15, %v875_v5 }
 0x31f   : > { %v7393_v10 = vpack.c.bf16 %v972_v4, %v972_v4  ;;  %v878_v11 = vpop.f32.mrb[3].mxu0  ;;  %v966_v12 = vpop.f32.mrb[7].mxu1  ;;  %v7416_v34 = vpack.c.bf16 %v884_v19, %v884_v19  ;;  %v975_v41 = vadd.f32 %v5734_v9, %v7387_v1  ;;  %v887_v62 = vadd.f32 %v7391_v8, %v7399_v15 }
 0x320   : > { %v7395_v13 = vpack.c.bf16 %v964_v7, %v964_v7  ;;  %v967_v16 = vadd.f32 %v7387_v1, %v966_v12  ;;  %v7421_v37 = vpack.c.bf16 %v876_v22, %v876_v22  ;;  %v879_v28 = vadd.f32 %v7399_v15, %v878_v11 }
 0x321   : > { %v1203_v14 = vsel %vm1106_vm2, %v7393_v10, 0  ;;  %v7446_v50 = vpack.c.bf16 %v975_v41, %v975_v41  ;;  %v7489_v58 = vpack.c.bf16 %v887_v62, %v887_v62  ;;  %v895_v7 = vadd.f32 %v7399_v15, %v7385_v0 }
 0x322   : > { %5764 = vmatpush3.bf16.xpose.msra.mxu0 %v1203_v14  ;;  %v1111_v17 = vsel %vm1106_vm2, %v7395_v13, 0  ;;  %v7413_v30 = vpack.c.bf16 %v967_v16, %v967_v16  ;;  %v7458_v55 = vpack.c.bf16 %v879_v28, %v879_v28  ;;  %v903_v11 = vadd.f32 %v7383_v63, %v7399_v15 }
 0x323   : > { %5752 = vmatpush3.bf16.xpose.msra.mxu1 %v1111_v17  ;;  %5775 = vmatprep.subr.bf16.mxu0 %v6869_v49  ;;  %v1249_v48 = vsel %vm1106_vm2, %v7446_v50, 0  ;;  %v7510_v8 = vpack.c.bf16 %v895_v7, %v895_v7 }
 0x324   : > { %v5737_v23 = vpop.f32.mrb[8].mxu1  ;;  %v5745_v24 = vpop.f32.mrb[4].mxu0  ;;  %5757 = vmatprep.subr.bf16.mxu1 %v6869_v49  ;;  %v1157_v43 = vsel %vm1106_vm2, %v7413_v30, 0  ;;  %v7524_v14 = vpack.c.bf16 %v903_v11, %v903_v11 }
 0x325   : > { %v7411_v25 = vadd.f32 %v5745_v24, %v7404_v18  ;;  %v979_v26 = vpop.f32.mrb[9].mxu1  ;;  %v1051_v27 = vpop.f32.mrb[5].mxu0  ;;  %v988_v42 = vadd.f32 %v5737_v23, %v7387_v1 }
 0x326   : > { %v980_v31 = vadd.f32 %v7387_v1, %v979_v26  ;;  %v5738_v32 = vpop.f32.mrb[10].mxu1  ;;  %v5746_v33 = vpop.f32.mrb[6].mxu0  ;;  %v1052_v40 = vadd.f32 %v7404_v18, %v1051_v27 }
 0x327   : > { %v7419_v20 = vadd.f32 %v5746_v33, %v7404_v18  ;;  %v982_v35 = vpop.f32.mrb[11].mxu1  ;;  %v1054_v36 = vpop.f32.mrb[7].mxu0  ;;  %v7448_v51 = vpack.c.bf16 %v988_v42, %v988_v42  ;;  %v991_v4 = vadd.f32 %v5738_v32, %v7387_v1 }
 0x328   : > { %v7423_v39 = vpack.c.bf16 %v980_v31, %v980_v31  ;;  %v983_v57 = vadd.f32 %v7387_v1, %v982_v35  ;;  %v7483_v59 = vpack.c.bf16 %v1052_v40, %v1052_v40  ;;  %v1055_v9 = vadd.f32 %v7404_v18, %v1054_v36 }
 0x329   : > { %5766 = vmatmul.mubr.msk.bf16.vlgmr.msra.gmra.mrb[12].mxu0 %vm1106_vm2, %v7416_v34  ;;  %v1387_v60 = vsel %vm1106_vm2, %v7448_v51, 0  ;;  %v7508_v1 = vpack.c.bf16 %v991_v4, %v991_v4 }
 0x32a   : > { %5754 = vmatmul.mubr.msk.bf16.vlgmr.msra.gmra.mrb[12].mxu1 %vm1106_vm2, %v7421_v37  ;;  %v1295_v44 = vsel %vm1106_vm2, %v7423_v39, 0  ;;  %5777 = vmatprep.mubr.msk.bf16.mxu0 %vm6870_vm1, %v6869_v49  ;;  %v7485_v2 = vpack.c.bf16 %v983_v57, %v983_v57  ;;  %v1584_v6 = vsel %vm1582_vm3, %v7483_v59, 0  ;;  %v7522_v12 = vpack.c.bf16 %v1055_v9, %v1055_v9 }
 0x32b   : > { %5758 = vmatpush3.bf16.xpose.msra.mxu1 %v1157_v43  ;;  %5776 = vmatpush3.bf16.xpose.msra.mxu0 %v1295_v44  ;;  %v1433_v0 = vsel %vm1106_vm2, %v7508_v1, 0 }
 0x32c   : > { %v5749_v46 = vpop.f32.mrb[8].mxu0  ;;  %5759 = vmatprep.mubr.msk.bf16.mxu1 %vm6870_vm1, %v6869_v49  ;;  %5769 = vmatprep.subr.bf16.mxu1 %v6869_v49  ;;  %v1341_v5 = vsel %vm1106_vm2, %v7485_v2, 0  ;;  %v1630_v16 = vsel %vm1582_vm3, %v7522_v12, 0 }
 0x32d   : > { %v7443_v21 = vadd.f32 %v5749_v46, %v7404_v18  ;;  %v1067_v47 = vpop.f32.mrb[9].mxu0  ;;  %5787 = vmatprep.subr.bf16.mxu0 %v6869_v49 }
 0x32e   : > { %v7451_v52 = vadd.f32 %v7404_v18, %v1067_v47  ;;  %v5750_v29 = vpop.f32.mrb[10].mxu0 }
 0x32f   : > { %v7454_v38 = vadd.f32 %v5750_v29, %v7404_v18  ;;  %v1070_v53 = vpop.f32.mrb[11].mxu0 }
 0x330   : > { %v7461_v56 = vadd.f32 %v7404_v18, %v1070_v53 }
 0x332   : > { %5760 = vmatmul.mubr.msk.bf16.vlgmr.msra.gmra.mrb[16].mxu1 %vm1106_vm2, %v7458_v55  ;;  %5778 = vmatmul.mubr.msk.bf16.vlgmr.msra.gmra.mrb[16].mxu0 %vm1106_vm2, %v7456_v54 }
 0x333   : > { %5770 = vmatpush3.bf16.xpose.msra.mxu1 %v1249_v48  ;;  %5788 = vmatpush3.bf16.xpose.msra.mxu0 %v1387_v60 }
 0x334   : > { %5771 = vmatprep.mubr.msk.bf16.mxu1 %vm6870_vm1, %v6869_v49  ;;  %5789 = vmatprep.mubr.msk.bf16.mxu0 %vm6870_vm1, %v6869_v49 }
 0x335   : > { %5781 = vmatprep.subr.bf16.mxu1 %v6869_v49  ;;  %5799 = vmatprep.subr.bf16.mxu0 %v6869_v49 }
 0x33a   : > { %5772 = vmatmul.mubr.msk.bf16.vlgmr.msra.gmra.mrb[20].mxu1 %vm1106_vm2, %v7489_v58  ;;  %5790 = vmatmul.mubr.msk.bf16.vlgmr.msra.gmra.mrb[20].mxu0 %vm1106_vm2, %v7487_v3 }
 0x33b   : > { %5782 = vmatpush3.bf16.xpose.msra.mxu1 %v1341_v5  ;;  %5800 = vmatpush3.bf16.msra.mxu0 %v1584_v6 }
 0x33c   : > { %5783 = vmatprep.mubr.msk.bf16.mxu1 %vm6870_vm1, %v6869_v49  ;;  %5793 = vmatprep.subr.bf16.mxu1 %v6869_v49 }
 0x33d   : > { %5801 = vmatprep.mubr.msk.bf16.mxu0 %vm6870_vm1, %v6869_v49  ;;  %5811 = vmatprep.subr.bf16.mxu0 %v6869_v49 }
 0x342   : > { %5784 = vmatmul.mubr.msk.bf16.vlgmr.msra.gmra.mrb[24].mxu1 %vm1106_vm2, %v7510_v8 }
 0x343   : > { %5794 = vmatpush3.bf16.xpose.msra.mxu1 %v1433_v0  ;;  %5795 = vmatprep.mubr.msk.bf16.mxu1 %vm6870_vm1, %v6869_v49 }
 0x344   : > { %5805 = vmatprep.subr.bf16.mxu1 %v6869_v49 }
 0x34a   : > { %5796 = vmatmul.mubr.msk.bf16.vlgmr.msra.gmra.mrb[28].mxu1 %vm1106_vm2, %v7524_v14 }
 0x34b   : > { %5806 = vmatpush3.bf16.msra.mxu1 %v1630_v16  ;;  %5807 = vmatprep.mubr.msk.bf16.mxu1 %vm6870_vm1, %v6869_v49 }
 0x34c   : > { %5817 = vmatprep.subr.bf16.mxu1 %v6869_v49 }
 0x3fc   : > { %v1239_v17 = vpop.f32.mrb[12].mxu0 }
 0x3fd   : > { %v1147_v63 = vpop.f32.mrb[12].mxu1  ;;  %v5767_v15 = vpop.f32.mrb[13].mxu0  ;;  %v1477_v26 = vmul.f32 0.35355338, %v1239_v17 }
 0x3fe   : > { %v1475_v18 = vmul.f32 0.35355338, %v1147_v63  ;;  %v5755_v19 = vpop.f32.mrb[13].mxu1  ;;  %v1242_v22 = vpop.f32.mrb[14].mxu0 }
 0x3ff   : > { %v1150_v23 = vpop.f32.mrb[14].mxu1  ;;  %v5768_v24 = vpop.f32.mrb[15].mxu0  ;;  %v1489_v32 = vsel %vm1106_vm2, %v1477_v26, -inf }
 0x400   : > { %v5756_v27 = vpop.f32.mrb[15].mxu1  ;;  %v1483_v31 = vsel %vm1106_vm2, %v1475_v18, -inf }
 0x401   : > { %1484 = vmax.xlane.f32.xlu0 %v1483_v31 }
 0x405   : > { %v1331_v33 = vpop.f32.mrb[16].mxu0  ;;  %1490 = vmax.xlane.f32.xlu0 %v1489_v32  ;;  %v1193_v35 = vpop.f32.mrb[16].mxu1 }
 0x406   : > { %v1479_v36 = vmul.f32 0.35355338, %v1331_v33  ;;  %v1476_v41 = vmul.f32 0.35355338, %v1193_v35  ;;  %v5761_v42 = vpop.f32.mrb[17].mxu1  ;;  %v5779_v43 = vpop.f32.mrb[17].mxu0 }
 0x407   : > { %v1196_v44 = vpop.f32.mrb[18].mxu1  ;;  %v1334_v45 = vpop.f32.mrb[18].mxu0 }
 0x408   : > { %v5762_v28 = vpop.f32.mrb[19].mxu1  ;;  %v5780_v46 = vpop.f32.mrb[19].mxu0  ;;  %v1495_v47 = vsel %vm1106_vm2, %v1479_v36, -inf  ;;  %v1486_v29 = vsel %vm1106_vm2, %v1476_v41, -inf }
 0x409   : > { %1496 = vmax.xlane.f32.xlu0 %v1495_v47  ;;  %1487 = vmax.xlane.f32.xlu1 %v1486_v29 }
 0x40d   : > { %v1285_v53 = vpop.f32.mrb[20].mxu1  ;;  %v1423_v40 = vpop.f32.mrb[20].mxu0 }
 0x40e   : > { %v1478_v57 = vmul.f32 0.35355338, %v1285_v53  ;;  %v1481_v48 = vmul.f32 0.35355338, %v1423_v40  ;;  %v5773_v60 = vpop.f32.mrb[21].mxu1  ;;  %v5791_v61 = vpop.f32.mrb[21].mxu0 }
 0x40f   : > { %v1288_v62 = vpop.f32.mrb[22].mxu1  ;;  %v1426_v4 = vpop.f32.mrb[22].mxu0 }
 0x410   : > { %v5774_v5 = vpop.f32.mrb[23].mxu1  ;;  %v5792_v6 = vpop.f32.mrb[23].mxu0  ;;  %v1501_v7 = vsel %vm1106_vm2, %v1481_v48, -inf  ;;  %v1492_v9 = vsel %vm1106_vm2, %v1478_v57, -inf }
 0x411   : > { %1502 = vmax.xlane.f32.xlu0 %v1501_v7  ;;  %1493 = vmax.xlane.f32.xlu1 %v1492_v9 }
 0x415   : > { %v1377_v0 = vpop.f32.mrb[24].mxu1 }
 0x416   : > { %v7539_v11 = vmul.f32 0.35355338, %v1377_v0  ;;  %v5785_v16 = vpop.f32.mrb[25].mxu1 }
 0x417   : > { %v1380_v17 = vpop.f32.mrb[26].mxu1 }
 0x418   : > { %v5786_v63 = vpop.f32.mrb[27].mxu1  ;;  %v1498_v15 = vsel %vm1106_vm2, %v7539_v11, -inf }
 0x419   : > { %1499 = vmax.xlane.f32.xlu1 %v1498_v15 }
 0x41d   : > { %v1469_v19 = vpop.f32.mrb[28].mxu1 }
 0x41e   : > { %v7543_v22 = vmul.f32 0.35355338, %v1469_v19  ;;  %v5797_v23 = vpop.f32.mrb[29].mxu1 }
 0x41f   : > { %v1472_v24 = vpop.f32.mrb[30].mxu1 }
 0x420   : > { %v5798_v27 = vpop.f32.mrb[31].mxu1  ;;  %v1504_v31 = vsel %vm1106_vm2, %v7543_v22, -inf }
 0x421   : > { %1505 = vmax.xlane.f32.xlu1 %v1504_v31 }
 0x48e   : > { %v1485_v32 = vpop.xlane.xlu0 %1484 }
 0x48f   : > { %v1507_v33 = vsub.f32 %v1475_v18, %v1485_v32 }
 0x491   : > { %v1515_v35 = vmul.f32 1.442695, %v1507_v33 }
 0x492   : > { %v1491_v42 = vpop.xlane.xlu0 %1490 }
 0x493   : > { %6397 = vpow2.f32 %v1515_v35  ;;  %v1509_v43 = vsub.f32 %v1477_v26, %v1491_v42 }
 0x495   : > { %v1519_v44 = vmul.f32 1.442695, %v1509_v43 }
 0x496   : > { %v1497_v45 = vpop.xlane.xlu0 %1496  ;;  %v1488_v28 = vpop.xlane.xlu1 %1487 }
 0x497   : > { %6399 = vpow2.f32 %v1519_v44  ;;  %v1511_v46 = vsub.f32 %v1479_v36, %v1497_v45  ;;  %v1508_v47 = vsub.f32 %v1476_v41, %v1488_v28  ;;  %v7611_v45 = vpack.c.bf16 %v7411_v25, %v7411_v25 }
 0x499   : > { %v1523_v29 = vmul.f32 1.442695, %v1511_v46  ;;  %v1517_v53 = vmul.f32 1.442695, %v1508_v47 }
 0x49b   : > { %6401 = vpow2.f32 %v1523_v29  ;;  %v1676_v29 = vsel %vm1582_vm3, %v7611_v45, 0 }
 0x49c   : > { %6403 = vpow2.f32 %v1517_v53 }
 0x49d   : > { %v7547_v40 = vpop.eup %6397 }
 0x49e   : > { %v1503_v60 = vpop.xlane.xlu0 %1502  ;;  %v1494_v61 = vpop.xlane.xlu1 %1493  ;;  %v1531_v18 = vsel %vm1106_vm2, %v7547_v40, 0.0 }
 0x49f   : > { %v1513_v62 = vsub.f32 %v1481_v48, %v1503_v60  ;;  %v1510_v4 = vsub.f32 %v1478_v57, %v1494_v61  ;;  %1532 = vadd.xlane.f32.xlu0 %v1531_v18  ;;  %v7627_v61 = vpack.c.bf16 %v7451_v52, %v7451_v52  ;;  %v7631_v18 = vpack.c.bf16 %v7419_v20, %v7419_v20 }
 0x4a1   : > { %v7551_v26 = vpop.eup %6399  ;;  %v1527_v5 = vmul.f32 1.442695, %v1513_v62  ;;  %v1521_v6 = vmul.f32 1.442695, %v1510_v4  ;;  %v1722_v20 = vsel %vm1582_vm3, %v7631_v18, 0 }
 0x4a2   : > { %v1537_v36 = vsel %vm1106_vm2, %v7551_v26, 0.0 }
 0x4a3   : > { %6405 = vpow2.f32 %v1527_v5  ;;  %1538 = vadd.xlane.f32.xlu0 %v1537_v36 }
 0x4a4   : > { %6407 = vpow2.f32 %v1521_v6  ;;  %v1768_v6 = vsel %vm1582_vm3, %v7627_v61, 0 }
 0x4a5   : > { %v7555_v41 = vpop.eup %6401 }
 0x4a6   : > { %v7557_v7 = vpop.eup %6403  ;;  %v1543_v9 = vsel %vm1106_vm2, %v7555_v41, 0.0  ;;  %v1500_v63 = vpop.xlane.xlu1 %1499 }
 0x4a7   : > { %1544 = vadd.xlane.f32.xlu0 %v1543_v9  ;;  %v1534_v57 = vsel %vm1106_vm2, %v7557_v7, 0.0  ;;  %v1512_v15 = vsub.f32 %v7539_v11, %v1500_v63  ;;  %v7657_v9 = vpack.c.bf16 %v7461_v56, %v7461_v56 }
 0x4a8   : > { %1535 = vadd.xlane.f32.xlu1 %v1534_v57 }
 0x4a9   : > { %v1525_v19 = vmul.f32 1.442695, %v1512_v15  ;;  %v1814_v56 = vsel %vm1582_vm3, %v7657_v9, 0 }
 0x4ab   : > { %6409 = vpow2.f32 %v1525_v19 }
 0x4ad   : > { %v7563_v48 = vpop.eup %6405 }
 0x4ae   : > { %v7565_v0 = vpop.eup %6407  ;;  %v1549_v16 = vsel %vm1106_vm2, %v7563_v48, 0.0  ;;  %v1506_v24 = vpop.xlane.xlu1 %1505 }
 0x4af   : > { %1550 = vadd.xlane.f32.xlu0 %v1549_v16  ;;  %v1540_v17 = vsel %vm1106_vm2, %v7565_v0, 0.0  ;;  %v1514_v27 = vsub.f32 %v7543_v22, %v1506_v24 }
 0x4b0   : > { %1541 = vadd.xlane.f32.xlu1 %v1540_v17 }
 0x4b1   : > { %v1529_v31 = vmul.f32 1.442695, %v1514_v27 }
 0x4b3   : > { %6411 = vpow2.f32 %v1529_v31 }
 0x4b5   : > { %v7588_v23 = vpop.eup %6409 }
 0x4b6   : > { %v1546_v11 = vsel %vm1106_vm2, %v7588_v23, 0.0 }
 0x4bd   : > { %v7597_v32 = vpop.eup %6411 }
 0x4be   : > { %v1552_v33 = vsel %vm1106_vm2, %v7597_v32, 0.0 }
 0x4c1   : > { %2004 = vrot.lane.b32.xlu1 %v7413_v30, %s6871_s1 }
 0x4c5   : > { %1952 = vrot.lane.b32.xlu0 %v7395_v13, %s6871_s1 }
 0x4c9   : > { %2056 = vrot.lane.b32.xlu0 %v7393_v10, %s6871_s1 }
 0x4cd   : > { %2053 = vrot.lane.b32.xlu0 %v7416_v34, %s6871_s1 }
 0x4d1   : > { %2160 = vrot.lane.b32.xlu0 %v7423_v39, %s6871_s1 }
 0x4d5   : > { %2157 = vrot.lane.b32.xlu0 %v7456_v54, %s6871_s1 }
 0x4d9   : > { %2264 = vrot.lane.b32.xlu0 %v7448_v51, %s6871_s1 }
 0x4dd   : > { %2261 = vrot.lane.b32.xlu0 %v7487_v3, %s6871_s1 }
 0x4e1   : > { %2469 = vrot.lane.b32.xlu0 %v7483_v59, %s6871_s1 }
 0x4e5   : > { %1547 = vadd.xlane.f32.xlu1 %v1546_v11 }
 0x4f6   : > { %1949 = vrot.lane.b32.xlu1 %v7421_v37, %s6871_s1 }
 0x51a   : > { %1553 = vadd.xlane.f32.xlu1 %v1552_v33 }
 0x52b   : > { %2001 = vrot.lane.b32.xlu1 %v7458_v55, %s6871_s1 }
 0x52c   : > { %v1533_v35 = vpop.xlane.xlu0 %1532 }
 0x52d   : > { %6413 = vrcp.f32 %v1533_v35 }
 0x52f   : > { %2108 = vrot.lane.b32.xlu1 %v7446_v50, %s6871_s1 }
 0x530   : > { %v1539_v42 = vpop.xlane.xlu0 %1538 }
 0x531   : > { %6415 = vrcp.f32 %v1539_v42 }
 0x533   : > { %2105 = vrot.lane.b32.xlu1 %v7489_v58, %s6871_s1 }
 0x534   : > { %v1545_v43 = vpop.xlane.xlu0 %1544 }
 0x535   : > { %v1536_v22 = vpop.xlane.xlu1 %1535 }
 0x536   : > { %6417 = vrcp.f32 %v1536_v22 }
 0x537   : > { %v6414_v44 = vpop.eup %6413  ;;  %2212 = vrot.lane.b32.xlu1 %v7485_v2, %s6871_s1  ;;  %6419 = vrcp.f32 %v1545_v43  ;;  %v7689_v43 = vpack.c.bf16 %v7454_v38, %v7454_v38 }
 0x538   : > { %v1563_v28 = vmul.f32 %v6414_v44, %v7547_v40 }
 0x539   : > { %v1906_v38 = vsel %vm1582_vm3, %v7689_v43, 0 }
 0x53a   : > { %v1571_v46 = vpack.c.bf16 %v1563_v28, %v1563_v28 }
 0x53b   : > { %v6416_v47 = vpop.eup %6415  ;;  %2209 = vrot.lane.b32.xlu1 %v7510_v8, %s6871_s1 }
 0x53c   : > { %5802 = vmatmul.mubr.msk.bf16.vlgmr.msra.gmra.mrb[24].mxu0 %vm1106_vm2, %v1571_v46  ;;  %v1551_v25 = vpop.xlane.xlu0 %1550  ;;  %v1565_v40 = vmul.f32 %v6416_v47, %v7551_v26 }
 0x53d   : > { %5812 = vmatpush3.bf16.msra.mxu0 %v1676_v29  ;;  %v1542_v53 = vpop.xlane.xlu1 %1541  ;;  %5813 = vmatprep.mubr.msk.bf16.mxu0 %vm6870_vm1, %v6869_v49 }
 0x53e   : > { %6421 = vrcp.f32 %v1542_v53  ;;  %5823 = vmatprep.subr.bf16.mxu0 %v6869_v49  ;;  %v1573_v4 = vpack.c.bf16 %v1565_v40, %v1565_v40 }
 0x53f   : > { %2316 = vrot.lane.b32.xlu1 %v7508_v1, %s6871_s1  ;;  %6423 = vrcp.f32 %v1551_v25 }
 0x540   : > { %v6418_v60 = vpop.eup %6417  ;;  %v1953_v63 = vpop.permute.xlu0 %1952 }
 0x541   : > { %v1564_v62 = vmul.f32 %v6418_v60, %v7557_v7  ;;  %v6420_v5 = vpop.eup %6419  ;;  %v7651_v7 = vpack.c.bf16 %v7443_v21, %v7443_v21  ;;  %v1958_v19 = vsel %vm1106_vm2, %v1953_v63, 0  ;;  %v2005_v11 = vpop.permute.xlu1 %2004 }
 0x542   : > { %v1567_v52 = vmul.f32 %v6420_v5, %v7555_v41 }
 0x543   : > { %2313 = vrot.lane.b32.xlu1 %v7524_v14, %s6871_s1  ;;  %v1572_v26 = vpack.c.bf16 %v1564_v62, %v1564_v62  ;;  %v1860_v21 = vsel %vm1582_vm3, %v7651_v7, 0 }
 0x544   : > { %5814 = vmatmul.mubr.msk.bf16.vlgmr.msra.gmra.mrb[28].mxu0 %vm1106_vm2, %v1573_v4  ;;  %v1575_v57 = vpack.c.bf16 %v1567_v52, %v1567_v52 }
 0x545   : > { %5824 = vmatpush3.bf16.msra.mxu0 %v1768_v6  ;;  %5808 = vmatmul.mubr.msk.bf16.vlgmr.msra.gmra.mrb[32].mxu1 %vm1106_vm2, %v1572_v26 }
 0x546   : > { %5818 = vmatpush3.bf16.msra.mxu1 %v1722_v20  ;;  %5819 = vmatprep.mubr.msk.bf16.mxu1 %vm6870_vm1, %v6869_v49  ;;  %v2010_v20 = vsel %vm1106_vm2, %v2005_v11, 0 }
 0x547   : > { %2518 = vrot.lane.b32.xlu1 %v7522_v12, %s6871_s1  ;;  %5825 = vmatprep.mubr.msk.bf16.mxu0 %vm6870_vm1, %v6869_v49 }
 0x548   : > { %v6422_v36 = vpop.eup %6421  ;;  %5829 = vmatprep.subr.bf16.mxu1 %v6869_v49  ;;  %5835 = vmatprep.subr.bf16.mxu0 %v6869_v49 }
 0x549   : > { %v1566_v41 = vmul.f32 %v6422_v36, %v7565_v0  ;;  %v6424_v16 = vpop.eup %6423 }
 0x54a   : > { %v1569_v0 = vmul.f32 %v6424_v16, %v7563_v48  ;;  %v2057_v48 = vpop.permute.xlu0 %2056 }
 0x54b   : > { %2567 = vrot.lane.b32.xlu1 %v7611_v45, %s6871_s1  ;;  %v1574_v17 = vpack.c.bf16 %v1566_v41, %v1566_v41  ;;  %v2062_v35 = vsel %vm1106_vm2, %v2057_v48, 0 }
 0x54c   : > { %5826 = vmatmul.mubr.msk.bf16.vlgmr.msra.gmra.mrb[32].mxu0 %vm1106_vm2, %v1575_v57  ;;  %v1577_v15 = vpack.c.bf16 %v1569_v0, %v1569_v0 }
 0x54d   : > { %5836 = vmatpush3.bf16.msra.mxu0 %v1860_v21  ;;  %5820 = vmatmul.mubr.msk.bf16.vlgmr.msra.gmra.mrb[36].mxu1 %vm1106_vm2, %v1574_v17 }
 0x54e   : > { %5830 = vmatpush3.bf16.msra.mxu1 %v1814_v56  ;;  %5837 = vmatprep.mubr.msk.bf16.mxu0 %vm6870_vm1, %v6869_v49  ;;  %v2054_v24 = vpop.permute.xlu0 %2053 }
 0x54f   : > { %2616 = vrot.lane.b32.xlu1 %v7631_v18, %s6871_s1  ;;  %5847 = vmatprep.subr.bf16.mxu0 %v6869_v49 }
 0x550   : > { %5831 = vmatprep.mubr.msk.bf16.mxu1 %vm6870_vm1, %v6869_v49  ;;  %5841 = vmatprep.subr.bf16.mxu1 %v6869_v49 }
 0x552   : > { %v2161_v31 = vpop.permute.xlu0 %2160 }
 0x553   : > { %v2166_v28 = vsel %vm1106_vm2, %v2161_v31, 0 }
 0x554   : > { %5838 = vmatmul.mubr.msk.bf16.vlgmr.msra.gmra.mrb[36].mxu0 %vm1106_vm2, %v1577_v15 }
 0x555   : > { %5849 = vmatprep.mubr.msk.bf16.mxu0 %vm6870_vm1, %v6869_v49 }
 0x556   : > { %5848 = vmatpush3.bf16.xpose.msra.mxu0 %v1958_v19  ;;  %v2158_v42 = vpop.permute.xlu0 %2157 }
 0x557   : > { %5859 = vmatprep.subr.bf16.mxu0 %v6869_v49 }
 0x55a   : > { %v2265_v46 = vpop.permute.xlu0 %2264 }
 0x55b   : > { %v2270_v29 = vsel %vm1106_vm2, %v2265_v46, 0 }
 0x572   : > { %v1548_v27 = vpop.xlane.xlu1 %1547 }
 0x573   : > { %6425 = vrcp.f32 %v1548_v27 }
 0x576   : > { %v1950_v33 = vpop.permute.xlu1 %1949 }
 0x577   : > { %5850 = vmatmul.mubr.msk.bf16.vlgmr.msra.gmra.mrb[40].mxu0 %vm1106_vm2, %v1950_v33 }
 0x578   : > { %5860 = vmatpush3.bf16.xpose.msra.mxu0 %v2062_v35  ;;  %5861 = vmatprep.mubr.msk.bf16.mxu0 %vm6870_vm1, %v6869_v49 }
 0x579   : > { %5871 = vmatprep.subr.bf16.mxu0 %v6869_v49 }
 0x57d   : > { %v6426_v22 = vpop.eup %6425 }
 0x57e   : > { %v1568_v44 = vmul.f32 %v6426_v22, %v7588_v23  ;;  %v2262_v23 = vpop.permute.xlu0 %2261 }
 0x57f   : > { %5862 = vmatmul.mubr.msk.bf16.vlgmr.msra.gmra.mrb[44].mxu0 %vm1106_vm2, %v2054_v24 }
 0x580   : > { %5872 = vmatpush3.bf16.xpose.msra.mxu0 %v2166_v28  ;;  %v1576_v47 = vpack.c.bf16 %v1568_v44, %v1568_v44  ;;  %5873 = vmatprep.mubr.msk.bf16.mxu0 %vm6870_vm1, %v6869_v49 }
 0x581   : > { %5883 = vmatprep.subr.bf16.mxu0 %v6869_v49 }
 0x582   : > { %5832 = vmatmul.mubr.msk.bf16.vlgmr.msra.gmra.mrb[40].mxu1 %vm1106_vm2, %v1576_v47  ;;  %v2470_v53 = vpop.permute.xlu0 %2469 }
 0x583   : > { %5842 = vmatpush3.bf16.msra.mxu1 %v1906_v38  ;;  %5843 = vmatprep.mubr.msk.bf16.mxu1 %vm6870_vm1, %v6869_v49  ;;  %v2475_v25 = vsel %vm1582_vm3, %v2470_v53, 0 }
 0x584   : > { %5853 = vmatprep.subr.bf16.mxu1 %v6869_v49 }
 0x587   : > { %5874 = vmatmul.mubr.msk.bf16.vlgmr.msra.gmra.mrb[48].mxu0 %vm1106_vm2, %v2158_v42 }
 0x588   : > { %5884 = vmatpush3.bf16.xpose.msra.mxu0 %v2270_v29  ;;  %5885 = vmatprep.mubr.msk.bf16.mxu0 %vm6870_vm1, %v6869_v49 }
 0x589   : > { %5895 = vmatprep.subr.bf16.mxu0 %v6869_v49 }
 0x58f   : > { %5886 = vmatmul.mubr.msk.bf16.vlgmr.msra.gmra.mrb[52].mxu0 %vm1106_vm2, %v2262_v23 }
 0x590   : > { %5896 = vmatpush3.bf16.msra.mxu0 %v2475_v25  ;;  %5897 = vmatprep.mubr.msk.bf16.mxu0 %vm6870_vm1, %v6869_v49 }
 0x591   : > { %5907 = vmatprep.subr.bf16.mxu0 %v6869_v49 }
 0x5a7   : > { %v1554_v40 = vpop.xlane.xlu1 %1553 }
 0x5a8   : > { %6427 = vrcp.f32 %v1554_v40 }
 0x5ab   : > { %v2002_v60 = vpop.permute.xlu1 %2001 }
 0x5af   : > { %v2109_v62 = vpop.permute.xlu1 %2108 }
 0x5b0   : > { %v2114_v36 = vsel %vm1106_vm2, %v2109_v62, 0 }
 0x5b2   : > { %v6428_v4 = vpop.eup %6427 }
 0x5b3   : > { %v1570_v5 = vmul.f32 %v6428_v4, %v7597_v32  ;;  %v2106_v6 = vpop.permute.xlu1 %2105 }
 0x5b5   : > { %v1578_v26 = vpack.c.bf16 %v1570_v5, %v1570_v5 }
 0x5b7   : > { %5844 = vmatmul.mubr.msk.bf16.vlgmr.msra.gmra.mrb[44].mxu1 %vm1106_vm2, %v1578_v26  ;;  %v2213_v52 = vpop.permute.xlu1 %2212 }
 0x5b8   : > { %5854 = vmatpush3.bf16.xpose.msra.mxu1 %v2010_v20  ;;  %5855 = vmatprep.mubr.msk.bf16.mxu1 %vm6870_vm1, %v6869_v49  ;;  %v2218_v41 = vsel %vm1106_vm2, %v2213_v52, 0 }
 0x5b9   : > { %5865 = vmatprep.subr.bf16.mxu1 %v6869_v49 }
 0x5bb   : > { %v2210_v32 = vpop.permute.xlu1 %2209 }
 0x5bf   : > { %5856 = vmatmul.mubr.msk.bf16.vlgmr.msra.gmra.mrb[48].mxu1 %vm1106_vm2, %v2002_v60  ;;  %v2317_v57 = vpop.permute.xlu1 %2316 }
 0x5c0   : > { %5866 = vmatpush3.bf16.xpose.msra.mxu1 %v2114_v36  ;;  %5867 = vmatprep.mubr.msk.bf16.mxu1 %vm6870_vm1, %v6869_v49  ;;  %v2322_v17 = vsel %vm1106_vm2, %v2317_v57, 0 }
 0x5c1   : > { %5877 = vmatprep.subr.bf16.mxu1 %v6869_v49 }
 0x5c3   : > { %v2314_v16 = vpop.permute.xlu1 %2313 }
 0x5c7   : > { %5868 = vmatmul.mubr.msk.bf16.vlgmr.msra.gmra.mrb[52].mxu1 %vm1106_vm2, %v2106_v6  ;;  %v2519_v21 = vpop.permute.xlu1 %2518 }
 0x5c8   : > { %5878 = vmatpush3.bf16.xpose.msra.mxu1 %v2218_v41  ;;  %5879 = vmatprep.mubr.msk.bf16.mxu1 %vm6870_vm1, %v6869_v49  ;;  %v2524_v56 = vsel %vm1582_vm3, %v2519_v21, 0 }
 0x5c9   : > { %5889 = vmatprep.subr.bf16.mxu1 %v6869_v49 }
 0x5cf   : > { %5880 = vmatmul.mubr.msk.bf16.vlgmr.msra.gmra.mrb[56].mxu1 %vm1106_vm2, %v2210_v32 }
 0x5d0   : > { %5890 = vmatpush3.bf16.xpose.msra.mxu1 %v2322_v17  ;;  %5891 = vmatprep.mubr.msk.bf16.mxu1 %vm6870_vm1, %v6869_v49 }
 0x5d1   : > { %5901 = vmatprep.subr.bf16.mxu1 %v6869_v49 }
 0x5d7   : > { %5892 = vmatmul.mubr.msk.bf16.vlgmr.msra.gmra.mrb[60].mxu1 %vm1106_vm2, %v2314_v16 }
 0x5d8   : > { %5902 = vmatpush3.bf16.msra.mxu1 %v2524_v56  ;;  %5903 = vmatprep.mubr.msk.bf16.mxu1 %vm6870_vm1, %v6869_v49 }
 0x5d9   : > { %5913 = vmatprep.subr.bf16.mxu1 %v6869_v49 }
 0x60f   : > { %v7739_v0 = vpop.f32.mrb[24].mxu0 }
 0x610   : > { %v5803_v63 = vpop.f32.mrb[25].mxu0 }
 0x611   : > { %v1623_v15 = vpop.f32.mrb[26].mxu0 }
 0x612   : > { %v5804_v19 = vpop.f32.mrb[27].mxu0 }
 0x617   : > { %v7741_v48 = vpop.f32.mrb[28].mxu0 }
 0x618   : > { %v7743_v11 = vpop.f32.mrb[32].mxu1  ;;  %v5815_v24 = vpop.f32.mrb[29].mxu0 }
 0x619   : > { %v5809_v27 = vpop.f32.mrb[33].mxu1  ;;  %v1715_v31 = vpop.f32.mrb[30].mxu0 }
 0x61a   : > { %v1669_v33 = vpop.f32.mrb[34].mxu1  ;;  %v5816_v35 = vpop.f32.mrb[31].mxu0 }
 0x61b   : > { %v5810_v42 = vpop.f32.mrb[35].mxu1 }
 0x61f   : > { %v7745_v22 = vpop.f32.mrb[32].mxu0 }
 0x620   : > { %v7747_v44 = vpop.f32.mrb[36].mxu1  ;;  %v5827_v28 = vpop.f32.mrb[33].mxu0 }
 0x621   : > { %v5821_v46 = vpop.f32.mrb[37].mxu1  ;;  %v1807_v47 = vpop.f32.mrb[34].mxu0 }
 0x622   : > { %v1761_v38 = vpop.f32.mrb[38].mxu1  ;;  %v5828_v23 = vpop.f32.mrb[35].mxu0 }
 0x623   : > { %v5822_v29 = vpop.f32.mrb[39].mxu1 }
 0x627   : > { %v7749_v53 = vpop.f32.mrb[36].mxu0 }
 0x628   : > { %v5839_v25 = vpop.f32.mrb[37].mxu0 }
 0x629   : > { %v1899_v40 = vpop.f32.mrb[38].mxu0 }
 0x62a   : > { %v5840_v60 = vpop.f32.mrb[39].mxu0 }
 0x64a   : > { %v1994_v62 = vpop.f32.mrb[40].mxu0 }
 0x64b   : > { %v7751_v4 = vmul.f32 0.35355338, %v1994_v62  ;;  %v5851_v5 = vpop.f32.mrb[41].mxu0 }
 0x64c   : > { %v1997_v26 = vpop.f32.mrb[42].mxu0 }
 0x64d   : > { %v5852_v6 = vpop.f32.mrb[43].mxu0  ;;  %v2372_v20 = vsel %vm1106_vm2, %v7751_v4, -inf }
 0x64e   : > { %2373 = vmax.xlane.f32.xlu0 %v2372_v20 }
 0x652   : > { %v2098_v52 = vpop.f32.mrb[44].mxu0 }
 0x653   : > { %v7755_v36 = vmul.f32 0.35355338, %v2098_v52  ;;  %v5863_v32 = vpop.f32.mrb[45].mxu0 }
 0x654   : > { %v2101_v41 = vpop.f32.mrb[46].mxu0 }
 0x655   : > { %v7757_v57 = vpop.f32.mrb[40].mxu1  ;;  %v5864_v16 = vpop.f32.mrb[47].mxu0  ;;  %v2378_v17 = vsel %vm1106_vm2, %v7755_v36, -inf }
 0x656   : > { %2379 = vmax.xlane.f32.xlu0 %v2378_v17  ;;  %v5833_v21 = vpop.f32.mrb[41].mxu1 }
 0x657   : > { %v1853_v56 = vpop.f32.mrb[42].mxu1 }
 0x658   : > { %v5834_v63 = vpop.f32.mrb[43].mxu1 }
 0x65a   : > { %v2202_v15 = vpop.f32.mrb[48].mxu0 }
 0x65b   : > { %v5875_v19 = vpop.f32.mrb[49].mxu0  ;;  %v2368_v52 = vmul.f32 0.35355338, %v2202_v15 }
 0x65c   : > { %v2205_v24 = vpop.f32.mrb[50].mxu0 }
 0x65d   : > { %v5876_v27 = vpop.f32.mrb[51].mxu0  ;;  %v2384_v17 = vsel %vm1106_vm2, %v2368_v52, -inf }
 0x662   : > { %v2306_v31 = vpop.f32.mrb[52].mxu0 }
 0x663   : > { %v5887_v33 = vpop.f32.mrb[53].mxu0  ;;  %v7765_v16 = vmul.f32 0.35355338, %v2306_v31 }
 0x664   : > { %v2309_v35 = vpop.f32.mrb[54].mxu0 }
 0x665   : > { %v5888_v42 = vpop.f32.mrb[55].mxu0  ;;  %v2390_v27 = vsel %vm1106_vm2, %v7765_v16, -inf }
 0x68a   : > { %v7761_v28 = vpop.f32.mrb[44].mxu1 }
 0x68b   : > { %v5845_v46 = vpop.f32.mrb[45].mxu1 }
 0x68c   : > { %v1945_v47 = vpop.f32.mrb[46].mxu1 }
 0x68d   : > { %v5846_v38 = vpop.f32.mrb[47].mxu1 }
 0x692   : > { %v2046_v23 = vpop.f32.mrb[48].mxu1 }
 0x693   : > { %v2365_v29 = vmul.f32 0.35355338, %v2046_v23  ;;  %v5857_v25 = vpop.f32.mrb[49].mxu1 }
 0x694   : > { %v2049_v40 = vpop.f32.mrb[50].mxu1 }
 0x695   : > { %v5858_v60 = vpop.f32.mrb[51].mxu1  ;;  %v2375_v62 = vsel %vm1106_vm2, %v2365_v29, -inf }
 0x696   : > { %2376 = vmax.xlane.f32.xlu1 %v2375_v62 }
 0x69a   : > { %v2150_v5 = vpop.f32.mrb[52].mxu1 }
 0x69b   : > { %v2367_v26 = vmul.f32 0.35355338, %v2150_v5  ;;  %v5869_v6 = vpop.f32.mrb[53].mxu1 }
 0x69c   : > { %v2153_v20 = vpop.f32.mrb[54].mxu1 }
 0x69d   : > { %v5870_v32 = vpop.f32.mrb[55].mxu1  ;;  %v2381_v41 = vsel %vm1106_vm2, %v2367_v26, -inf }
 0x69e   : > { %2382 = vmax.xlane.f32.xlu0 %v2381_v41  ;;  %v2568_v41 = vpop.permute.xlu1 %2567 }
 0x6a2   : > { %2385 = vmax.xlane.f32.xlu0 %v2384_v17  ;;  %v2254_v21 = vpop.f32.mrb[56].mxu1  ;;  %v7783_v17 = vpop.permute.xlu1 %2616 }
 0x6a3   : > { %v2369_v56 = vmul.f32 0.35355338, %v2254_v21  ;;  %v5881_v63 = vpop.f32.mrb[57].mxu1 }
 0x6a4   : > { %v2257_v19 = vpop.f32.mrb[58].mxu1 }
 0x6a5   : > { %v5882_v24 = vpop.f32.mrb[59].mxu1  ;;  %v2387_v33 = vsel %vm1106_vm2, %v2369_v56, -inf }
 0x6a6   : > { %2391 = vmax.xlane.f32.xlu0 %v2390_v27  ;;  %2388 = vmax.xlane.f32.xlu1 %v2387_v33 }
 0x6aa   : > { %v2358_v15 = vpop.f32.mrb[60].mxu1 }
 0x6ab   : > { %v5893_v35 = vpop.f32.mrb[61].mxu1  ;;  %v7775_v46 = vmul.f32 0.35355338, %v2358_v15 }
 0x6ac   : > { %v2361_v42 = vpop.f32.mrb[62].mxu1 }
 0x6ad   : > { %v5894_v31 = vpop.f32.mrb[63].mxu1  ;;  %v2393_v47 = vsel %vm1106_vm2, %v7775_v46, -inf }
 0x6b7   : > { %2714 = vrot.lane.b32.xlu1 %v7657_v9, %s6871_s1 }
 0x6bc   : > { %2665 = vrot.lane.b32.xlu0 %v7627_v61, %s6871_s1 }
 0x6db   : > { %v2374_v38 = vpop.xlane.xlu0 %2373  ;;  %2394 = vmax.xlane.f32.xlu1 %v2393_v47 }
 0x6dc   : > { %v2396_v23 = vsub.f32 %v7751_v4, %v2374_v38 }
 0x6de   : > { %v2404_v25 = vmul.f32 1.442695, %v2396_v23 }
 0x6e0   : > { %6429 = vpow2.f32 %v2404_v25 }
 0x6e3   : > { %v2380_v40 = vpop.xlane.xlu0 %2379 }
 0x6e4   : > { %v2398_v60 = vsub.f32 %v7755_v36, %v2380_v40 }
 0x6e6   : > { %v2408_v62 = vmul.f32 1.442695, %v2398_v60 }
 0x6e8   : > { %6431 = vpow2.f32 %v2408_v62 }
 0x6ea   : > { %v6430_v5 = vpop.eup %6429 }
 0x6eb   : > { %v2420_v6 = vsel %vm1106_vm2, %v6430_v5, 0.0 }
 0x6ec   : > { %2421 = vadd.xlane.f32.xlu0 %v2420_v6 }
 0x6f2   : > { %v6432_v20 = vpop.eup %6431 }
 0x6f3   : > { %v2426_v32 = vsel %vm1106_vm2, %v6432_v20, 0.0 }
 0x6f4   : > { %2427 = vadd.xlane.f32.xlu0 %v2426_v32 }
 0x723   : > { %v2377_v21 = vpop.xlane.xlu1 %2376 }
 0x724   : > { %v2397_v4 = vsub.f32 %v2365_v29, %v2377_v21 }
 0x726   : > { %v2406_v63 = vmul.f32 1.442695, %v2397_v4 }
 0x728   : > { %6433 = vpow2.f32 %v2406_v63 }
 0x72b   : > { %v2383_v19 = vpop.xlane.xlu0 %2382 }
 0x72c   : > { %v2399_v24 = vsub.f32 %v2367_v26, %v2383_v19 }
 0x72e   : > { %v2410_v36 = vmul.f32 1.442695, %v2399_v24 }
 0x72f   : > { %v2386_v27 = vpop.xlane.xlu0 %2385 }
 0x730   : > { %6435 = vpow2.f32 %v2410_v36  ;;  %v2400_v33 = vsub.f32 %v2368_v52, %v2386_v27  ;;  %v2573_v36 = vsel %vm1582_vm3, %v2568_v41, 0 }
 0x732   : > { %v7785_v15 = vpop.eup %6433  ;;  %v2412_v35 = vmul.f32 1.442695, %v2400_v33 }
 0x733   : > { %v2423_v42 = vsel %vm1106_vm2, %v7785_v15, 0.0  ;;  %v2389_v52 = vpop.xlane.xlu1 %2388  ;;  %v2392_v23 = vpop.xlane.xlu0 %2391 }
 0x734   : > { %6437 = vpow2.f32 %v2412_v35  ;;  %2424 = vadd.xlane.f32.xlu1 %v2423_v42  ;;  %v2401_v38 = vsub.f32 %v2369_v56, %v2389_v52  ;;  %v2402_v25 = vsub.f32 %v7765_v16, %v2392_v23 }
 0x736   : > { %v2414_v40 = vmul.f32 1.442695, %v2401_v38  ;;  %v2416_v60 = vmul.f32 1.442695, %v2402_v25 }
 0x737   : > { %v2666_v4 = vpop.permute.xlu0 %2665  ;;  %v2715_v27 = vpop.permute.xlu1 %2714 }
 0x738   : > { %6439 = vpow2.f32 %v2414_v40 }
 0x739   : > { %6441 = vpow2.f32 %v2416_v60 }
 0x73a   : > { %v7789_v31 = vpop.eup %6435 }
 0x73b   : > { %v2429_v29 = vsel %vm1106_vm2, %v7789_v31, 0.0 }
 0x73c   : > { %2430 = vadd.xlane.f32.xlu1 %v2429_v29  ;;  %v2671_v29 = vsel %vm1582_vm3, %v2666_v4, 0 }
 0x73e   : > { %v7793_v47 = vpop.eup %6437 }
 0x73f   : > { %v2432_v26 = vsel %vm1106_vm2, %v7793_v47, 0.0 }
 0x740   : > { %2433 = vadd.xlane.f32.xlu0 %v2432_v26 }
 0x742   : > { %v7802_v62 = vpop.eup %6439 }
 0x743   : > { %v2435_v6 = vsel %vm1106_vm2, %v7802_v62, 0.0  ;;  %v7806_v32 = vpop.eup %6441 }
 0x744   : > { %v2438_v21 = vsel %vm1106_vm2, %v7806_v32, 0.0 }
 0x74d   : > { %2812 = vrot.lane.b32.xlu1 %v7689_v43, %s6871_s1 }
 0x756   : > { %2763 = vrot.lane.b32.xlu0 %v7651_v7, %s6871_s1 }
 0x768   : > { %v2395_v35 = vpop.xlane.xlu1 %2394 }
 0x769   : > { %v2403_v41 = vsub.f32 %v7775_v46, %v2395_v35 }
 0x771   : > { %2436 = vadd.xlane.f32.xlu1 %v2435_v6  ;;  %v2622_v6 = vsel %vm1582_vm3, %v7783_v17, 0  ;;  %v2720_v17 = vsel %vm1582_vm3, %v2715_v27, 0 }
 0x775   : > { %2439 = vadd.xlane.f32.xlu0 %v2438_v21 }
 0x779   : > { %v2422_v56 = vpop.xlane.xlu0 %2421 }
 0x77a   : > { %6443 = vrcp.f32 %v2422_v56 }
 0x781   : > { %v2428_v16 = vpop.xlane.xlu0 %2427 }
 0x782   : > { %6445 = vrcp.f32 %v2428_v16  ;;  %2912 = vrot.lane.b32.xlu1 %v7413_v30, %s6872_s18 }
 0x784   : > { %v6444_v63 = vpop.eup %6443 }
 0x785   : > { %v2452_v19 = vmul.f32 %v6444_v63, %v6430_v5 }
 0x787   : > { %v2460_v24 = vpack.c.bf16 %v2452_v19, %v2452_v19 }
 0x789   : > { %5898 = vmatmul.mubr.msk.bf16.vlgmr.msra.gmra.mrb[56].mxu0 %vm1106_vm2, %v2460_v24 }
 0x78a   : > { %5908 = vmatpush3.bf16.msra.mxu0 %v2573_v36  ;;  %5909 = vmatprep.mubr.msk.bf16.mxu0 %vm6870_vm1, %v6869_v49 }
 0x78b   : > { %2862 = vrot.lane.b32.xlu0 %v7395_v13, %s6872_s18  ;;  %5919 = vmatprep.subr.bf16.mxu0 %v6869_v49 }
 0x78c   : > { %v6446_v33 = vpop.eup %6445 }
 0x78d   : > { %v2454_v42 = vmul.f32 %v6446_v33, %v6432_v20  ;;  %v2418_v20 = vmul.f32 1.442695, %v2403_v41 }
 0x78f   : > { %2860 = vrot.lane.b32.xlu0 %v7421_v37, %s6872_s18  ;;  %v2462_v5 = vpack.c.bf16 %v2454_v42, %v2454_v42  ;;  %6447 = vpow2.f32 %v2418_v20 }
 0x791   : > { %5910 = vmatmul.mubr.msk.bf16.vlgmr.msra.gmra.mrb[60].mxu0 %vm1106_vm2, %v2462_v5 }
 0x792   : > { %5920 = vmatpush3.bf16.msra.mxu0 %v2671_v29  ;;  %5921 = vmatprep.mubr.msk.bf16.mxu0 %vm6870_vm1, %v6869_v49 }
 0x793   : > { %2962 = vrot.lane.b32.xlu0 %v7393_v10, %s6872_s18  ;;  %5931 = vmatprep.subr.bf16.mxu0 %v6869_v49 }
 0x797   : > { %2960 = vrot.lane.b32.xlu0 %v7416_v34, %s6872_s18 }
 0x799   : > { %v7835_v46 = vpop.eup %6447 }
 0x79a   : > { %v2441_v26 = vsel %vm1106_vm2, %v7835_v46, 0.0 }
 0x79b   : > { %3062 = vrot.lane.b32.xlu0 %v7423_v39, %s6872_s18 }
 0x79f   : > { %3060 = vrot.lane.b32.xlu0 %v7456_v54, %s6872_s18 }
 0x7a3   : > { %3162 = vrot.lane.b32.xlu0 %v7448_v51, %s6872_s18 }
 0x7a6   : > { %2442 = vadd.xlane.f32.xlu1 %v2441_v26 }
 0x7a7   : > { %3160 = vrot.lane.b32.xlu0 %v7487_v3, %s6872_s18 }
 0x7ab   : > { %3364 = vrot.lane.b32.xlu0 %v7483_v59, %s6872_s18 }
 0x7b7   : > { %2910 = vrot.lane.b32.xlu1 %v7458_v55, %s6872_s18 }
 0x7bb   : > { %3012 = vrot.lane.b32.xlu1 %v7446_v50, %s6872_s18 }
 0x7bf   : > { %3010 = vrot.lane.b32.xlu1 %v7489_v58, %s6872_s18 }
 0x7c1   : > { %v2425_v52 = vpop.xlane.xlu1 %2424 }
 0x7c2   : > { %6449 = vrcp.f32 %v2425_v52 }
 0x7c3   : > { %3112 = vrot.lane.b32.xlu1 %v7485_v2, %s6872_s18 }
 0x7c7   : > { %3110 = vrot.lane.b32.xlu1 %v7510_v8, %s6872_s18 }
 0x7c9   : > { %v2431_v38 = vpop.xlane.xlu1 %2430 }
 0x7ca   : > { %6451 = vrcp.f32 %v2431_v38 }
 0x7cb   : > { %3212 = vrot.lane.b32.xlu1 %v7508_v1, %s6872_s18 }
 0x7cc   : > { %v6450_v23 = vpop.eup %6449 }
 0x7cd   : > { %v2434_v25 = vpop.xlane.xlu0 %2433  ;;  %v2453_v40 = vmul.f32 %v6450_v23, %v7785_v15 }
 0x7ce   : > { %6453 = vrcp.f32 %v2434_v25 }
 0x7cf   : > { %3210 = vrot.lane.b32.xlu1 %v7524_v14, %s6872_s18  ;;  %v2461_v60 = vpack.c.bf16 %v2453_v40, %v2453_v40 }
 0x7d1   : > { %5904 = vmatmul.mubr.msk.bf16.vlgmr.msra.gmra.mrb[64].mxu1 %vm1106_vm2, %v2461_v60  ;;  %v2764_v63 = vpop.permute.xlu0 %2763 }
 0x7d2   : > { %5914 = vmatpush3.bf16.msra.mxu1 %v2622_v6  ;;  %5915 = vmatprep.mubr.msk.bf16.mxu1 %vm6870_vm1, %v6869_v49  ;;  %v2769_v19 = vsel %vm1582_vm3, %v2764_v63, 0 }
 0x7d3   : > { %3412 = vrot.lane.b32.xlu1 %v7522_v12, %s6872_s18  ;;  %5925 = vmatprep.subr.bf16.mxu1 %v6869_v49 }
 0x7d4   : > { %v6452_v15 = vpop.eup %6451 }
 0x7d5   : > { %v2455_v21 = vmul.f32 %v6452_v15, %v7789_v31 }
 0x7d7   : > { %3460 = vrot.lane.b32.xlu1 %v7611_v45, %s6872_s18  ;;  %v2463_v4 = vpack.c.bf16 %v2455_v21, %v2455_v21 }
 0x7d8   : > { %v6454_v56 = vpop.eup %6453 }
 0x7d9   : > { %5916 = vmatmul.mubr.msk.bf16.vlgmr.msra.gmra.mrb[68].mxu1 %vm1106_vm2, %v2463_v4  ;;  %v2456_v16 = vmul.f32 %v6454_v56, %v7793_v47  ;;  %v2813_v47 = vpop.permute.xlu1 %2812 }
 0x7da   : > { %5926 = vmatpush3.bf16.msra.mxu1 %v2720_v17  ;;  %5927 = vmatprep.mubr.msk.bf16.mxu1 %vm6870_vm1, %v6869_v49  ;;  %v2818_v29 = vsel %vm1582_vm3, %v2813_v47, 0 }
 0x7db   : > { %3508 = vrot.lane.b32.xlu1 %v7631_v18, %s6872_s18  ;;  %v2464_v31 = vpack.c.bf16 %v2456_v16, %v2456_v16  ;;  %5937 = vmatprep.subr.bf16.mxu1 %v6869_v49 }
 0x7dd   : > { %5922 = vmatmul.mubr.msk.bf16.vlgmr.msra.gmra.mrb[64].mxu0 %vm1106_vm2, %v2464_v31 }
 0x7de   : > { %5932 = vmatpush3.bf16.msra.mxu0 %v2769_v19  ;;  %5933 = vmatprep.mubr.msk.bf16.mxu0 %vm6870_vm1, %v6869_v49 }
 0x7df   : > { %5943 = vmatprep.subr.bf16.mxu0 %v6869_v49 }
 0x7fe   : > { %v2437_v24 = vpop.xlane.xlu1 %2436 }
 0x7ff   : > { %6455 = vrcp.f32 %v2437_v24 }
 0x802   : > { %v2440_v36 = vpop.xlane.xlu0 %2439  ;;  %v2913_v21 = vpop.permute.xlu1 %2912 }
 0x803   : > { %6457 = vrcp.f32 %v2440_v36  ;;  %v2918_v36 = vsel %vm1106_vm2, %v2913_v21, 0 }
 0x806   : > { %v2863_v27 = vpop.permute.xlu0 %2862 }
 0x807   : > { %v2868_v38 = vsel %vm1106_vm2, %v2863_v27, 0 }
 0x809   : > { %v6456_v33 = vpop.eup %6455 }
 0x80a   : > { %v2861_v35 = vpop.permute.xlu0 %2860  ;;  %v2457_v42 = vmul.f32 %v6456_v33, %v7802_v62 }
 0x80c   : > { %v2465_v5 = vpack.c.bf16 %v2457_v42, %v2457_v42 }
 0x80d   : > { %v6458_v41 = vpop.eup %6457 }
 0x80e   : > { %v2963_v20 = vpop.permute.xlu0 %2962  ;;  %5928 = vmatmul.mubr.msk.bf16.vlgmr.msra.gmra.mrb[72].mxu1 %vm1106_vm2, %v2465_v5  ;;  %v2458_v26 = vmul.f32 %v6458_v41, %v7806_v32 }
 0x80f   : > { %5938 = vmatpush3.bf16.msra.mxu1 %v2818_v29  ;;  %5939 = vmatprep.mubr.msk.bf16.mxu1 %vm6870_vm1, %v6869_v49  ;;  %v2968_v32 = vsel %vm1106_vm2, %v2963_v20, 0 }
 0x810   : > { %v2466_v52 = vpack.c.bf16 %v2458_v26, %v2458_v26  ;;  %5949 = vmatprep.subr.bf16.mxu1 %v6869_v49 }
 0x812   : > { %5934 = vmatmul.mubr.msk.bf16.vlgmr.msra.gmra.mrb[68].mxu0 %vm1106_vm2, %v2466_v52  ;;  %v2961_v62 = vpop.permute.xlu0 %2960 }
 0x813   : > { %5944 = vmatpush3.bf16.xpose.msra.mxu0 %v2868_v38  ;;  %5945 = vmatprep.mubr.msk.bf16.mxu0 %vm6870_vm1, %v6869_v49 }
 0x814   : > { %5955 = vmatprep.subr.bf16.mxu0 %v6869_v49 }
 0x816   : > { %v3063_v23 = vpop.permute.xlu0 %3062 }
 0x817   : > { %v3068_v40 = vsel %vm1106_vm2, %v3063_v23, 0 }
 0x81a   : > { %5946 = vmatmul.mubr.msk.bf16.vlgmr.msra.gmra.mrb[72].mxu0 %vm1106_vm2, %v2861_v35  ;;  %v3061_v25 = vpop.permute.xlu0 %3060 }
 0x81b   : > { %5956 = vmatpush3.bf16.xpose.msra.mxu0 %v2968_v32  ;;  %5957 = vmatprep.mubr.msk.bf16.mxu0 %vm6870_vm1, %v6869_v49 }
 0x81c   : > { %5967 = vmatprep.subr.bf16.mxu0 %v6869_v49 }
 0x81e   : > { %v3163_v60 = vpop.permute.xlu0 %3162 }
 0x81f   : > { %v3168_v15 = vsel %vm1106_vm2, %v3163_v60, 0 }
 0x822   : > { %5958 = vmatmul.mubr.msk.bf16.vlgmr.msra.gmra.mrb[76].mxu0 %vm1106_vm2, %v2961_v62  ;;  %v3161_v6 = vpop.permute.xlu0 %3160 }
 0x823   : > { %5968 = vmatpush3.bf16.xpose.msra.mxu0 %v3068_v40  ;;  %5969 = vmatprep.mubr.msk.bf16.mxu0 %vm6870_vm1, %v6869_v49 }
 0x824   : > { %5979 = vmatprep.subr.bf16.mxu0 %v6869_v49 }
 0x826   : > { %v3365_v4 = vpop.permute.xlu0 %3364 }
 0x827   : > { %v3370_v56 = vsel %vm1582_vm3, %v3365_v4, 0 }
 0x82a   : > { %5970 = vmatmul.mubr.msk.bf16.vlgmr.msra.gmra.mrb[80].mxu0 %vm1106_vm2, %v3061_v25 }
 0x82b   : > { %5980 = vmatpush3.bf16.xpose.msra.mxu0 %v3168_v15  ;;  %5981 = vmatprep.mubr.msk.bf16.mxu0 %vm6870_vm1, %v6869_v49 }
 0x82c   : > { %5991 = vmatprep.subr.bf16.mxu0 %v6869_v49 }
 0x832   : > { %5982 = vmatmul.mubr.msk.bf16.vlgmr.msra.gmra.mrb[84].mxu0 %vm1106_vm2, %v3161_v6 }
 0x833   : > { %5992 = vmatpush3.bf16.msra.mxu0 %v3370_v56  ;;  %v2443_v17 = vpop.xlane.xlu1 %2442  ;;  %5993 = vmatprep.mubr.msk.bf16.mxu0 %vm6870_vm1, %v6869_v49 }
 0x834   : > { %6459 = vrcp.f32 %v2443_v17  ;;  %6003 = vmatprep.subr.bf16.mxu0 %v6869_v49 }
 0x837   : > { %v2911_v16 = vpop.permute.xlu1 %2910 }
 0x83b   : > { %v3013_v63 = vpop.permute.xlu1 %3012 }
 0x83c   : > { %v3018_v33 = vsel %vm1106_vm2, %v3013_v63, 0 }
 0x83e   : > { %v6460_v31 = vpop.eup %6459 }
 0x83f   : > { %v2459_v19 = vmul.f32 %v6460_v31, %v7835_v46  ;;  %v3011_v24 = vpop.permute.xlu1 %3010 }
 0x841   : > { %v2467_v47 = vpack.c.bf16 %v2459_v19, %v2459_v19 }
 0x843   : > { %5940 = vmatmul.mubr.msk.bf16.vlgmr.msra.gmra.mrb[76].mxu1 %vm1106_vm2, %v2467_v47  ;;  %v3113_v27 = vpop.permute.xlu1 %3112 }
 0x844   : > { %5950 = vmatpush3.bf16.xpose.msra.mxu1 %v2918_v36  ;;  %5951 = vmatprep.mubr.msk.bf16.mxu1 %vm6870_vm1, %v6869_v49  ;;  %v3118_v35 = vsel %vm1106_vm2, %v3113_v27, 0 }
 0x845   : > { %5961 = vmatprep.subr.bf16.mxu1 %v6869_v49 }
 0x847   : > { %v3111_v46 = vpop.permute.xlu1 %3110 }
 0x84b   : > { %5952 = vmatmul.mubr.msk.bf16.vlgmr.msra.gmra.mrb[80].mxu1 %vm1106_vm2, %v2911_v16  ;;  %v3213_v42 = vpop.permute.xlu1 %3212 }
 0x84c   : > { %5962 = vmatpush3.bf16.xpose.msra.mxu1 %v3018_v33  ;;  %5963 = vmatprep.mubr.msk.bf16.mxu1 %vm6870_vm1, %v6869_v49  ;;  %v3218_v41 = vsel %vm1106_vm2, %v3213_v42, 0 }
 0x84d   : > { %5973 = vmatprep.subr.bf16.mxu1 %v6869_v49 }
 0x84f   : > { %v3211_v5 = vpop.permute.xlu1 %3210 }
 0x853   : > { %5964 = vmatmul.mubr.msk.bf16.vlgmr.msra.gmra.mrb[84].mxu1 %vm1106_vm2, %v3011_v24  ;;  %v3413_v38 = vpop.permute.xlu1 %3412 }
 0x854   : > { %5974 = vmatpush3.bf16.xpose.msra.mxu1 %v3118_v35  ;;  %5975 = vmatprep.mubr.msk.bf16.mxu1 %vm6870_vm1, %v6869_v49  ;;  %v3418_v62 = vsel %vm1582_vm3, %v3413_v38, 0 }
 0x855   : > { %5985 = vmatprep.subr.bf16.mxu1 %v6869_v49 }
 0x85b   : > { %5976 = vmatmul.mubr.msk.bf16.vlgmr.msra.gmra.mrb[88].mxu1 %vm1106_vm2, %v3111_v46 }
 0x85c   : > { %5986 = vmatpush3.bf16.xpose.msra.mxu1 %v3218_v41  ;;  %v7934_v29 = vpop.f32.mrb[56].mxu0  ;;  %5987 = vmatprep.mubr.msk.bf16.mxu1 %vm6870_vm1, %v6869_v49 }
 0x85d   : > { %v5899_v20 = vpop.f32.mrb[57].mxu0  ;;  %5997 = vmatprep.subr.bf16.mxu1 %v6869_v49 }
 0x85e   : > { %v2514_v26 = vpop.f32.mrb[58].mxu0 }
 0x85f   : > { %v5900_v52 = vpop.f32.mrb[59].mxu0 }
 0x863   : > { %5988 = vmatmul.mubr.msk.bf16.vlgmr.msra.gmra.mrb[92].mxu1 %vm1106_vm2, %v3211_v5 }
 0x864   : > { %5998 = vmatpush3.bf16.msra.mxu1 %v3418_v62  ;;  %v7941_v23 = vpop.f32.mrb[60].mxu0  ;;  %5999 = vmatprep.mubr.msk.bf16.mxu1 %vm6870_vm1, %v6869_v49 }
 0x865   : > { %v5911_v32 = vpop.f32.mrb[61].mxu0  ;;  %6009 = vmatprep.subr.bf16.mxu1 %v6869_v49 }
 0x866   : > { %v2612_v25 = vpop.f32.mrb[62].mxu0 }
 0x867   : > { %v5912_v40 = vpop.f32.mrb[63].mxu0 }
 0x8a4   : > { %v7946_v60 = vpop.f32.mrb[64].mxu1 }
 0x8a5   : > { %v6307_v6 = vpack.i.bf16 %v7946_v60, %v7934_v29  ;;  %v5905_v15 = vpop.f32.mrb[65].mxu1 }
 0x8a6   : > { %v2563_v21 = vpop.f32.mrb[66].mxu1 }
 0x8a7   : > { %v5906_v4 = vpop.f32.mrb[67].mxu1 }
 0x8ac   : > { %v7950_v56 = vpop.f32.mrb[68].mxu1 }
 0x8ad   : > { %v5917_v16 = vpop.f32.mrb[69].mxu1 }
 0x8ae   : > { %v2661_v63 = vpop.f32.mrb[70].mxu1 }
 0x8af   : > { %v5918_v31 = vpop.f32.mrb[71].mxu1 }
 0x8b0   : > { %v7954_v19 = vpop.f32.mrb[64].mxu0 }
 0x8b1   : > { %v5923_v47 = vpop.f32.mrb[65].mxu0 }
 0x8b2   : > { %v2710_v24 = vpop.f32.mrb[66].mxu0 }
 0x8b3   : > { %v5924_v36 = vpop.f32.mrb[67].mxu0 }
 0x8e1   : > { %v7956_v27 = vpop.f32.mrb[72].mxu1 }
 0x8e2   : > { %v5929_v46 = vpop.f32.mrb[73].mxu1 }
 0x8e3   : > { %v2759_v35 = vpop.f32.mrb[74].mxu1 }
 0x8e4   : > { %v5930_v42 = vpop.f32.mrb[75].mxu1 }
 0x8e5   : > { %v7960_v5 = vpop.f32.mrb[68].mxu0 }
 0x8e6   : > { %v5935_v41 = vpop.f32.mrb[69].mxu0 }
 0x8e7   : > { %v2808_v20 = vpop.f32.mrb[70].mxu0 }
 0x8e8   : > { %v5936_v26 = vpop.f32.mrb[71].mxu0 }
 0x8ed   : > { %v2904_v52 = vpop.f32.mrb[72].mxu0 }
 0x8ee   : > { %v7962_v38 = vmul.f32 0.35355338, %v2904_v52  ;;  %v5947_v62 = vpop.f32.mrb[73].mxu0 }
 0x8ef   : > { %v2907_v32 = vpop.f32.mrb[74].mxu0 }
 0x8f0   : > { %v5948_v25 = vpop.f32.mrb[75].mxu0  ;;  %v3268_v40 = vsel %vm1106_vm2, %v7962_v38, -inf }
 0x8f1   : > { %3269 = vmax.xlane.f32.xlu0 %v3268_v40 }
 0x8f5   : > { %v3004_v15 = vpop.f32.mrb[76].mxu0 }
 0x8f6   : > { %v3262_v21 = vmul.f32 0.35355338, %v3004_v15  ;;  %v5959_v4 = vpop.f32.mrb[77].mxu0 }
 0x8f7   : > { %v3007_v16 = vpop.f32.mrb[78].mxu0 }
 0x8f8   : > { %v5960_v63 = vpop.f32.mrb[79].mxu0  ;;  %v3274_v31 = vsel %vm1106_vm2, %v3262_v21, -inf }
 0x8f9   : > { %3275 = vmax.xlane.f32.xlu0 %v3274_v31 }
 0x8fd   : > { %v3104_v47 = vpop.f32.mrb[80].mxu0 }
 0x8fe   : > { %v5971_v24 = vpop.f32.mrb[81].mxu0 }
 0x8ff   : > { %v3107_v36 = vpop.f32.mrb[82].mxu0 }
 0x900   : > { %v5972_v46 = vpop.f32.mrb[83].mxu0 }
 0x905   : > { %v3204_v35 = vpop.f32.mrb[84].mxu0 }
 0x906   : > { %v5983_v42 = vpop.f32.mrb[85].mxu0 }
 0x907   : > { %v3207_v41 = vpop.f32.mrb[86].mxu0 }
 0x908   : > { %v5984_v20 = vpop.f32.mrb[87].mxu0  ;;  %v3264_v41 = vmul.f32 0.35355338, %v3104_v47 }
 0x916   : > { %v7967_v26 = vpop.f32.mrb[76].mxu1 }
 0x917   : > { %v5941_v62 = vpop.f32.mrb[77].mxu1 }
 0x918   : > { %v2857_v32 = vpop.f32.mrb[78].mxu1  ;;  %v7973_v62 = vmul.f32 0.35355338, %v3204_v35 }
 0x919   : > { %v5942_v25 = vpop.f32.mrb[79].mxu1  ;;  %v3280_v32 = vsel %vm1106_vm2, %v3264_v41, -inf }
 0x91e   : > { %v2954_v40 = vpop.f32.mrb[80].mxu1 }
 0x91f   : > { %v3261_v15 = vmul.f32 0.35355338, %v2954_v40  ;;  %v5953_v4 = vpop.f32.mrb[81].mxu1 }
 0x920   : > { %v2957_v16 = vpop.f32.mrb[82].mxu1 }
 0x921   : > { %v5954_v63 = vpop.f32.mrb[83].mxu1  ;;  %v3271_v31 = vsel %vm1106_vm2, %v3261_v15, -inf }
 0x922   : > { %3272 = vmax.xlane.f32.xlu1 %v3271_v31  ;;  %v3286_v31 = vsel %vm1106_vm2, %v7973_v62, -inf }
 0x926   : > { %v3054_v24 = vpop.f32.mrb[84].mxu1 }
 0x927   : > { %v3263_v36 = vmul.f32 0.35355338, %v3054_v24  ;;  %v5965_v46 = vpop.f32.mrb[85].mxu1 }
 0x928   : > { %v3057_v42 = vpop.f32.mrb[86].mxu1 }
 0x929   : > { %v5966_v20 = vpop.f32.mrb[87].mxu1  ;;  %v3277_v17 = vsel %vm1106_vm2, %v3263_v36, -inf }
 0x92a   : > { %3278 = vmax.xlane.f32.xlu0 %v3277_v17 }
 0x92e   : > { %3281 = vmax.xlane.f32.xlu0 %v3280_v32  ;;  %v3154_v25 = vpop.f32.mrb[88].mxu1 }
 0x92f   : > { %v3265_v40 = vmul.f32 0.35355338, %v3154_v25  ;;  %v5977_v4 = vpop.f32.mrb[89].mxu1 }
 0x930   : > { %v3157_v16 = vpop.f32.mrb[90].mxu1 }
 0x931   : > { %v5978_v63 = vpop.f32.mrb[91].mxu1  ;;  %v3283_v24 = vsel %vm1106_vm2, %v3265_v40, -inf }
 0x932   : > { %3287 = vmax.xlane.f32.xlu0 %v3286_v31  ;;  %3284 = vmax.xlane.f32.xlu1 %v3283_v24 }
 0x936   : > { %v3254_v47 = vpop.f32.mrb[92].mxu1 }
 0x937   : > { %v5989_v46 = vpop.f32.mrb[93].mxu1  ;;  %v7983_v42 = vmul.f32 0.35355338, %v3254_v47 }
 0x938   : > { %v3257_v17 = vpop.f32.mrb[94].mxu1 }
 0x939   : > { %v5990_v35 = vpop.f32.mrb[95].mxu1  ;;  %v3289_v20 = vsel %vm1106_vm2, %v7983_v42, -inf }
 0x93a   : > { %v3461_v35 = vpop.permute.xlu1 %3460 }
 0x943   : > { %3604 = vrot.lane.b32.xlu1 %v7657_v9, %s6872_s18 }
 0x948   : > { %3556 = vrot.lane.b32.xlu0 %v7627_v61, %s6872_s18 }
 0x967   : > { %3290 = vmax.xlane.f32.xlu1 %v3289_v20 }
 0x97e   : > { %v3270_v32 = vpop.xlane.xlu0 %3269 }
 0x97f   : > { %v3292_v25 = vsub.f32 %v7962_v38, %v3270_v32  ;;  %v7996_v38 = vpop.permute.xlu1 %3508 }
 0x981   : > { %v3300_v4 = vmul.f32 1.442695, %v3292_v25 }
 0x983   : > { %6461 = vpow2.f32 %v3300_v4 }
 0x986   : > { %v3276_v16 = vpop.xlane.xlu0 %3275 }
 0x987   : > { %v3294_v63 = vsub.f32 %v3262_v21, %v3276_v16 }
 0x989   : > { %v3304_v31 = vmul.f32 1.442695, %v3294_v63 }
 0x98b   : > { %6463 = vpow2.f32 %v3304_v31 }
 0x98d   : > { %v7988_v24 = vpop.eup %6461 }
 0x98e   : > { %v3316_v46 = vsel %vm1106_vm2, %v7988_v24, 0.0 }
 0x98f   : > { %3317 = vadd.xlane.f32.xlu0 %v3316_v46 }
 0x995   : > { %v7992_v47 = vpop.eup %6463 }
 0x996   : > { %v3322_v17 = vsel %vm1106_vm2, %v7992_v47, 0.0 }
 0x997   : > { %3323 = vadd.xlane.f32.xlu0 %v3322_v17 }
 0x9af   : > { %v3273_v20 = vpop.xlane.xlu1 %3272 }
 0x9b0   : > { %v3293_v32 = vsub.f32 %v3261_v15, %v3273_v20 }
 0x9b2   : > { %v3302_v21 = vmul.f32 1.442695, %v3293_v32 }
 0x9b4   : > { %6465 = vpow2.f32 %v3302_v21 }
 0x9b7   : > { %v3279_v25 = vpop.xlane.xlu0 %3278 }
 0x9b8   : > { %v3295_v4 = vsub.f32 %v3263_v36, %v3279_v25 }
 0x9ba   : > { %v3306_v16 = vmul.f32 1.442695, %v3295_v4 }
 0x9bb   : > { %v3282_v63 = vpop.xlane.xlu0 %3281 }
 0x9bc   : > { %6467 = vpow2.f32 %v3306_v16  ;;  %v3296_v31 = vsub.f32 %v3264_v41, %v3282_v63 }
 0x9be   : > { %v7998_v46 = vpop.eup %6465  ;;  %v3308_v52 = vmul.f32 1.442695, %v3296_v31 }
 0x9bf   : > { %v3319_v33 = vsel %vm1106_vm2, %v7998_v46, 0.0  ;;  %v3288_v41 = vpop.xlane.xlu0 %3287 }
 0x9c0   : > { %6469 = vpow2.f32 %v3308_v52  ;;  %3320 = vadd.xlane.f32.xlu1 %v3319_v33  ;;  %v3285_v52 = vpop.xlane.xlu1 %3284  ;;  %v3298_v32 = vsub.f32 %v7973_v62, %v3288_v41 }
 0x9c1   : > { %v3297_v33 = vsub.f32 %v3265_v40, %v3285_v52 }
 0x9c2   : > { %v3312_v25 = vmul.f32 1.442695, %v3298_v32 }
 0x9c3   : > { %v3310_v21 = vmul.f32 1.442695, %v3297_v33  ;;  %v3557_v40 = vpop.permute.xlu0 %3556 }
 0x9c4   : > { %v3605_v62 = vpop.permute.xlu1 %3604 }
 0x9c5   : > { %6471 = vpow2.f32 %v3310_v21  ;;  %v3610_v21 = vsel %vm1582_vm3, %v3605_v62, 0 }
 0x9c6   : > { %v8002_v17 = vpop.eup %6467  ;;  %6473 = vpow2.f32 %v3312_v25 }
 0x9c7   : > { %v3325_v15 = vsel %vm1106_vm2, %v8002_v17, 0.0 }
 0x9c8   : > { %3326 = vadd.xlane.f32.xlu1 %v3325_v15 }
 0x9ca   : > { %v8006_v20 = vpop.eup %6469 }
 0x9cb   : > { %v3328_v36 = vsel %vm1106_vm2, %v8006_v20, 0.0 }
 0x9cc   : > { %3329 = vadd.xlane.f32.xlu0 %v3328_v36 }
 0x9cf   : > { %v8015_v4 = vpop.eup %6471 }
 0x9d0   : > { %v3331_v16 = vsel %vm1106_vm2, %v8015_v4, 0.0  ;;  %v8019_v63 = vpop.eup %6473 }
 0x9d1   : > { %v3334_v31 = vsel %vm1106_vm2, %v8019_v63, 0.0 }
 0x9d9   : > { %3700 = vrot.lane.b32.xlu1 %v7689_v43, %s6872_s18 }
 0x9e2   : > { %3652 = vrot.lane.b32.xlu0 %v7651_v7, %s6872_s18  ;;  %s654_s18 = scalar_lea.vmem [#allocation16], %s5421_s9 }
 0x9e3   : > { %s5267_s9 = sshll.u32 %s654_s18, 4  ;;  %s8515_s9 = int_to_ptr.vmem [resolvable:$true] %s5267_s9 }
 0x9f4   : > { %v3291_v15 = vpop.xlane.xlu1 %3290 }
 0x9f5   : > { %v3299_v36 = vsub.f32 %v7983_v42, %v3291_v15  ;;  %v3466_v42 = vsel %vm1582_vm3, %v3461_v35, 0  ;;  %v3562_v35 = vsel %vm1582_vm3, %v3557_v40, 0 }
 0x9f7   : > { %v3314_v33 = vmul.f32 1.442695, %v3299_v36 }
 0x9fd   : > { %3332 = vadd.xlane.f32.xlu1 %v3331_v16 }
 0xa01   : > { %3335 = vadd.xlane.f32.xlu0 %v3334_v31 }
 0xa0e   : > { %3800 = vrot.lane.b32.xlu1 %v7413_v30, %s6873_s4 }
 0xa17   : > { %3750 = vrot.lane.b32.xlu0 %v7395_v13, %s6873_s4 }
 0xa1b   : > { %3748 = vrot.lane.b32.xlu0 %v7421_v37, %s6873_s4 }
 0xa1c   : > { %v3318_v52 = vpop.xlane.xlu0 %3317 }
 0xa1d   : > { %6475 = vrcp.f32 %v3318_v52 }
 0xa1e   : > { %6477 = vpow2.f32 %v3314_v33 }
 0xa1f   : > { %3850 = vrot.lane.b32.xlu0 %v7393_v10, %s6873_s4 }
 0xa23   : > { %3848 = vrot.lane.b32.xlu0 %v7416_v34, %s6873_s4 }
 0xa24   : > { %v3324_v30 = vpop.xlane.xlu0 %3323 }
 0xa25   : > { %6479 = vrcp.f32 %v3324_v30 }
 0xa27   : > { %v6476_v13 = vpop.eup %6475  ;;  %3950 = vrot.lane.b32.xlu0 %v7423_v39, %s6873_s4 }
 0xa28   : > { %v3348_v37 = vmul.f32 %v6476_v13, %v7988_v24  ;;  %v8043_v10 = vpop.eup %6477 }
 0xa2a   : > { %v3356_v41 = vpack.c.bf16 %v3348_v37, %v3348_v37 }
 0xa2b   : > { %3948 = vrot.lane.b32.xlu0 %v7456_v54, %s6873_s4  ;;  %v3337_v54 = vsel %vm1106_vm2, %v8043_v10, 0.0 }
 0xa2c   : > { %5994 = vmatmul.mubr.msk.bf16.vlgmr.msra.gmra.mrb[88].mxu0 %vm1106_vm2, %v3356_v41 }
 0xa2d   : > { %6004 = vmatpush3.bf16.msra.mxu0 %v3466_v42  ;;  %6005 = vmatprep.mubr.msk.bf16.mxu0 %vm6870_vm1, %v6869_v49 }
 0xa2e   : > { %6015 = vmatprep.subr.bf16.mxu0 %v6869_v49 }
 0xa2f   : > { %v6480_v34 = vpop.eup %6479  ;;  %4050 = vrot.lane.b32.xlu0 %v7448_v51, %s6873_s4 }
 0xa30   : > { %v3350_v39 = vmul.f32 %v6480_v34, %v7992_v47 }
 0xa32   : > { %3338 = vadd.xlane.f32.xlu1 %v3337_v54  ;;  %v3358_v24 = vpack.c.bf16 %v3350_v39, %v3350_v39 }
 0xa33   : > { %4048 = vrot.lane.b32.xlu0 %v7487_v3, %s6873_s4 }
 0xa34   : > { %6006 = vmatmul.mubr.msk.bf16.vlgmr.msra.gmra.mrb[92].mxu0 %vm1106_vm2, %v3358_v24 }
 0xa35   : > { %6016 = vmatpush3.bf16.msra.mxu0 %v3562_v35  ;;  %6017 = vmatprep.mubr.msk.bf16.mxu0 %vm6870_vm1, %v6869_v49 }
 0xa36   : > { %6027 = vmatprep.subr.bf16.mxu0 %v6869_v49 }
 0xa43   : > { %3798 = vrot.lane.b32.xlu1 %v7458_v55, %s6873_s4 }
 0xa47   : > { %3900 = vrot.lane.b32.xlu1 %v7446_v50, %s6873_s4 }
 0xa4b   : > { %3898 = vrot.lane.b32.xlu1 %v7489_v58, %s6873_s4 }
 0xa4d   : > { %v3321_v51 = vpop.xlane.xlu1 %3320 }
 0xa4e   : > { %6481 = vrcp.f32 %v3321_v51 }
 0xa4f   : > { %4000 = vrot.lane.b32.xlu1 %v7485_v2, %s6873_s4  ;;  %v3514_v2 = vsel %vm1582_vm3, %v7996_v38, 0 }
 0xa53   : > { %3998 = vrot.lane.b32.xlu1 %v7510_v8, %s6873_s4 }
 0xa55   : > { %v3327_v3 = vpop.xlane.xlu1 %3326 }
 0xa56   : > { %6483 = vrcp.f32 %v3327_v3 }
 0xa57   : > { %4100 = vrot.lane.b32.xlu1 %v7508_v1, %s6873_s4 }
 0xa58   : > { %v6482_v55 = vpop.eup %6481 }
 0xa59   : > { %v3349_v47 = vmul.f32 %v6482_v55, %v7998_v46  ;;  %v3330_v50 = vpop.xlane.xlu0 %3329 }
 0xa5a   : > { %6485 = vrcp.f32 %v3330_v50 }
 0xa5b   : > { %4098 = vrot.lane.b32.xlu1 %v7524_v14, %s6873_s4  ;;  %v3357_v58 = vpack.c.bf16 %v3349_v47, %v3349_v47 }
 0xa5d   : > { %6000 = vmatmul.mubr.msk.bf16.vlgmr.msra.gmra.mrb[96].mxu1 %vm1106_vm2, %v3357_v58  ;;  %v3653_v38 = vpop.permute.xlu0 %3652 }
 0xa5e   : > { %6010 = vmatpush3.bf16.msra.mxu1 %v3514_v2  ;;  %6011 = vmatprep.mubr.msk.bf16.mxu1 %vm6870_vm1, %v6869_v49  ;;  %v3658_v16 = vsel %vm1582_vm3, %v3653_v38, 0 }
 0xa5f   : > { %6021 = vmatprep.subr.bf16.mxu1 %v6869_v49 }
 0xa60   : > { %v6484_v1 = vpop.eup %6483 }
 0xa61   : > { %v3351_v8 = vmul.f32 %v6484_v1, %v8002_v17  ;;  %v3701_v17 = vpop.permute.xlu1 %3700 }
 0xa62   : > { %v3706_v30 = vsel %vm1582_vm3, %v3701_v17, 0 }
 0xa63   : > { %v3359_v46 = vpack.c.bf16 %v3351_v8, %v3351_v8 }
 0xa64   : > { %v6486_v32 = vpop.eup %6485 }
 0xa65   : > { %v3352_v14 = vmul.f32 %v6486_v32, %v8006_v20  ;;  %6012 = vmatmul.mubr.msk.bf16.vlgmr.msra.gmra.mrb[100].mxu1 %vm1106_vm2, %v3359_v46 }
 0xa66   : > { %6022 = vmatpush3.bf16.msra.mxu1 %v3610_v21  ;;  %6023 = vmatprep.mubr.msk.bf16.mxu1 %vm6870_vm1, %v6869_v49 }
 0xa67   : > { %v3360_v25 = vpack.c.bf16 %v3352_v14, %v3352_v14  ;;  %6033 = vmatprep.subr.bf16.mxu1 %v6869_v49 }
 0xa69   : > { %6018 = vmatmul.mubr.msk.bf16.vlgmr.msra.gmra.mrb[96].mxu0 %vm1106_vm2, %v3360_v25 }
 0xa6a   : > { %6028 = vmatpush3.bf16.msra.mxu0 %v3658_v16  ;;  %6029 = vmatprep.mubr.msk.bf16.mxu0 %vm6870_vm1, %v6869_v49 }
 0xa6b   : > { %6039 = vmatprep.subr.bf16.mxu0 %v6869_v49 }
 0xa8a   : > { %v3333_v20 = vpop.xlane.xlu1 %3332 }
 0xa8b   : > { %6487 = vrcp.f32 %v3333_v20 }
 0xa8e   : > { %v3336_v31 = vpop.xlane.xlu0 %3335  ;;  %v3801_v51 = vpop.permute.xlu1 %3800 }
 0xa8f   : > { %6489 = vrcp.f32 %v3336_v31  ;;  %v3806_v8 = vsel %vm1106_vm2, %v3801_v51, 0 }
 0xa92   : > { %v3751_v62 = vpop.permute.xlu0 %3750 }
 0xa93   : > { %v3756_v42 = vsel %vm1106_vm2, %v3751_v62, 0 }
 0xa95   : > { %v6488_v40 = vpop.eup %6487 }
 0xa96   : > { %v3353_v15 = vmul.f32 %v6488_v40, %v8015_v4  ;;  %v3749_v36 = vpop.permute.xlu0 %3748 }
 0xa98   : > { %v3361_v52 = vpack.c.bf16 %v3353_v15, %v3353_v15 }
 0xa99   : > { %v6490_v33 = vpop.eup %6489 }
 0xa9a   : > { %v3354_v13 = vmul.f32 %v6490_v33, %v8019_v63  ;;  %6024 = vmatmul.mubr.msk.bf16.vlgmr.msra.gmra.mrb[104].mxu1 %vm1106_vm2, %v3361_v52  ;;  %v3851_v37 = vpop.permute.xlu0 %3850 }
 0xa9b   : > { %6034 = vmatpush3.bf16.msra.mxu1 %v3706_v30  ;;  %6035 = vmatprep.mubr.msk.bf16.mxu1 %vm6870_vm1, %v6869_v49  ;;  %v3856_v63 = vsel %vm1106_vm2, %v3851_v37, 0 }
 0xa9c   : > { %v3362_v41 = vpack.c.bf16 %v3354_v13, %v3354_v13  ;;  %6045 = vmatprep.subr.bf16.mxu1 %v6869_v49 }
 0xa9e   : > { %6030 = vmatmul.mubr.msk.bf16.vlgmr.msra.gmra.mrb[100].mxu0 %vm1106_vm2, %v3362_v41  ;;  %v3849_v4 = vpop.permute.xlu0 %3848 }
 0xa9f   : > { %6040 = vmatpush3.bf16.xpose.msra.mxu0 %v3756_v42  ;;  %6041 = vmatprep.mubr.msk.bf16.mxu0 %vm6870_vm1, %v6869_v49 }
 0xaa0   : > { %6051 = vmatprep.subr.bf16.mxu0 %v6869_v49 }
 0xaa2   : > { %v3951_v34 = vpop.permute.xlu0 %3950 }
 0xaa3   : > { %v3956_v54 = vsel %vm1106_vm2, %v3951_v34, 0 }
 0xaa6   : > { %6042 = vmatmul.mubr.msk.bf16.vlgmr.msra.gmra.mrb[104].mxu0 %vm1106_vm2, %v3749_v36  ;;  %v3949_v39 = vpop.permute.xlu0 %3948 }
 0xaa7   : > { %6052 = vmatpush3.bf16.xpose.msra.mxu0 %v3856_v63  ;;  %6053 = vmatprep.mubr.msk.bf16.mxu0 %vm6870_vm1, %v6869_v49 }
 0xaa8   : > { %6063 = vmatprep.subr.bf16.mxu0 %v6869_v49 }
 0xaaa   : > { %v4051_v24 = vpop.permute.xlu0 %4050 }
 0xaab   : > { %v4056_v35 = vsel %vm1106_vm2, %v4051_v24, 0 }
 0xaae   : > { %6054 = vmatmul.mubr.msk.bf16.vlgmr.msra.gmra.mrb[108].mxu0 %vm1106_vm2, %v3849_v4  ;;  %v4049_v3 = vpop.permute.xlu0 %4048 }
 0xaaf   : > { %6064 = vmatpush3.bf16.xpose.msra.mxu0 %v3956_v54  ;;  %6065 = vmatprep.mubr.msk.bf16.mxu0 %vm6870_vm1, %v6869_v49 }
 0xab0   : > { %6075 = vmatprep.subr.bf16.mxu0 %v6869_v49 }
 0xab6   : > { %6066 = vmatmul.mubr.msk.bf16.vlgmr.msra.gmra.mrb[112].mxu0 %vm1106_vm2, %v3949_v39 }
 0xab7   : > { %6076 = vmatpush3.bf16.xpose.msra.mxu0 %v4056_v35  ;;  %6077 = vmatprep.mubr.msk.bf16.mxu0 %vm6870_vm1, %v6869_v49 }
 0xab8   : > { %6087 = vmatprep.subr.bf16.mxu0 %v6869_v49 }
 0xabe   : > { %6078 = vmatmul.mubr.msk.bf16.vlgmr.msra.gmra.mrb[116].mxu0 %vm1106_vm2, %v4049_v3 }
 0xabf   : > { %v3339_v55 = vpop.xlane.xlu1 %3338  ;;  %6089 = vmatprep.mubr.msk.bf16.mxu0 %vm6870_vm1, %v6869_v49 }
 0xac0   : > { %6491 = vrcp.f32 %v3339_v55 }
 0xac3   : > { %v3799_v47 = vpop.permute.xlu1 %3798 }
 0xac7   : > { %v3901_v2 = vpop.permute.xlu1 %3900 }
 0xac8   : > { %v3906_v32 = vsel %vm1106_vm2, %v3901_v2, 0 }
 0xaca   : > { %v6492_v50 = vpop.eup %6491 }
 0xacb   : > { %v3355_v58 = vmul.f32 %v6492_v50, %v8043_v10  ;;  %v3899_v46 = vpop.permute.xlu1 %3898 }
 0xacd   : > { %v3363_v1 = vpack.c.bf16 %v3355_v58, %v3355_v58 }
 0xacf   : > { %6036 = vmatmul.mubr.msk.bf16.vlgmr.msra.gmra.mrb[108].mxu1 %vm1106_vm2, %v3363_v1  ;;  %v4001_v21 = vpop.permute.xlu1 %4000 }
 0xad0   : > { %6046 = vmatpush3.bf16.xpose.msra.mxu1 %v3806_v8  ;;  %6047 = vmatprep.mubr.msk.bf16.mxu1 %vm6870_vm1, %v6869_v49  ;;  %v4006_v14 = vsel %vm1106_vm2, %v4001_v21, 0 }
 0xad1   : > { %6057 = vmatprep.subr.bf16.mxu1 %v6869_v49 }
 0xad3   : > { %v3999_v10 = vpop.permute.xlu1 %3998 }
 0xad7   : > { %6048 = vmatmul.mubr.msk.bf16.vlgmr.msra.gmra.mrb[112].mxu1 %vm1106_vm2, %v3799_v47  ;;  %v4101_v38 = vpop.permute.xlu1 %4100 }
 0xad8   : > { %6058 = vmatpush3.bf16.xpose.msra.mxu1 %v3906_v32  ;;  %6059 = vmatprep.mubr.msk.bf16.mxu1 %vm6870_vm1, %v6869_v49  ;;  %v4106_v25 = vsel %vm1106_vm2, %v4101_v38, 0 }
 0xad9   : > { %6069 = vmatprep.subr.bf16.mxu1 %v6869_v49 }
 0xadb   : > { %v4099_v16 = vpop.permute.xlu1 %4098 }
 0xadf   : > { %6060 = vmatmul.mubr.msk.bf16.vlgmr.msra.gmra.mrb[116].mxu1 %vm1106_vm2, %v3899_v46 }
 0xae0   : > { %6070 = vmatpush3.bf16.xpose.msra.mxu1 %v4006_v14  ;;  %6071 = vmatprep.mubr.msk.bf16.mxu1 %vm6870_vm1, %v6869_v49 }
 0xae1   : > { %6081 = vmatprep.subr.bf16.mxu1 %v6869_v49 }
 0xae7   : > { %6072 = vmatmul.mubr.msk.bf16.vlgmr.msra.gmra.mrb[120].mxu1 %vm1106_vm2, %v3999_v10 }
 0xae8   : > { %6082 = vmatpush3.bf16.xpose.msra.mxu1 %v4106_v25  ;;  %6083 = vmatprep.mubr.msk.bf16.mxu1 %vm6870_vm1, %v6869_v49 }
 0xae9   : > { %6093 = vmatprep.subr.bf16.mxu1 %v6869_v49 }
 0xaef   : > { %6084 = vmatmul.mubr.msk.bf16.vlgmr.msra.gmra.mrb[124].mxu1 %vm1106_vm2, %v4099_v16 }
 0xaf0   : > { %6095 = vmatprep.mubr.msk.bf16.mxu1 %vm6870_vm1, %v6869_v49 }
 0xaff   : > { %v8145_v17 = vpop.f32.mrb[88].mxu0 }
 0xb00   : > { %v5995_v20 = vpop.f32.mrb[89].mxu0 }
 0xb01   : > { %v3409_v31 = vpop.f32.mrb[90].mxu0 }
 0xb02   : > { %v5996_v62 = vpop.f32.mrb[91].mxu0 }
 0xb07   : > { %v8147_v40 = vpop.f32.mrb[92].mxu0 }
 0xb08   : > { %v6007_v15 = vpop.f32.mrb[93].mxu0 }
 0xb09   : > { %v3505_v36 = vpop.f32.mrb[94].mxu0 }
 0xb0a   : > { %v6008_v52 = vpop.f32.mrb[95].mxu0 }
 0xb30   : > { %v8149_v33 = vpop.f32.mrb[96].mxu1 }
 0xb31   : > { %v6317_v30 = vpack.i.bf16 %v8149_v33, %v8145_v17  ;;  %v6001_v13 = vpop.f32.mrb[97].mxu1 }
 0xb32   : > { %v3457_v37 = vpop.f32.mrb[98].mxu1 }
 0xb33   : > { %v6002_v41 = vpop.f32.mrb[99].mxu1 }
 0xb38   : > { %v8153_v42 = vpop.f32.mrb[100].mxu1 }
 0xb39   : > { %v6322_v4 = vpack.i.bf16 %v8153_v42, %v8147_v40  ;;  %v6013_v63 = vpop.f32.mrb[101].mxu1 }
 0xb3a   : > { %v3553_v34 = vpop.f32.mrb[102].mxu1 }
 0xb3b   : > { %v6014_v39 = vpop.f32.mrb[103].mxu1 }
 0xb3c   : > { %v8157_v54 = vpop.f32.mrb[96].mxu0 }
 0xb3d   : > { %v6019_v24 = vpop.f32.mrb[97].mxu0 }
 0xb3e   : > { %v3601_v35 = vpop.f32.mrb[98].mxu0 }
 0xb3f   : > { %v6020_v51 = vpop.f32.mrb[99].mxu0 }
 0xb6d   : > { %v8159_v3 = vpop.f32.mrb[104].mxu1 }
 0xb6e   : > { %v6342_v55 = vpack.i.bf16 %v8159_v3, %v8157_v54  ;;  %v6025_v47 = vpop.f32.mrb[105].mxu1 }
 0xb6f   : > { %v3649_v50 = vpop.f32.mrb[106].mxu1 }
 0xb70   : > { %v6026_v58 = vpop.f32.mrb[107].mxu1 }
 0xb71   : > { %v8163_v2 = vpop.f32.mrb[100].mxu0 }
 0xb72   : > { %v6031_v1 = vpop.f32.mrb[101].mxu0 }
 0xb73   : > { %v3697_v8 = vpop.f32.mrb[102].mxu0 }
 0xb74   : > { %v6032_v46 = vpop.f32.mrb[103].mxu0 }
 0xb79   : > { %v3792_v32 = vpop.f32.mrb[104].mxu0 }
 0xb7a   : > { %v8165_v21 = vmul.f32 0.35355338, %v3792_v32  ;;  %v6043_v10 = vpop.f32.mrb[105].mxu0 }
 0xb7b   : > { %v3795_v14 = vpop.f32.mrb[106].mxu0 }
 0xb7c   : > { %v6044_v38 = vpop.f32.mrb[107].mxu0  ;;  %v4156_v25 = vsel %vm1106_vm2, %v8165_v21, -inf }
 0xb7d   : > { %4157 = vmax.xlane.f32.xlu0 %v4156_v25 }
 0xb81   : > { %v3892_v16 = vpop.f32.mrb[108].mxu0 }
 0xb82   : > { %v8169_v20 = vmul.f32 0.35355338, %v3892_v16  ;;  %v6055_v31 = vpop.f32.mrb[109].mxu0 }
 0xb83   : > { %v3895_v62 = vpop.f32.mrb[110].mxu0 }
 0xb84   : > { %v6056_v15 = vpop.f32.mrb[111].mxu0  ;;  %v4162_v36 = vsel %vm1106_vm2, %v8169_v20, -inf }
 0xb85   : > { %4163 = vmax.xlane.f32.xlu0 %v4162_v36 }
 0xb89   : > { %v3992_v52 = vpop.f32.mrb[112].mxu0 }
 0xb8a   : > { %v6067_v13 = vpop.f32.mrb[113].mxu0  ;;  %v4152_v62 = vmul.f32 0.35355338, %v3992_v52 }
 0xb8b   : > { %v3995_v37 = vpop.f32.mrb[114].mxu0 }
 0xb8c   : > { %v6068_v41 = vpop.f32.mrb[115].mxu0  ;;  %v4168_v37 = vsel %vm1106_vm2, %v4152_v62, -inf }
 0xb91   : > { %v4092_v63 = vpop.f32.mrb[116].mxu0 }
 0xb92   : > { %v6079_v34 = vpop.f32.mrb[117].mxu0  ;;  %v4154_v13 = vmul.f32 0.35355338, %v4092_v63 }
 0xb93   : > { %v4095_v39 = vpop.f32.mrb[118].mxu0 }
 0xb94   : > { %v6080_v24 = vpop.f32.mrb[119].mxu0 }
 0xba2   : > { %v8173_v35 = vpop.f32.mrb[108].mxu1 }
 0xba3   : > { %v6352_v51 = vpack.i.bf16 %v8173_v35, %v8163_v2  ;;  %v6037_v47 = vpop.f32.mrb[109].mxu1 }
 0xba4   : > { %v3745_v50 = vpop.f32.mrb[110].mxu1 }
 0xba5   : > { %v6038_v58 = vpop.f32.mrb[111].mxu1  ;;  %v4174_v50 = vsel %vm1106_vm2, %v4154_v13, -inf }
 0xbaa   : > { %v3842_v1 = vpop.f32.mrb[112].mxu1 }
 0xbab   : > { %v4149_v8 = vmul.f32 0.35355338, %v3842_v1  ;;  %v6049_v46 = vpop.f32.mrb[113].mxu1 }
 0xbac   : > { %v3845_v32 = vpop.f32.mrb[114].mxu1 }
 0xbad   : > { %v6050_v10 = vpop.f32.mrb[115].mxu1  ;;  %v4159_v14 = vsel %vm1106_vm2, %v4149_v8, -inf }
 0xbae   : > { %4160 = vmax.xlane.f32.xlu1 %v4159_v14 }
 0xbb2   : > { %v3942_v38 = vpop.f32.mrb[116].mxu1 }
 0xbb3   : > { %v8178_v25 = vmul.f32 0.35355338, %v3942_v38  ;;  %v6061_v16 = vpop.f32.mrb[117].mxu1 }
 0xbb4   : > { %v3945_v31 = vpop.f32.mrb[118].mxu1 }
 0xbb5   : > { %v6062_v15 = vpop.f32.mrb[119].mxu1  ;;  %v4165_v36 = vsel %vm1106_vm2, %v8178_v25, -inf }
 0xbb6   : > { %4166 = vmax.xlane.f32.xlu0 %v4165_v36 }
 0xbba   : > { %4169 = vmax.xlane.f32.xlu0 %v4168_v37  ;;  %v4042_v41 = vpop.f32.mrb[120].mxu1 }
 0xbbb   : > { %v8183_v34 = vmul.f32 0.35355338, %v4042_v41  ;;  %v6073_v39 = vpop.f32.mrb[121].mxu1 }
 0xbbc   : > { %v4045_v24 = vpop.f32.mrb[122].mxu1 }
 0xbbd   : > { %v6074_v47 = vpop.f32.mrb[123].mxu1  ;;  %v4171_v52 = vsel %vm1106_vm2, %v8183_v34, -inf }
 0xbbe   : > { %4175 = vmax.xlane.f32.xlu0 %v4174_v50  ;;  %4172 = vmax.xlane.f32.xlu1 %v4171_v52 }
 0xbc2   : > { %v4142_v58 = vpop.f32.mrb[124].mxu1 }
 0xbc3   : > { %v6085_v1 = vpop.f32.mrb[125].mxu1  ;;  %v8194_v32 = vmul.f32 0.35355338, %v4142_v58 }
 0xbc4   : > { %v4145_v46 = vpop.f32.mrb[126].mxu1 }
 0xbc5   : > { %v6086_v63 = vpop.f32.mrb[127].mxu1  ;;  %v4177_v10 = vsel %vm1106_vm2, %v8194_v32, -inf }
 0xbcf   : > { %4300 = vrot.lane.b32.xlu1 %v7522_v12, %s6873_s4 }
 0xbd3   : > { %4348 = vrot.lane.b32.xlu1 %v7611_v45, %s6873_s4 }
 0xbd4   : > { %4252 = vrot.lane.b32.xlu0 %v7483_v59, %s6873_s4 }
 0xbf7   : > { %4178 = vmax.xlane.f32.xlu1 %v4177_v10 }
 0xc08   : > { %4396 = vrot.lane.b32.xlu1 %v7631_v18, %s6873_s4 }
 0xc0a   : > { %v4158_v14 = vpop.xlane.xlu0 %4157 }
 0xc0b   : > { %v4180_v38 = vsub.f32 %v8165_v21, %v4158_v14 }
 0xc0d   : > { %v4188_v16 = vmul.f32 1.442695, %v4180_v38 }
 0xc0f   : > { %6493 = vpow2.f32 %v4188_v16 }
 0xc12   : > { %v4164_v12 = vpop.xlane.xlu0 %4163 }
 0xc13   : > { %v4182_v45 = vsub.f32 %v8169_v20, %v4164_v12 }
 0xc15   : > { %v4192_v31 = vmul.f32 1.442695, %v4182_v45 }
 0xc17   : > { %6495 = vpow2.f32 %v4192_v31 }
 0xc19   : > { %v8202_v59 = vpop.eup %6493 }
 0xc1a   : > { %v4204_v15 = vsel %vm1106_vm2, %v8202_v59, 0.0 }
 0xc1b   : > { %4205 = vadd.xlane.f32.xlu0 %v4204_v15 }
 0xc21   : > { %v8206_v36 = vpop.eup %6495 }
 0xc22   : > { %v4210_v18 = vsel %vm1106_vm2, %v8206_v36, 0.0 }
 0xc23   : > { %4211 = vadd.xlane.f32.xlu0 %v4210_v18  ;;  %v8624_v18 = vpack.i.bf16 %v7950_v56, %v7941_v23 }
 0xc39   : > { %4444 = vrot.lane.b32.xlu0 %v7627_v61, %s6873_s4 }
 0xc3b   : > { %v4161_v21 = vpop.xlane.xlu1 %4160 }
 0xc3c   : > { %v4181_v37 = vsub.f32 %v4149_v8, %v4161_v21  ;;  %v8625_v21 = vpack.i.bf16 %v7967_v26, %v7960_v5 }
 0xc3e   : > { %v4190_v20 = vmul.f32 1.442695, %v4181_v37 }
 0xc40   : > { %6497 = vpow2.f32 %v4190_v20 }
 0xc43   : > { %v4167_v41 = vpop.xlane.xlu0 %4166 }
 0xc44   : > { %v4183_v12 = vsub.f32 %v8178_v25, %v4167_v41 }
 0xc46   : > { %v4194_v45 = vmul.f32 1.442695, %v4183_v12 }
 0xc47   : > { %v4170_v39 = vpop.xlane.xlu0 %4169 }
 0xc48   : > { %v4184_v24 = vsub.f32 %v4152_v62, %v4170_v39 }
 0xc4a   : > { %v8212_v47 = vpop.eup %6497  ;;  %v4196_v50 = vmul.f32 1.442695, %v4184_v24 }
 0xc4b   : > { %v4176_v52 = vpop.xlane.xlu0 %4175  ;;  %v4173_v58 = vpop.xlane.xlu1 %4172  ;;  %v4207_v1 = vsel %vm1106_vm2, %v8212_v47, 0.0 }
 0xc4c   : > { %6499 = vpow2.f32 %v4196_v50  ;;  %v4186_v46 = vsub.f32 %v4154_v13, %v4176_v52  ;;  %4208 = vadd.xlane.f32.xlu1 %v4207_v1  ;;  %v4185_v31 = vsub.f32 %v8183_v34, %v4173_v58 }
 0xc4e   : > { %v4200_v63 = vmul.f32 1.442695, %v4186_v46  ;;  %v4198_v15 = vmul.f32 1.442695, %v4185_v31 }
 0xc4f   : > { %v4253_v61 = vpop.permute.xlu0 %4252  ;;  %v4301_v10 = vpop.permute.xlu1 %4300 }
 0xc50   : > { %6501 = vpow2.f32 %v4200_v63  ;;  %v4258_v8 = vsel %vm1582_vm3, %v4253_v61, 0  ;;  %v4306_v14 = vsel %vm1582_vm3, %v4301_v10, 0 }
 0xc51   : > { %6088 = vmatpush3.bf16.msra.mxu0 %v4258_v8  ;;  %6094 = vmatpush3.bf16.msra.mxu1 %v4306_v14  ;;  %6503 = vpow2.f32 %v4194_v45 }
 0xc52   : > { %6099 = vmatprep.subr.bf16.mxu0 %v6869_v49  ;;  %6105 = vmatprep.subr.bf16.mxu1 %v6869_v49  ;;  %6505 = vpow2.f32 %v4198_v15 }
 0xc53   : > { %v4349_v25 = vpop.permute.xlu1 %4348 }
 0xc54   : > { %v4354_v41 = vsel %vm1582_vm3, %v4349_v25, 0 }
 0xc56   : > { %v8220_v62 = vpop.eup %6499 }
 0xc57   : > { %v4216_v13 = vsel %vm1106_vm2, %v8220_v62, 0.0 }
 0xc58   : > { %4217 = vadd.xlane.f32.xlu0 %v4216_v13 }
 0xc5a   : > { %v8224_v38 = vpop.eup %6501 }
 0xc5b   : > { %v4222_v16 = vsel %vm1106_vm2, %v8224_v38, 0.0 }
 0xc5c   : > { %4223 = vadd.xlane.f32.xlu0 %v4222_v16 }
 0xc5d   : > { %4492 = vrot.lane.b32.xlu1 %v7657_v9, %s6873_s4  ;;  %v8242_v9 = vpop.eup %6503 }
 0xc5e   : > { %v4213_v34 = vsel %vm1106_vm2, %v8242_v9, 0.0  ;;  %v8250_v29 = vpop.eup %6505 }
 0xc72   : > { %4540 = vrot.lane.b32.xlu0 %v7651_v7, %s6873_s4  ;;  %v8623_v7 = vpack.i.bf16 %v7956_v27, %v7954_v19 }
 0xc76   : > { %6308 = vrot.lane.b32.xlu0 %v6307_v6, %s8588_s28  ;;  %v4219_v6 = vsel %vm1106_vm2, %v8250_v29, 0.0 }
 0xc7a   : > { %6318 = vrot.lane.b32.xlu0 %v6317_v30, %s6875_s23 }
 0xc7e   : > { %6328 = vrot.lane.b32.xlu0 %v8623_v7, %s8588_s28 }
 0xc81   : > { %4214 = vadd.xlane.f32.xlu1 %v4213_v34 }
 0xc84   : > { %v4179_v60 = vpop.xlane.xlu1 %4178 }
 0xc85   : > { %v4187_v17 = vsub.f32 %v8194_v32, %v4179_v60  ;;  %4220 = vadd.xlane.f32.xlu1 %v4219_v6 }
 0xc87   : > { %v4202_v33 = vmul.f32 1.442695, %v4187_v17 }
 0xc88   : > { %v4397_v42 = vpop.permute.xlu1 %4396 }
 0xc89   : > { %6507 = vpow2.f32 %v4202_v33  ;;  %v4402_v50 = vsel %vm1582_vm3, %v4397_v42, 0 }
 0xc93   : > { %v8255_v30 = vpop.eup %6507 }
 0xc94   : > { %v4225_v19 = vsel %vm1106_vm2, %v8255_v30, 0.0 }
 0xc95   : > { %4226 = vadd.xlane.f32.xlu1 %v4225_v19 }
 0xca6   : > { %4588 = vrot.lane.b32.xlu1 %v7689_v43, %s6873_s4  ;;  %s8627_s4 = sld [smem:[#allocation29_spill]] }
 0xca8   : > { %v4206_v27 = vpop.xlane.xlu0 %4205 }
 0xca9   : > { %6509 = vrcp.f32 %v4206_v27 }
 0xcaa   : > { %6313 = vrot.lane.b32.xlu1 %v8624_v18, %s8588_s28 }
 0xcae   : > { %6323 = vrot.lane.b32.xlu1 %v6322_v4, %s6875_s23 }
 0xcb0   : > { %v4212_v32 = vpop.xlane.xlu0 %4211 }
 0xcb1   : > { %6511 = vrcp.f32 %v4212_v32 }
 0xcb2   : > { %6333 = vrot.lane.b32.xlu1 %v8625_v21, %s8588_s28  ;;  %s6775_s28 = scalar_lea.vmem %s8515_s9, 1024 }
 0xcb3   : > { %v6510_v43 = vpop.eup %6509  ;;  %p6776_p4 = scmp.ne.s32.totalorder %s8515_s9, %s6775_s28 }
 0xcb4   : > { %v4236_v37 = vmul.f32 %v6510_v43, %v8202_v59  ;;  %v4445_v40 = vpop.permute.xlu0 %4444 }
 0xcb5   : > { %v4450_v26 = vsel %vm1582_vm3, %v4445_v40, 0  ;;  %p6777_p1 = pnand %p6776_p4, %p8632_p13 }
 0xcb6   : > { %v4244_v20 = vpack.c.bf16 %v4236_v37, %v4236_v37  ;;  %v6373_v37 = vld [vmem:[%s8626_s19] sm:$0xff]  }
 0xcb7   : > { %p6778_p3 = pneg %p6777_p1 }
 0xcb8   : > { %6090 = vmatmul.mubr.msk.bf16.vlgmr.msra.gmra.mrb[120].mxu0 %vm1106_vm2, %v4244_v20 }
 0xcb9   : > { %6100 = vmatpush3.bf16.msra.mxu0 %v4354_v41  ;;  %6101 = vmatprep.mubr.msk.bf16.mxu0 %vm6870_vm1, %v6869_v49 }
 0xcba   : > { %6111 = vmatprep.subr.bf16.mxu0 %v6869_v49 }
 0xcbb   : > { %v6512_v23 = vpop.eup %6511 }
 0xcbc   : > { %v4238_v56 = vmul.f32 %v6512_v23, %v8206_v36 }
 0xcbe   : > { %v4246_v5 = vpack.c.bf16 %v4238_v56, %v4238_v56 }
 0xcc0   : > { %6102 = vmatmul.mubr.msk.bf16.vlgmr.msra.gmra.mrb[124].mxu0 %vm1106_vm2, %v4246_v5 }
 0xcc1   : > { %6112 = vmatpush3.bf16.msra.mxu0 %v4450_v26  ;;  %6113 = vmatprep.mubr.msk.bf16.mxu0 %vm6870_vm1, %v6869_v49 }
 0xcc2   : > { %6123 = vmatprep.subr.bf16.mxu0 %v6869_v49 }
 0xcd9   : > { %v4209_v4 = vpop.xlane.xlu1 %4208 }
 0xcda   : > { %6513 = vrcp.f32 %v4209_v4 }
 0xcdd   : > { %v4493_v14 = vpop.permute.xlu1 %4492 }
 0xcde   : > { %v4498_v15 = vsel %vm1582_vm3, %v4493_v14, 0 }
 0xce4   : > { %v6514_v59 = vpop.eup %6513 }
 0xce5   : > { %v4237_v39 = vmul.f32 %v6514_v59, %v8212_v47  ;;  %v4218_v24 = vpop.xlane.xlu0 %4217 }
 0xce6   : > { %6515 = vrcp.f32 %v4218_v24  ;;  %v6374_v24 = vld [vmem:[%s8626_s19 + $0x8] sm:$0xff]  }
 0xce7   : > { %v4245_v36 = vpack.c.bf16 %v4237_v39, %v4237_v39 }
 0xce9   : > { %v4224_v52 = vpop.xlane.xlu0 %4223  ;;  %6096 = vmatmul.mubr.msk.bf16.vlgmr.msra.gmra.mrb[128].mxu1 %vm1106_vm2, %v4245_v36 }
 0xcea   : > { %6517 = vrcp.f32 %v4224_v52  ;;  %6106 = vmatpush3.bf16.msra.mxu1 %v4402_v50  ;;  %6107 = vmatprep.mubr.msk.bf16.mxu1 %vm6870_vm1, %v6869_v49 }
 0xceb   : > { %6117 = vmatprep.subr.bf16.mxu1 %v6869_v49 }
 0xced   : > { %v4541_v46 = vpop.permute.xlu0 %4540 }
 0xcee   : > { %v4546_v61 = vsel %vm1582_vm3, %v4541_v46, 0 }
 0xcf0   : > { %v6516_v58 = vpop.eup %6515 }
 0xcf1   : > { %v4240_v1 = vmul.f32 %v6516_v58, %v8220_v62 }
 0xcf3   : > { %v4248_v47 = vpack.c.bf16 %v4240_v1, %v4240_v1 }
 0xcf4   : > { %v6518_v63 = vpop.eup %6517 }
 0xcf5   : > { %6114 = vmatmul.mubr.msk.bf16.vlgmr.msra.gmra.mrb[128].mxu0 %vm1106_vm2, %v4248_v47  ;;  %v4242_v10 = vmul.f32 %v6518_v63, %v8224_v38 }
 0xcf6   : > { %6124 = vmatpush3.bf16.msra.mxu0 %v4546_v61  ;;  %6125 = vmatprep.mubr.msk.bf16.mxu0 %vm6870_vm1, %v6869_v49 }
 0xcf7   : > { %v4250_v8 = vpack.c.bf16 %v4242_v10, %v4242_v10  ;;  %6135 = vmatprep.subr.bf16.mxu0 %v6373_v37 }
 0xcfd   : > { %6126 = vmatmul.mubr.msk.bf16.vlgmr.msra.gmra.mrb[132].mxu0 %vm1106_vm2, %v4250_v8 }
 0xcfe   : > { %6136 = vmatpush3.bf16.msra.mxu0 %v6373_v37 }
 0xcff   : > { %6137 = vmatprep.subr.bf16.mxu0 %v6374_v24 }
 0xd02   : > { %6138 = vmatpush3.bf16.msra.mxu0 %v6374_v24 }
 0xd0e   : > { %v4215_v13 = vpop.xlane.xlu1 %4214 }
 0xd0f   : > { %6519 = vrcp.f32 %v4215_v13  ;;  %v6309_v13 = vpop.permute.xlu0 %6308 }
 0xd10   : > { %v6310_v2 = vunpack.i.l.bf16 %v6309_v13 }
 0xd12   : > { %v4221_v62 = vpop.xlane.xlu1 %4220 }
 0xd13   : > { %6521 = vrcp.f32 %v4221_v62  ;;  %v6319_v62 = vpop.permute.xlu0 %6318 }
 0xd14   : > { %v6321_v35 = vunpack.i.h.bf16 %v6319_v62 }
 0xd19   : > { %v6520_v16 = vpop.eup %6519 }
 0xd1a   : > { %v4239_v12 = vmul.f32 %v6520_v16, %v8242_v9  ;;  %v6329_v16 = vpop.permute.xlu0 %6328 }
 0xd1c   : > { %v4247_v45 = vpack.c.bf16 %v4239_v12, %v4239_v12  ;;  %v6311_v12 = vunpack.i.h.bf16 %v6309_v13 }
 0xd1d   : > { %v6522_v31 = vpop.eup %6521 }
 0xd1e   : > { %6108 = vmatmul.mubr.msk.bf16.vlgmr.msra.gmra.mrb[132].mxu1 %vm1106_vm2, %v4247_v45  ;;  %v4241_v38 = vmul.f32 %v6522_v31, %v8250_v29  ;;  %v4733_v31 = vsel %vm1106_vm2, %v7743_v11, %v6311_v12 }
 0xd1f   : > { %6118 = vmatpush3.bf16.msra.mxu1 %v4498_v15  ;;  %6119 = vmatprep.mubr.msk.bf16.mxu1 %vm6870_vm1, %v6869_v49  ;;  %v4732_v15 = vsel %vm1106_vm2, %v7739_v0, %v6310_v2 }
 0xd20   : > { %6129 = vmatprep.subr.bf16.mxu1 %v6869_v49  ;;  %v4249_v25 = vpack.c.bf16 %v4241_v38, %v4241_v38 }
 0xd22   : > { %v4227_v7 = vpop.xlane.xlu1 %4226 }
 0xd23   : > { %6523 = vrcp.f32 %v4227_v7 }
 0xd26   : > { %6120 = vmatmul.mubr.msk.bf16.vlgmr.msra.gmra.mrb[136].mxu1 %vm1106_vm2, %v4249_v25  ;;  %v4589_v9 = vpop.permute.xlu1 %4588 }
 0xd27   : > { %v4594_v34 = vsel %vm1582_vm3, %v4589_v9, 0  ;;  %6131 = vmatprep.mubr.msk.bf16.mxu1 %vm6870_vm1, %v6869_v49  ;;  %v4742_v9 = vsel %vm4740_vm4, %v4733_v31, %v6321_v35 }
 0xd28   : > { %6130 = vmatpush3.bf16.msra.mxu1 %v4594_v34 }
 0xd2d   : > { %v6524_v60 = vpop.eup %6523 }
 0xd2e   : > { %v4243_v6 = vmul.f32 %v6524_v60, %v8255_v30 }
 0xd30   : > { %v4251_v17 = vpack.c.bf16 %v4243_v6, %v4243_v6 }
 0xd32   : > { %6132 = vmatmul.mubr.msk.bf16.vlgmr.msra.gmra.mrb[140].mxu1 %vm1106_vm2, %v4251_v17  ;;  %v6314_v17 = vpop.permute.xlu1 %6313 }
 0xd33   : > { %v6316_v11 = vunpack.i.h.bf16 %v6314_v17 }
 0xd8b   : > { %v4294_v29 = vpop.f32.mrb[120].mxu0 }
 0xd8c   : > { %v6091_v33 = vpop.f32.mrb[121].mxu0 }
 0xd8d   : > { %v4297_v19 = vpop.f32.mrb[122].mxu0 }
 0xd8e   : > { %v6092_v27 = vpop.f32.mrb[123].mxu0  ;;  %v6315_v19 = vunpack.i.l.bf16 %v6314_v17  ;;  %v6544_v17 = vld [vmem:[%s7248_s13 + $0x18] sm:$0xff] }
 0xd93   : > { %v4390_v18 = vpop.f32.mrb[124].mxu0 }
 0xd94   : > { %v6103_v32 = vpop.f32.mrb[125].mxu0 }
 0xd95   : > { %v4393_v21 = vpop.f32.mrb[126].mxu0  ;;  %v4735_v32 = vsel %vm1106_vm2, %v7747_v44, %v6316_v11 }
 0xd96   : > { %v6104_v43 = vpop.f32.mrb[127].mxu0  ;;  %v4734_v21 = vsel %vm1106_vm2, %v7741_v48, %v6315_v19 }
 0xdbc   : > { %v4342_v49 = vpop.f32.mrb[128].mxu1 }
 0xdbd   : > { %v6337_v20 = vpack.i.bf16 %v4342_v49, %v4294_v29  ;;  %v6097_v30 = vpop.f32.mrb[129].mxu1  ;;  %v6324_v29 = vpop.permute.xlu1 %6323 }
 0xdbe   : > { %v4345_v41 = vpop.f32.mrb[130].mxu1  ;;  %v6326_v27 = vunpack.i.h.bf16 %v6324_v29  ;;  %v6325_v0 = vunpack.i.l.bf16 %v6324_v29 }
 0xdbf   : > { %6338 = vrot.lane.b32.xlu0 %v6337_v20, %s6876_s16  ;;  %v6098_v23 = vpop.f32.mrb[131].mxu1 }
 0xdc0   : > { %v4743_v49 = vsel %vm4740_vm4, %v4734_v21, %v6325_v0  ;;  %v4744_v20 = vsel %vm4740_vm4, %v4735_v32, %v6326_v27 }
 0xdc1   : > { %v6334_v33 = vpop.permute.xlu1 %6333 }
 0xdc3   : > { %6343 = vrot.lane.b32.xlu0 %v6342_v55, %s6875_s23 }
 0xdc8   : > { %v4486_v56 = vpop.f32.mrb[128].mxu0 }
 0xdc9   : > { %v6115_v40 = vpop.f32.mrb[129].mxu0 }
 0xdca   : > { %v4489_v5 = vpop.f32.mrb[130].mxu0  ;;  %v6331_v40 = vunpack.i.h.bf16 %v6329_v16 }
 0xdcb   : > { %v6116_v26 = vpop.f32.mrb[131].mxu0  ;;  %v6330_v5 = vunpack.i.l.bf16 %v6329_v16 }
 0xdcc   : > { %v4737_v48 = vsel %vm1106_vm2, %v7757_v57, %v6331_v40 }
 0xdd0   : > { %v4582_v42 = vpop.f32.mrb[132].mxu0 }
 0xdd1   : > { %v6127_v4 = vpop.f32.mrb[133].mxu0 }
 0xdd2   : > { %v4585_v59 = vpop.f32.mrb[134].mxu0  ;;  %v4736_v4 = vsel %vm1106_vm2, %v7745_v22, %v6330_v5  ;;  %v6548_v5 = vld [vmem:[%s7248_s13 + $0x38] sm:$0xff] }
 0xdd3   : > { %v6128_v39 = vpop.f32.mrb[135].mxu0 }
 0xdf1   : > { %v4438_v36 = vpop.f32.mrb[132].mxu1 }
 0xdf2   : > { %v6347_v50 = vpack.i.bf16 %v4438_v36, %v4390_v18  ;;  %v6109_v52 = vpop.f32.mrb[133].mxu1 }
 0xdf3   : > { %v4441_v58 = vpop.f32.mrb[134].mxu1 }
 0xdf4   : > { %6348 = vrot.lane.b32.xlu1 %v6347_v50, %s6876_s16  ;;  %v6110_v54 = vpop.f32.mrb[135].mxu1 }
 0xdf8   : > { %6353 = vrot.lane.b32.xlu1 %v6352_v51, %s6875_s23  ;;  %v6320_v51 = vunpack.i.l.bf16 %v6319_v62  ;;  %s5548_s23 = sshll.u32 %s6990_s0, 10 }
 0xdf9   : > { %v4534_v3 = vpop.f32.mrb[136].mxu1 }
 0xdfa   : > { %v6357_v55 = vpack.i.bf16 %v4534_v3, %v4486_v56  ;;  %v6121_v1 = vpop.f32.mrb[137].mxu1  ;;  %v4741_v25 = vsel %vm4740_vm4, %v4732_v15, %v6320_v51  ;;  %v6336_v3 = vunpack.i.h.bf16 %v6334_v33 }
 0xdfb   : > { %v4537_v46 = vpop.f32.mrb[138].mxu1 }
 0xdfc   : > { %6358 = vrot.lane.b32.xlu0 %v6357_v55, %s6876_s16  ;;  %v6122_v47 = vpop.f32.mrb[139].mxu1  ;;  %v6335_v55 = vunpack.i.l.bf16 %v6334_v33  ;;  %v4739_v22 = vsel %vm1106_vm2, %v7761_v28, %v6336_v3  ;;  %v5517_v28 = vld [vmem:[#allocation11] ss:$0 sm:$0xff] }
 0xdfe   : > { %v4738_v47 = vsel %vm1106_vm2, %v7749_v53, %v6335_v55 }
 0xe05   : > { %v4630_v63 = vpop.f32.mrb[140].mxu1 }
 0xe06   : > { %v6362_v61 = vpack.i.bf16 %v4630_v63, %v4582_v42  ;;  %v6133_v10 = vpop.f32.mrb[141].mxu1 }
 0xe07   : > { %v4633_v8 = vpop.f32.mrb[142].mxu1 }
 0xe08   : > { %6363 = vrot.lane.b32.xlu1 %v6362_v61, %s6876_s16  ;;  %v6134_v14 = vpop.f32.mrb[143].mxu1  ;;  %s8629_s16 = sld [smem:[#allocation30_spill]] }
 0xe31   : > { %v6339_v45 = vpop.permute.xlu0 %6338 }
 0xe32   : > { %v6341_v38 = vunpack.i.h.bf16 %v6339_v45  ;;  %v6340_v7 = vunpack.i.l.bf16 %v6339_v45  ;;  %v6541_v45 = vld [vmem:[%s7248_s13] sm:$0xff] }
 0xe34   : > { %v4751_v34 = vsel %vm4749_vm5, %v4742_v9, %v6341_v38  ;;  %v4750_v60 = vsel %vm4749_vm5, %v4741_v25, %v6340_v7  ;;  %v6542_v38 = vld [vmem:[%s7248_s13 + $0x10] sm:$0xff]  ;;  %v6543_v9 = vld [vmem:[%s7248_s13 + $0x8] sm:$0xff] }
 0xe35   : > { %v4758_v6 = vpack.c.bf16 %v4751_v34, %v4750_v60  ;;  %v6344_v30 = vpop.permute.xlu0 %6343 }
 0xe36   : > { %v6346_v26 = vunpack.i.h.bf16 %v6344_v30  ;;  %v6345_v42 = vunpack.i.l.bf16 %v6344_v30  ;;  %v6546_v30 = vld [vmem:[%s7248_s13 + $0x30] sm:$0xff] }
 0xe37   : > { %6139 = vmatprep.mubr.msk.bf16.mxu0 %vm668_vm0, %v4758_v6 }
 0xe38   : > { %v4746_v24 = vsel %vm4740_vm4, %v4737_v48, %v6346_v26  ;;  %v4745_v36 = vsel %vm4740_vm4, %v4736_v4, %v6345_v42 }
 0xe66   : > { %v6349_v18 = vpop.permute.xlu1 %6348 }
 0xe67   : > { %v6351_v43 = vunpack.i.h.bf16 %v6349_v18  ;;  %v6350_v37 = vunpack.i.l.bf16 %v6349_v18 }
 0xe69   : > { %v4753_v41 = vsel %vm4749_vm5, %v4744_v20, %v6351_v43  ;;  %v4752_v23 = vsel %vm4749_vm5, %v4743_v49, %v6350_v37  ;;  %v6545_v43 = vld [vmem:[%s7248_s13 + $0x20] sm:$0xff] }
 0xe6a   : > { %v4759_v56 = vpack.c.bf16 %v4753_v41, %v4752_v23  ;;  %v6354_v54 = vpop.permute.xlu1 %6353  ;;  %v6547_v23 = vld [vmem:[%s7248_s13 + $0x28] sm:$0xff]  ;;  %s8630_s13 = sld [smem:[#allocation32_spill]] }
 0xe6b   : > { %v6356_v57 = vunpack.i.h.bf16 %v6354_v54  ;;  %v6355_v1 = vunpack.i.l.bf16 %v6354_v54 }
 0xe6c   : > { %6140 = vmatmul.mubr.msk.bf16.vlgmr.msra.gmra.mrb[136].mxu0 %vm668_vm0, %v4759_v56 }
 0xe6d   : > { %v4748_v10 = vsel %vm4740_vm4, %v4739_v22, %v6356_v57  ;;  %v4747_v8 = vsel %vm4740_vm4, %v4738_v47, %v6355_v1 }
 0xe6e   : > { %v6359_v44 = vpop.permute.xlu0 %6358 }
 0xe6f   : > { %v6361_v59 = vunpack.i.h.bf16 %v6359_v44  ;;  %v6360_v39 = vunpack.i.l.bf16 %v6359_v44 }
 0xe71   : > { %v4755_v50 = vsel %vm4749_vm5, %v4746_v24, %v6361_v59  ;;  %v4754_v52 = vsel %vm4749_vm5, %v4745_v36, %v6360_v39 }
 0xe72   : > { %v4760_v58 = vpack.c.bf16 %v4755_v50, %v4754_v52 }
 0xe74   : > { %6143 = vmatprep.mubr.msk.bf16.mxu0 %vm668_vm0, %v4760_v58 }
 0xe7a   : > { %v6364_v46 = vpop.permute.xlu1 %6363 }
 0xe7b   : > { %v6366_v63 = vunpack.i.h.bf16 %v6364_v46  ;;  %v6365_v61 = vunpack.i.l.bf16 %v6364_v46 }
 0xe7d   : > { %v4757_v14 = vsel %vm4749_vm5, %v4748_v10, %v6366_v63  ;;  %v4756_v13 = vsel %vm4749_vm5, %v4747_v8, %v6365_v61 }
 0xe7e   : > { %v4761_v62 = vpack.c.bf16 %v4757_v14, %v4756_v13 }
 0xe80   : > { %6144 = vmatmul.mubr.msk.bf16.gmra.mrb[140].mxu0 %vm668_vm0, %v4761_v62 }
 0xf3f   : > { %v6141_v16 = vpop.f32.mrb[136].mxu0 }
 0xf40   : > { %v4831_v12 = vpop.f32.mrb[137].mxu0  ;;  %v4840_v53 = vadd.f32 %v6141_v16, %v5517_v28 }
 0xf41   : > { %v4832_v2 = vadd.f32 %v5517_v28, %v4831_v12  ;;  %v6142_v35 = vpop.f32.mrb[138].mxu0 }
 0xf42   : > { %v4834_v51 = vpop.f32.mrb[139].mxu0  ;;  %v8369_v7 = vadd.f32 %v6542_v38, %v4840_v53  ;;  %v4843_v25 = vadd.f32 %v6142_v35, %v5517_v28 }
 0xf43   : > { %v8366_v31 = vadd.f32 %v6541_v45, %v4832_v2  ;;  %v4835_v15 = vadd.f32 %v5517_v28, %v4834_v51 }
 0xf44   : > { %v8379_v29 = vadd.f32 %v6544_v17, %v4843_v25  ;;  %v4878_v33 = vsel %vm668_vm0, %v8369_v7, 0.0 }
 0xf45   : > { %v8372_v34 = vadd.f32 %v6543_v9, %v4835_v15  ;;  %v4872_v60 = vsel %vm668_vm0, %v8366_v31, 0.0 }
 0xf46   : > { %4873 = vadd.xlane.f32.xlu0 %v4872_v60  ;;  %v4881_v11 = vsel %vm668_vm0, %v8379_v29, 0.0 }
 0xf47   : > { %v4875_v6 = vsel %vm668_vm0, %v8372_v34, 0.0 }
 0xf48   : > { %4876 = vadd.xlane.f32.xlu1 %v4875_v6 }
 0xf4a   : > { %4879 = vadd.xlane.f32.xlu0 %v4878_v33 }
 0xf4e   : > { %4882 = vadd.xlane.f32.xlu0 %v4881_v11 }
 0xf53   : > { %v6145_v19 = vpop.f32.mrb[140].mxu0 }
 0xf54   : > { %v4847_v27 = vpop.f32.mrb[141].mxu0  ;;  %v4856_v0 = vadd.f32 %v6145_v19, %v5517_v28  ;;  %v6375_v19 = vld [vmem:[%s8627_s4] sm:$0xff]  }
 0xf55   : > { %v4848_v18 = vadd.f32 %v5517_v28, %v4847_v27  ;;  %v6146_v32 = vpop.f32.mrb[142].mxu0  ;;  %6147 = vmatprep.subr.bf16.mxu1 %v6375_v19  ;;  %v6376_v27 = vld [vmem:[%s8627_s4 + $0x8] sm:$0xff]  }
 0xf56   : > { %v4850_v21 = vpop.f32.mrb[143].mxu0  ;;  %v4859_v49 = vadd.f32 %v6146_v32, %v5517_v28  ;;  %v8389_v41 = vadd.f32 %v6546_v30, %v4856_v0  ;;  %6148 = vmatpush3.bf16.msra.mxu1 %v6375_v19  ;;  %v6377_v0 = vld [vmem:[%s8628_s17] sm:$0xff]  }
 0xf57   : > { %v8386_v37 = vadd.f32 %v6545_v43, %v4848_v18  ;;  %v4851_v20 = vadd.f32 %v5517_v28, %v4850_v21  ;;  %6149 = vmatprep.subr.bf16.mxu1 %v6376_v27  ;;  %v6378_v18 = vld [vmem:[%s8628_s17 + $0x8] sm:$0xff]   ;;  %6159 = vmatprep.subr.bf16.mxu0 %v6377_v0 }
 0xf58   : > { %v8397_v26 = vadd.f32 %v6548_v5, %v4859_v49  ;;  %v4890_v44 = vsel %vm668_vm0, %v8389_v41, 0.0  ;;  %6160 = vmatpush3.bf16.msra.mxu0 %v6377_v0 }
 0xf59   : > { %v8392_v56 = vadd.f32 %v6547_v23, %v4851_v20  ;;  %v4884_v40 = vsel %vm668_vm0, %v8386_v37, 0.0  ;;  %6161 = vmatprep.subr.bf16.mxu0 %v6378_v18 }
 0xf5a   : > { %4885 = vadd.xlane.f32.xlu0 %v4884_v40  ;;  %v4893_v48 = vsel %vm668_vm0, %v8397_v26, 0.0  ;;  %6150 = vmatpush3.bf16.msra.mxu1 %v6376_v27 }
 0xf5b   : > { %v4887_v42 = vsel %vm668_vm0, %v8392_v56, 0.0 }
 0xf5c   : > { %4888 = vadd.xlane.f32.xlu1 %v4887_v42  ;;  %6162 = vmatpush3.bf16.msra.mxu0 %v6378_v18 }
 0xf5e   : > { %4891 = vadd.xlane.f32.xlu0 %v4890_v44 }
 0xf60   : > { %4894 = vadd.xlane.f32.xlu1 %v4893_v48 }
 0xfd3   : > { %v4874_v4 = vpop.xlane.xlu0 %4873 }
 0xfd4   : > { %v4896_v59 = vmul.f32 0.03125, %v4874_v4 }
 0xfd5   : > { %v4877_v39 = vpop.xlane.xlu1 %4876 }
 0xfd6   : > { %v8406_v24 = vsub.f32 %v8366_v31, %v4896_v59  ;;  %v4897_v36 = vmul.f32 0.03125, %v4877_v39  ;;  %v5524_v59 = vld [vmem:[#allocation13] ss:$0 sm:$0xff] }
 0xfd7   : > { %v4880_v50 = vpop.xlane.xlu0 %4879 }
 0xfd8   : > { %v8409_v52 = vsub.f32 %v8372_v34, %v4897_v36  ;;  %v4898_v58 = vmul.f32 0.03125, %v4880_v50  ;;  %v4912_v54 = vmul.f32 %v8406_v24, %v8406_v24 }
 0xfda   : > { %v8414_v3 = vsub.f32 %v8369_v7, %v4898_v58  ;;  %v4920_v55 = vsel %vm668_vm0, %v4912_v54, 0.0  ;;  %v4913_v57 = vmul.f32 %v8409_v52, %v8409_v52 }
 0xfdb   : > { %v4883_v1 = vpop.xlane.xlu0 %4882  ;;  %4921 = vadd.xlane.f32.xlu0 %v4920_v55  ;;  %v5525_v55 = vld [vmem:[#allocation14] ss:$0 sm:$0xff] }
 0xfdc   : > { %v4899_v46 = vmul.f32 0.03125, %v4883_v1  ;;  %v4923_v22 = vsel %vm668_vm0, %v4913_v57, 0.0  ;;  %v4914_v47 = vmul.f32 %v8414_v3, %v8414_v3 }
 0xfdd   : > { %4924 = vadd.xlane.f32.xlu1 %v4923_v22 }
 0xfde   : > { %v8423_v63 = vsub.f32 %v8379_v29, %v4899_v46  ;;  %v4926_v61 = vsel %vm668_vm0, %v4914_v47, 0.0 }
 0xfdf   : > { %4927 = vadd.xlane.f32.xlu0 %v4926_v61 }
 0xfe0   : > { %v4915_v10 = vmul.f32 %v8423_v63, %v8423_v63 }
 0xfe2   : > { %v4929_v8 = vsel %vm668_vm0, %v4915_v10, 0.0 }
 0xfe3   : > { %4930 = vadd.xlane.f32.xlu1 %v4929_v8 }
 0xfe7   : > { %v4886_v14 = vpop.xlane.xlu0 %4885 }
 0xfe8   : > { %v4900_v13 = vmul.f32 0.03125, %v4886_v14 }
 0xfe9   : > { %v4889_v62 = vpop.xlane.xlu1 %4888 }
 0xfea   : > { %v8430_v28 = vsub.f32 %v8386_v37, %v4900_v13  ;;  %v4901_v16 = vmul.f32 0.03125, %v4889_v62 }
 0xfeb   : > { %v4892_v12 = vpop.xlane.xlu0 %4891 }
 0xfec   : > { %v8433_v53 = vsub.f32 %v8392_v56, %v4901_v16  ;;  %v4902_v2 = vmul.f32 0.03125, %v4892_v12  ;;  %v4916_v35 = vmul.f32 %v8430_v28, %v8430_v28 }
 0xfed   : > { %v4895_v51 = vpop.xlane.xlu1 %4894 }
 0xfee   : > { %v8438_v45 = vsub.f32 %v8389_v41, %v4902_v2  ;;  %v4903_v15 = vmul.f32 0.03125, %v4895_v51  ;;  %v4932_v38 = vsel %vm668_vm0, %v4916_v35, 0.0  ;;  %v4917_v25 = vmul.f32 %v8433_v53, %v8433_v53 }
 0xfef   : > { %4933 = vadd.xlane.f32.xlu0 %v4932_v38 }
 0xff0   : > { %v8444_v9 = vsub.f32 %v8397_v26, %v4903_v15  ;;  %v4935_v60 = vsel %vm668_vm0, %v4917_v25, 0.0  ;;  %v4918_v6 = vmul.f32 %v8438_v45, %v8438_v45 }
 0xff1   : > { %4936 = vadd.xlane.f32.xlu1 %v4935_v60 }
 0xff2   : > { %v4938_v17 = vsel %vm668_vm0, %v4918_v6, 0.0  ;;  %v4919_v33 = vmul.f32 %v8444_v9, %v8444_v9 }
 0xff3   : > { %4939 = vadd.xlane.f32.xlu0 %v4938_v17 }
 0xff4   : > { %v4941_v11 = vsel %vm668_vm0, %v4919_v33, 0.0 }
 0xff5   : > { %4942 = vadd.xlane.f32.xlu1 %v4941_v11 }
0x1068   : > { %v4922_v32 = vpop.xlane.xlu0 %4921 }
0x1069   : > { %v4944_v21 = vmul.f32 0.03125, %v4922_v32 }
0x106a   : > { %v4925_v43 = vpop.xlane.xlu1 %4924 }
0x106b   : > { %v4952_v49 = vadd.f32 1e-05, %v4944_v21  ;;  %v4945_v20 = vmul.f32 0.03125, %v4925_v43 }
0x106c   : > { %v4928_v30 = vpop.xlane.xlu0 %4927 }
0x106d   : > { %6525 = vrsqrt.f32 %v4952_v49  ;;  %v4953_v23 = vadd.f32 1e-05, %v4945_v20  ;;  %v4946_v40 = vmul.f32 0.03125, %v4928_v30 }
0x106f   : > { %6527 = vrsqrt.f32 %v4953_v23  ;;  %v4954_v5 = vadd.f32 1e-05, %v4946_v40 }
0x1070   : > { %v4931_v42 = vpop.xlane.xlu1 %4930 }
0x1071   : > { %6529 = vrsqrt.f32 %v4954_v5  ;;  %v4947_v44 = vmul.f32 0.03125, %v4931_v42 }
0x1073   : > { %v4955_v48 = vadd.f32 1e-05, %v4947_v44 }
0x1075   : > { %6531 = vrsqrt.f32 %v4955_v48 }
0x1077   : > { %v6526_v4 = vpop.eup %6525 }
0x1078   : > { %v4968_v39 = vmul.f32 %v6526_v4, %v8406_v24 }
0x1079   : > { %v6528_v36 = vpop.eup %6527 }
0x107a   : > { %v4969_v50 = vmul.f32 %v6528_v36, %v8409_v52  ;;  %v4982_v58 = vmul.f32 %v5524_v59, %v4968_v39 }
0x107b   : > { %v6530_v54 = vpop.eup %6529 }
0x107c   : > { %v4970_v57 = vmul.f32 %v6530_v54, %v8414_v3  ;;  %v4934_v1 = vpop.xlane.xlu0 %4933  ;;  %v4983_v46 = vmul.f32 %v5524_v59, %v4969_v50  ;;  %v4996_v61 = vadd.f32 %v5525_v55, %v4982_v58 }
0x107d   : > { %v4948_v22 = vmul.f32 0.03125, %v4934_v1 }
0x107e   : > { %v4937_v47 = vpop.xlane.xlu1 %4936  ;;  %v4997_v10 = vadd.f32 %v5525_v55, %v4983_v46  ;;  %v4984_v62 = vmul.f32 %v5524_v59, %v4970_v57 }
0x107f   : > { %v6532_v8 = vpop.eup %6531  ;;  %v4956_v14 = vadd.f32 1e-05, %v4948_v22  ;;  %v4949_v13 = vmul.f32 0.03125, %v4937_v47 }
0x1080   : > { %v4971_v24 = vmul.f32 %v6532_v8, %v8423_v63  ;;  %v4940_v16 = vpop.xlane.xlu0 %4939  ;;  %v5004_v12 = vpack.c.bf16 %v4997_v10, %v4996_v61  ;;  %v4998_v38 = vadd.f32 %v5525_v55, %v4984_v62 }
0x1081   : > { %6533 = vrsqrt.f32 %v4956_v14  ;;  %v4957_v52 = vadd.f32 1e-05, %v4949_v13  ;;  %v4950_v2 = vmul.f32 0.03125, %v4940_v16 }
0x1082   : > { %v4985_v35 = vmul.f32 %v5524_v59, %v4971_v24  ;;  %v4943_v51 = vpop.xlane.xlu1 %4942  ;;  %6151 = vmatprep.mubr.msk.bf16.mxu1 %vm668_vm0, %v5004_v12 }
0x1083   : > { %6535 = vrsqrt.f32 %v4957_v52  ;;  %v4958_v3 = vadd.f32 1e-05, %v4950_v2  ;;  %v4951_v15 = vmul.f32 0.03125, %v4943_v51  ;;  %v5533_v51 = vld [vmem:[%s8630_s13] ss:$0 sm:$0xff]  ;;  %s6877_s13 = smov [#allocation16]  }
0x1084   : > { %v4999_v25 = vadd.f32 %v5525_v55, %v4985_v35 }
0x1085   : > { %6537 = vrsqrt.f32 %v4958_v3  ;;  %v4959_v60 = vadd.f32 1e-05, %v4951_v15 }
0x1086   : > { %v5005_v6 = vpack.c.bf16 %v4999_v25, %v4998_v38 }
0x1087   : > { %6539 = vrsqrt.f32 %v4959_v60 }
0x1088   : > { %6152 = vmatmul.mubr.msk.bf16.vlgmr.msra.gmra.mrb[144].mxu1 %vm668_vm0, %v5005_v6 }
0x108b   : > { %v6534_v63 = vpop.eup %6533 }
0x108c   : > { %v4972_v17 = vmul.f32 %v6534_v63, %v8430_v28 }
0x108d   : > { %v6536_v33 = vpop.eup %6535 }
0x108e   : > { %v4973_v11 = vmul.f32 %v6536_v33, %v8433_v53  ;;  %v4986_v19 = vmul.f32 %v5524_v59, %v4972_v17  ;;  %v6379_v53 = vld [vmem:[%s8628_s17 + $0x10] sm:$0xff]  }
0x108f   : > { %v6538_v27 = vpop.eup %6537  ;;  %6163 = vmatprep.subr.bf16.mxu0 %v6379_v53 }
0x1090   : > { %v4974_v0 = vmul.f32 %v6538_v27, %v8438_v45  ;;  %v4987_v18 = vmul.f32 %v5524_v59, %v4973_v11  ;;  %v5000_v43 = vadd.f32 %v5525_v55, %v4986_v19  ;;  %6164 = vmatpush3.bf16.msra.mxu0 %v6379_v53  ;;  %v6380_v45 = vld [vmem:[%s8628_s17 + $0x18] sm:$0xff]  }
0x1091   : > { %v6540_v32 = vpop.eup %6539  ;;  %6165 = vmatprep.subr.bf16.mxu0 %v6380_v45 }
0x1092   : > { %v4975_v21 = vmul.f32 %v6540_v32, %v8444_v9  ;;  %v5001_v49 = vadd.f32 %v5525_v55, %v4987_v18  ;;  %v4988_v20 = vmul.f32 %v5524_v59, %v4974_v0  ;;  %v5526_v9 = vld [vmem:[%s8629_s16] ss:$0 sm:$0xff]  ;;  %s8631_s16 = sld [smem:[#allocation33_spill]] }
0x1094   : > { %v5006_v30 = vpack.c.bf16 %v5001_v49, %v5000_v43  ;;  %v4989_v23 = vmul.f32 %v5524_v59, %v4975_v21  ;;  %v5002_v40 = vadd.f32 %v5525_v55, %v4988_v20  ;;  %6166 = vmatpush3.bf16.msra.mxu0 %v6380_v45 }
0x1096   : > { %6155 = vmatprep.mubr.msk.bf16.mxu1 %vm668_vm0, %v5006_v30  ;;  %v5003_v28 = vadd.f32 %v5525_v55, %v4989_v23 }
0x1098   : > { %v5007_v5 = vpack.c.bf16 %v5003_v28, %v5002_v40  ;;  %s8511_s1 = scalar_lea.hbm %s8631_s16, %s5548_s23  ;;  %s6779_s23 = sshll.u32 %s6877_s13, 4  ;;  %s6780_s23 = int_to_ptr.vmem [resolvable:$false] %s6779_s23 }
0x1099   : > { %s6781_s2 = scalar_lea.vmem %s6780_s23, 2048  ;;  %p6782_p2 = scmp.lt.s32.totalorder %s8515_s9, %s6780_s23 }
0x109a   : > { %6156 = vmatmul.mubr.msk.bf16.gmra.mrb[148].mxu1 %vm668_vm0, %v5007_v5  ;;  %p6783_p8 = scmp.lt.s32.totalorder %s6781_s2, %s6775_s28 }
0x109c   : > { %p6784_p6 = por %p6783_p8, %p6782_p2 }
0x109e   : > { %p6785_p11 = pnand %p6784_p6, %p6778_p3 }
0x115b   : > { %v6153_v42 = vpop.f32.mrb[144].mxu1 }
0x115c   : > { %v5086_v44 = vadd.f32 %v6153_v42, %v5526_v9  ;;  %v5077_v48 = vpop.f32.mrb[145].mxu1 }
0x115d   : > { %v5078_v4 = vadd.f32 %v5526_v9, %v5077_v48  ;;  %v6154_v59 = vpop.f32.mrb[146].mxu1 }
0x115e   : > { %v5089_v39 = vadd.f32 %v6154_v59, %v5526_v9  ;;  %v5080_v36 = vpop.f32.mrb[147].mxu1  ;;  %v5110_v58 = vmax.f32 %v5086_v44, 0.0 }
0x115f   : > { %v5081_v50 = vadd.f32 %v5526_v9, %v5080_v36  ;;  %v5108_v55 = vmax.f32 %v5078_v4, 0.0 }
0x1160   : > { %v5111_v54 = vmax.f32 %v5089_v39, 0.0 }
0x1161   : > { %v5109_v57 = vmax.f32 %v5081_v50, 0.0 }
0x1162   : > { %v5117_v1 = vpack.c.bf16 %v5111_v54, %v5110_v58 }
0x1163   : > { %v5116_v46 = vpack.c.bf16 %v5109_v57, %v5108_v55 }
0x1165   : > { %6167 = vmatprep.mubr.msk.bf16.mxu0 %vm5159_vm6, %v5116_v46 }
0x1166   : > { %6168 = vmatmul.mubr.msk.bf16.vlgmr.msra.gmra.mrb[144].mxu0 %vm5159_vm6, %v5117_v1 }
0x116d   : > { %v6157_v22 = vpop.f32.mrb[148].mxu1 }
0x116e   : > { %v5102_v47 = vadd.f32 %v6157_v22, %v5526_v9  ;;  %v5093_v61 = vpop.f32.mrb[149].mxu1 }
0x116f   : > { %v5094_v10 = vadd.f32 %v5526_v9, %v5093_v61  ;;  %v6158_v8 = vpop.f32.mrb[150].mxu1 }
0x1170   : > { %v5105_v14 = vadd.f32 %v6158_v8, %v5526_v9  ;;  %v5096_v13 = vpop.f32.mrb[151].mxu1  ;;  %v5114_v24 = vmax.f32 %v5102_v47, 0.0 }
0x1171   : > { %v5097_v62 = vadd.f32 %v5526_v9, %v5096_v13  ;;  %v5112_v12 = vmax.f32 %v5094_v10, 0.0 }
0x1172   : > { %v5115_v16 = vmax.f32 %v5105_v14, 0.0 }
0x1173   : > { %v5113_v52 = vmax.f32 %v5097_v62, 0.0 }
0x1174   : > { %v5119_v2 = vpack.c.bf16 %v5115_v16, %v5114_v24 }
0x1175   : > { %v5118_v35 = vpack.c.bf16 %v5113_v52, %v5112_v12 }
0x1177   : > { %6171 = vmatprep.mubr.msk.bf16.mxu0 %vm5159_vm6, %v5118_v35 }
0x1178   : > { %6172 = vmatmul.mubr.msk.bf16.gmra.mrb[148].mxu0 %vm5159_vm6, %v5119_v2 }
0x1239   : > { %v6169_v3 = vpop.f32.mrb[144].mxu0 }
0x123a   : > { %v5215_v15 = vadd.f32 %v6169_v3, %v5533_v51  ;;  %v5206_v38 = vpop.f32.mrb[145].mxu0 }
0x123b   : > { %v5207_v25 = vadd.f32 %v5533_v51, %v5206_v38  ;;  %v6170_v60 = vpop.f32.mrb[146].mxu0 }
0x123c   : > { %v5239_v6 = vadd.f32 %v5215_v15, %v8369_v7  ;;  %v5218_v63 = vadd.f32 %v6170_v60, %v5533_v51  ;;  %v5209_v17 = vpop.f32.mrb[147].mxu0 }
0x123d   : > { %v5237_v33 = vadd.f32 %v5207_v25, %v8366_v31  ;;  %v5210_v11 = vadd.f32 %v5533_v51, %v5209_v17 }
0x123e   : > { %5247 = vst.msk [vmem:[%s654_s18 + $0x10] sm:$0xff] %vm668_vm0, %v5239_v6  ;;  %v5240_v19 = vadd.f32 %v5218_v63, %v8379_v29 }
0x123f   : > { %5245 = vst.msk [vmem:[%s654_s18] sm:$0xff] %vm668_vm0, %v5237_v33  ;;  %v5238_v27 = vadd.f32 %v5210_v11, %v8372_v34 }
0x1240   : > { %5248 = vst.msk [vmem:[%s654_s18 + $0x18] sm:$0xff] %vm668_vm0, %v5240_v19 }
0x1241   : > { %5246 = vst.msk [vmem:[%s654_s18 + $0x8] sm:$0xff] %vm668_vm0, %v5238_v27 }
0x124b   : > { %v6173_v7 = vpop.f32.mrb[148].mxu0 }
0x124c   : > { %v5231_v0 = vadd.f32 %v6173_v7, %v5533_v51  ;;  %v5222_v18 = vpop.f32.mrb[149].mxu0 }
0x124d   : > { %v5223_v32 = vadd.f32 %v5533_v51, %v5222_v18  ;;  %v6174_v31 = vpop.f32.mrb[150].mxu0 }
0x124e   : > { %v5243_v21 = vadd.f32 %v5231_v0, %v8389_v41  ;;  %v5234_v43 = vadd.f32 %v6174_v31, %v5533_v51  ;;  %v5225_v29 = vpop.f32.mrb[151].mxu0 }
0x124f   : > { %v5241_v49 = vadd.f32 %v5223_v32, %v8386_v37  ;;  %v5226_v34 = vadd.f32 %v5533_v51, %v5225_v29 }
0x1250   : > { %5251 = vst.msk [vmem:[%s654_s18 + $0x30] sm:$0xff] %vm668_vm0, %v5243_v21  ;;  %v5244_v20 = vadd.f32 %v5234_v43, %v8397_v26 }
0x1251   : > { %5249 = vst.msk [vmem:[%s654_s18 + $0x20] sm:$0xff] %vm668_vm0, %v5241_v49  ;;  %v5242_v41 = vadd.f32 %v5226_v34, %v8392_v56 }
0x1252   : > { %5252 = vst.msk [vmem:[%s654_s18 + $0x38] sm:$0xff] %vm668_vm0, %v5244_v20 }
0x1253   : > { %5250 = vst.msk [vmem:[%s654_s18 + $0x28] sm:$0xff] %vm668_vm0, %v5242_v41 }
0x1254   : > { %6788 = shalt.err (!%p6785_p11)
}
0x1255   : > { %s6789_s18 = scalar_lea.hbm %s8511_s1, 1024  ;;  %s6793_s13 = scalar_lea.hbm %s8631_s16, 2048 }
0x1256   : > { %p6790_p12 = scmp.ne.s32.totalorder %s8511_s1, %s6789_s18  ;;  %p6794_p9 = scmp.lt.u32.totalorder %s8511_s1, %s8631_s16 }
0x1257   : > { %p6795_p7 = scmp.lt.u32.totalorder %s6793_s13, %s6789_s18  ;;  %p6797_p4 = scmp.lt.u32.totalorder %s6789_s18, %s8511_s1 }
0x1258   : > { %p6791_p0 = pnand %p6790_p12, %p8632_p13 }
0x1259   : > { %p6796_p10 = por %p6795_p7, %p6794_p9 }
0x125a   : > { %p6792_p5 = pneg %p6791_p0 }
0x125b   : > { %p6798_p1 = por %p6797_p4, %p6796_p10 }
0x125d   : > { %p6799_p3 = pnand %p6798_p1, %p6792_p5 }
0x125f   : > { %6802 = shalt.err (!%p6799_p3)
}
0x1260   : > { %s6878_s28 = smov 128   ;;  %s8633_s2 = smov 8  }
0x1261   : > { %s8634_s4 = scalar_lea.sflag [#allocation4], %s7242_s22 }
0x1262   : > { %6209 = dma.vmem_to_hbm [thread:$0]  (%p8632_p13), %s8515_s9, 1024, %s8511_s1, %s8634_s4, %s6878_s28, %s6878_s28, %s8633_s2  }
0x1263 PF: > { %s5282_s3 = sand.u32 1, %s6845_s24   ;;  %p8635_p2 = scmp.ne.s32.totalorder %s8609_s20, 0 }
0x1264   : > { %p8636_p8 = scmp.ge.s32.totalorder %s6857_s27, 2  ;;  %s5283_s0 = scalar_lea.sflag [#allocation4], %s5282_s3 }
0x1266   : > { %p6238_p6 = pnand %p8636_p8, %p8635_p2 }
0x1268   : > { %6840 = dma.done.wait (!%p6238_p6), %s5283_s0, 1024  }
0x1269   : > { %6842 = vsyncadd (!%p6238_p6), %s5283_s0, 4294966272  ;;  %p34_p11 = scmp.ge.s32.totalorder %s7169_s21, 4   ;;  %s8637_s24 = smov %s6849_s25 }
0x126a   : > { %s8638_s25 = smov %s6853_s26  ;;  %s8639_s26 = smov %s7181_s29 }
0x126b   : > { %s8640_s27 = smov %s7169_s21  ;;  %36 = sbr.rel (!%p34_p11) target bundleno = 21 (0x15), region = 161 }
0x1272   :  { %5288 = vsyncpa [#allocation3], 1 }
0x1273   :  { %5290 = vsyncpa [#allocation3 + $0x1], 1 }
0x1274   :  { %5291 = vsyncpa [#allocation6], 1 }
0x1275   :  { %5292 = vsyncpa [#allocation9], 1 }
0x1276   :  { %5293 = vsyncpa [#allocation12], 1 }
0x1277   :  { %5294 = vsyncpa [#allocation15], 1 }
0x1278   :  { %5295 = vsyncpa [#allocation4], 1 }
0x1279   :  { %5297 = vsyncpa [#allocation4 + $0x1], 1 }

</bundles_post_ra>
